<compile_context>
chip_gen: v7x
topology: tpu7x:2x2x1
jax: 0.10.0
libtpu: 0.0.40
codegen_flags: <defaults>
</compile_context>

<pallas_src>
import jax
import jax.numpy as jnp
import numpy as np
from jax import lax
from jax.experimental import pallas as pl
from jax.experimental.pallas import tpu as pltpu


K_SIZE = 5
PAD = (K_SIZE - 1) // 2
TOP = 8   # sublane-aligned first interior row inside the padded scratch (>= PAD)


# ---------------------------------------------------------------------------
# Fused multi-layer conv(5x5) + folded-BN + ReLU kernel (one batch block/step)
# ---------------------------------------------------------------------------
def make_fused_kernel(H, W, channels, Nb, K=K_SIZE):
    """channels = [c_in, c_hidden_0, c_hidden_1, ...]; all layers fused."""
    pad = (K - 1) // 2
    n_layers = len(channels) - 1
    M = Nb * H

    def kernel(*refs):
        x_ref = refs[0]                               # (Nb, H, W*Cin) f32
        layer_refs = refs[1:1 + 3 * n_layers]         # (band, scale, bias)/layer
        o_ref = refs[1 + 3 * n_layers]                # (Nb, H, W*C_last)
        scratch = refs[2 + 3 * n_layers:]             # (cpad, lhs) per layer

        first_step = pl.program_id(0) == 0

        cur = x_ref[...]                              # (Nb, H, W*Cin), f32
        for li in range(n_layers):
            w_ref, s_ref, b_ref = layer_refs[3 * li:3 * li + 3]
            cpad = scratch[2 * li]                    # (Nb, TOP+H+pad, W*Cin_l) f32
            lhs = scratch[2 * li + 1]                 # (M, K*W*Cin_l) bf16
            wc = W * channels[li]
            cout = channels[li + 1]

            # Halo rows are zeroed exactly once: the scratch persists across
            # grid steps and the interior store below never touches them.
            @pl.when(first_step)
            def _():
                cpad[:, TOP - pad:TOP, :] = jnp.zeros((Nb, pad, wc), jnp.float32)
                cpad[:, TOP + H:TOP + H + pad, :] = jnp.zeros(
                    (Nb, pad, wc), jnp.float32)

            # Sublane-aligned interior store (rows [TOP, TOP+H), TOP % 8 == 0).
            cpad[:, TOP:TOP + H, :] = cur.astype(jnp.float32)

            # Assemble stacked-tap LHS (M, K*W*Cin): column block kh holds the
            # kh-shifted padded rows, cast to bf16 for the MXU.  One deep
            # contraction matmul replaces K per-tap matmuls + K-1 adds.
            for kh in range(K):
                r0 = TOP - pad + kh
                lhs[:, kh * wc:(kh + 1) * wc] = (
                    cpad[:, r0:r0 + H, :].reshape(M, wc).astype(jnp.bfloat16))

            acc = jnp.dot(lhs[...], w_ref[...],
                          preferred_element_type=jnp.float32)   # (M, W*Cout) f32

            # Folded BatchNorm (+ conv bias) and ReLU, lane-dense f32 epilogue.
            cur = jnp.maximum(acc * s_ref[...] + b_ref[...], 0.0)
            cur = cur.reshape(Nb, H, W * cout)

        o_ref[...] = cur.astype(o_ref.dtype)          # lane-dense writeback

    return kernel


# ---------------------------------------------------------------------------
# One-time operand preparation (hoisted out of the forward path)
# ---------------------------------------------------------------------------
def make_banded_weight(w_hwio, W, pad):
    """(K, K, Cin, Cout) -> stacked banded matrix (K*W*Cin, W*Cout).

    band[kh*W*Cin + wi*Cin + ci, w*Cout + co] = w_hwio[kh, wi - w + pad, ci, co]
    when 0 <= wi - w + pad < K, else 0.  Folds the kw taps and the W-direction
    'SAME' zero padding into the weight matrix so the kernel issues one wide
    matmul per layer on a packed lane-dense activation.
    """
    K, _, Cin, Cout = w_hwio.shape
    wi = jnp.arange(W)[None, :, None]
    w = jnp.arange(W)[None, None, :]
    kw = jnp.arange(K)[:, None, None]
    mask = (wi == w + kw - pad).astype(w_hwio.dtype)          # (K, W, W)
    band = jnp.einsum('kpw,hkio->hpiwo', mask, w_hwio)        # (K, W, Cin, W, Cout)
    return band.reshape(K * W * Cin, W * Cout)


def prepare_layer_operands(layer_params, W, K=K_SIZE, band_dtype=jnp.bfloat16):
    """Precompute (once, at init) the bf16 banded weights and W-tiled affine.

    Keeping this out of the jitted forward removes the per-call einsum and the
    extra HBM round trip flagged in the perf review; bf16 halves weight DMA
    and VMEM footprint and feeds the MXU in its native dtype.
    """
    pad = (K - 1) // 2
    prepared = []
    for (w_hwio, scale, bias) in layer_params:
        cout = w_hwio.shape[-1]
        band = make_banded_weight(w_hwio.astype(jnp.float32), W, pad)
        s_t = jnp.tile(scale.astype(jnp.float32), W).reshape(1, W * cout)
        b_t = jnp.tile(bias.astype(jnp.float32), W).reshape(1, W * cout)
        prepared.append((band.astype(band_dtype), s_t, b_t))
    return prepared


# ---------------------------------------------------------------------------
# pallas_call wrapper
# ---------------------------------------------------------------------------
def voxel_pooling_pallas(x_packed, prepared, H, W, channels, K=K_SIZE,
                         block_n=None):
    """x_packed: (N, H, W*Cin) f32 -> (N, H, W*C_last) f32, all layers fused."""
    N = x_packed.shape[0]
    if block_n is None:
        block_n = N               # fold the whole batch into one grid step
    assert N % block_n == 0
    pad = (K - 1) // 2
    n_layers = len(channels) - 1
    c_last = channels[-1]
    Hp = TOP + H + pad

    inputs = [x_packed]
    in_specs = [pl.BlockSpec((block_n, H, W * channels[0]), lambda b: (b, 0, 0))]
    flops = 0
    bytes_accessed = x_packed.size * x_packed.dtype.itemsize
    for li, (band, s_t, b_t) in enumerate(prepared):
        cout = channels[li + 1]
        inputs += [band, s_t, b_t]
        in_specs += [
            pl.BlockSpec(band.shape, lambda b: (0, 0)),
            pl.BlockSpec((1, W * cout), lambda b: (0, 0)),
            pl.BlockSpec((1, W * cout), lambda b: (0, 0)),
        ]
        flops += 2 * N * H * (K * W * channels[li]) * (W * cout)
        bytes_accessed += (band.size * band.dtype.itemsize
                           + (s_t.size + b_t.size) * 4)
    bytes_accessed += N * H * W * c_last * 4

    scratch_shapes = []
    for li in range(n_layers):
        wc = W * channels[li]
        scratch_shapes.append(pltpu.VMEM((block_n, Hp, wc), jnp.float32))
        scratch_shapes.append(pltpu.VMEM((block_n * H, K * wc), jnp.bfloat16))

    return pl.pallas_call(
        make_fused_kernel(H, W, channels, block_n, K),
        out_shape=jax.ShapeDtypeStruct((N, H, W * c_last), jnp.float32),
        grid=(N // block_n,),
        in_specs=in_specs,
        out_specs=pl.BlockSpec((block_n, H, W * c_last), lambda b: (b, 0, 0)),
        scratch_shapes=scratch_shapes,
        compiler_params=pltpu.CompilerParams(
            # "arbitrary": the once-only halo zeroing relies on sequential
            # grid execution; with block_n == N there is only one step anyway.
            dimension_semantics=("arbitrary",),
            vmem_limit_bytes=64 * 1024 * 1024,
        ),
        cost_estimate=pl.CostEstimate(
            flops=flops, transcendentals=0, bytes_accessed=bytes_accessed),
    )(*inputs)


# ---------------------------------------------------------------------------
# Parameter construction (deterministic, synthetic; BN folded for inference)
# ---------------------------------------------------------------------------
# TODO(synk): training-mode BatchNorm (batch-stat computation / running-stat
# update) is not implemented; BN is folded into a per-channel affine
# (inference semantics), matching eval-mode forward of the PyTorch module.
def init_voxel_pooling_params(key, c_in, c_hidden, eps=1e-5):
    """Returns list of (w_hwio, scale, bias) per conv+BN+ReLU layer."""
    params = []
    cin = c_in
    for cout in c_hidden:
        key, kw, kb, kg, kbt, km, kv = jax.random.split(key, 7)
        fan_in = cin * K_SIZE * K_SIZE
        w = jax.random.normal(kw, (K_SIZE, K_SIZE, cin, cout),
                              jnp.float32) / np.sqrt(fan_in)
        conv_b = 0.1 * jax.random.normal(kb, (cout,), jnp.float32)
        gamma = 1.0 + 0.1 * jax.random.normal(kg, (cout,), jnp.float32)
        beta = 0.1 * jax.random.normal(kbt, (cout,), jnp.float32)
        run_mean = 0.1 * jax.random.normal(km, (cout,), jnp.float32)
        run_var = 1.0 + 0.1 * jax.random.uniform(kv, (cout,), jnp.float32)
        # BN(conv(x)+b) = s*conv(x) + (s*(b - mean) + beta), s = gamma/sqrt(var+eps)
        s = gamma / jnp.sqrt(run_var + eps)
        folded_bias = s * (conv_b - run_mean) + beta
        params.append((w, s, folded_bias))
        cin = cout
    return params


# ---------------------------------------------------------------------------
# Forward (matches VoxelPooling.forward semantics)
# ---------------------------------------------------------------------------
@jax.jit
def voxel_pooling_forward(x_ncdhw, prepared):
    n, c, d, h, w = x_ncdhw.shape
    c_in = c * d
    channels = [c_in] + [p[1].shape[-1] // w for p in prepared]
    # rearrange 'n c d h w -> n (c d) h w', then NCHW -> packed (N, H, W*C)
    x = x_ncdhw.reshape(n, c_in, h, w).astype(jnp.float32)
    x = jnp.transpose(x, (0, 2, 3, 1)).reshape(n, h, w * c_in)
    y = voxel_pooling_pallas(x, prepared, h, w, channels)
    # packed -> NCHW -> 'n (c d) h w -> n c d h w' with c = 1
    y = y.reshape(n, h, w, channels[-1])
    y = jnp.transpose(y, (0, 3, 1, 2))
    return y.reshape(n, 1, channels[-1], h, w)


# ---------------------------------------------------------------------------
# Pure-JAX f32 reference (correctness check only)
# ---------------------------------------------------------------------------
def reference_forward(x_ncdhw, params):
    n, c, d, h, w = x_ncdhw.shape
    x = x_ncdhw.reshape(n, c * d, h, w)
    x = jnp.transpose(x, (0, 2, 3, 1)).astype(jnp.float32)
    for (wt, s, b) in params:
        y = lax.conv_general_dilated(
            x, wt, window_strides=(1, 1), padding="SAME",
            dimension_numbers=("NHWC", "HWIO", "NHWC"),
            precision=lax.Precision.HIGHEST)
        x = jnp.maximum(y * s[None, None, None, :] + b[None, None, None, :], 0.0)
    x = jnp.transpose(x, (0, 3, 1, 2))
    return x.reshape(n, 1, x.shape[1], h, w)


if __name__ == "__main__":
    # Small shapes consistent with the module: x is (n, c, d, h, w),
    # the conv stack operates on c_in = c*d channels.
    n, c, d, h, w = 2, 4, 4, 16, 16
    c_in = c * d                      # 16
    c_hidden = [32, 8]                # two conv+BN+ReLU layers

    key = jax.random.PRNGKey(0)
    key, kx = jax.random.split(key)
    x = jax.random.normal(kx, (n, c, d, h, w), jnp.float32)

    params = init_voxel_pooling_params(key, c_in, c_hidden)
    # Hoisted, one-time operand prep (bf16 bands + W-tiled folded-BN affine).
    prepared = prepare_layer_operands(params, w)

    out = jax.block_until_ready(voxel_pooling_forward(x, prepared))
    ref = jax.block_until_ready(reference_forward(x, params))

    assert out.shape == (n, 1, c_hidden[-1], h, w), out.shape
    # bf16 MXU feeds with f32 accumulation: tolerance loosened vs the f32 path.
    np.testing.assert_allclose(np.asarray(out), np.asarray(ref),
                               rtol=3e-2, atol=3e-2)
    print("KERNEL_OK")
</pallas_src>

<mosaic_0001>
module attributes {stable_mosaic.version = 11 : i64} {
  func.func @kernel(%arg0: i32, %arg1: memref<2x16x256xf32, #tpu.memory_space<vmem>>, %arg2: memref<1280x512xbf16, #tpu.memory_space<vmem>>, %arg3: memref<1x512xf32, #tpu.memory_space<vmem>>, %arg4: memref<1x512xf32, #tpu.memory_space<vmem>>, %arg5: memref<2560x128xbf16, #tpu.memory_space<vmem>>, %arg6: memref<1x128xf32, #tpu.memory_space<vmem>>, %arg7: memref<1x128xf32, #tpu.memory_space<vmem>>, %arg8: memref<2x16x128xf32, #tpu.memory_space<vmem>>, %arg9: memref<2x26x256xf32, #tpu.memory_space<vmem>>, %arg10: memref<32x1280xbf16, #tpu.memory_space<vmem>>, %arg11: memref<2x26x512xf32, #tpu.memory_space<vmem>>, %arg12: memref<32x2560xbf16, #tpu.memory_space<vmem>>) attributes {dimension_semantics = [#tpu.dimension_semantics<arbitrary>], iteration_bounds = array<i64: 1>, scalar_prefetch = 0 : i64, scratch_operands = 4 : i64, tpu.core_type = #tpu.core_type<tc>, window_params = [{transform_indices = @transform_0, window_bounds = array<i64: 2, 16, 256>}, {pipeline_mode = #tpu.pipeline_mode<synchronous>, transform_indices = @transform_1, window_bounds = array<i64: 1280, 512>}, {pipeline_mode = #tpu.pipeline_mode<synchronous>, transform_indices = @transform_2, window_bounds = array<i64: 1, 512>}, {pipeline_mode = #tpu.pipeline_mode<synchronous>, transform_indices = @transform_3, window_bounds = array<i64: 1, 512>}, {pipeline_mode = #tpu.pipeline_mode<synchronous>, transform_indices = @transform_4, window_bounds = array<i64: 2560, 128>}, {pipeline_mode = #tpu.pipeline_mode<synchronous>, transform_indices = @transform_5, window_bounds = array<i64: 1, 128>}, {pipeline_mode = #tpu.pipeline_mode<synchronous>, transform_indices = @transform_6, window_bounds = array<i64: 1, 128>}, {transform_indices = @transform_7, window_bounds = array<i64: 2, 16, 128>}]} {
    %c0_i32 = arith.constant 0 : i32
    %0 = arith.cmpi eq, %arg0, %c0_i32 : i32
    %c0 = arith.constant 0 : index
    %c0_0 = arith.constant 0 : index
    %c0_1 = arith.constant 0 : index
    %1 = vector.load %arg1[%c0, %c0_0, %c0_1] : memref<2x16x256xf32, #tpu.memory_space<vmem>>, vector<2x16x256xf32>
    %2 = arith.extui %0 : i1 to i32
    %c0_i32_2 = arith.constant 0 : i32
    %3 = arith.cmpi ne, %2, %c0_i32_2 : i32
    scf.if %3 {
      %cst_71 = arith.constant 0.000000e+00 : f32
      %73 = vector.broadcast %cst_71 : f32 to vector<2x2x256xf32>
      %c0_72 = arith.constant 0 : index
      %c6_73 = arith.constant 6 : index
      %c0_74 = arith.constant 0 : index
      %74 = vector.load %arg9[%c0_72, %c6_73, %c0_74] : memref<2x26x256xf32, #tpu.memory_space<vmem>>, vector<2x2x256xf32>
      tpu.vector_store %arg9[%c0_72, %c6_73, %c0_74], %73 {strides = array<i32>} : memref<2x26x256xf32, #tpu.memory_space<vmem>>, vector<2x2x256xf32>,
      %cst_75 = arith.constant 0.000000e+00 : f32
      %75 = vector.broadcast %cst_75 : f32 to vector<2x2x256xf32>
      %c0_76 = arith.constant 0 : index
      %c24 = arith.constant 24 : index
      %c0_77 = arith.constant 0 : index
      %76 = vector.load %arg9[%c0_76, %c24, %c0_77] : memref<2x26x256xf32, #tpu.memory_space<vmem>>, vector<2x2x256xf32>
      tpu.vector_store %arg9[%c0_76, %c24, %c0_77], %75 {strides = array<i32>} : memref<2x26x256xf32, #tpu.memory_space<vmem>>, vector<2x2x256xf32>,
    } else {
    }
    %c0_3 = arith.constant 0 : index
    %c8 = arith.constant 8 : index
    %c0_4 = arith.constant 0 : index
    %4 = vector.load %arg9[%c0_3, %c8, %c0_4] : memref<2x26x256xf32, #tpu.memory_space<vmem>>, vector<2x16x256xf32>
    tpu.vector_store %arg9[%c0_3, %c8, %c0_4], %1 {strides = array<i32>} : memref<2x26x256xf32, #tpu.memory_space<vmem>>, vector<2x16x256xf32>,
    %c0_5 = arith.constant 0 : index
    %c6 = arith.constant 6 : index
    %c0_6 = arith.constant 0 : index
    %5 = vector.load %arg9[%c0_5, %c6, %c0_6] : memref<2x26x256xf32, #tpu.memory_space<vmem>>, vector<2x16x256xf32>
    %6 = vector.shape_cast %5 : vector<2x16x256xf32> to vector<32x256xf32>
    %7 = arith.truncf %6 : vector<32x256xf32> to vector<32x256xbf16>
    %c0_7 = arith.constant 0 : index
    %c0_8 = arith.constant 0 : index
    %8 = vector.load %arg10[%c0_7, %c0_8] : memref<32x1280xbf16, #tpu.memory_space<vmem>>, vector<32x256xbf16>
    tpu.vector_store %arg10[%c0_7, %c0_8], %7 {strides = array<i32>} : memref<32x1280xbf16, #tpu.memory_space<vmem>>, vector<32x256xbf16>,
    %c0_9 = arith.constant 0 : index
    %c7 = arith.constant 7 : index
    %c0_10 = arith.constant 0 : index
    %9 = vector.load %arg9[%c0_9, %c7, %c0_10] : memref<2x26x256xf32, #tpu.memory_space<vmem>>, vector<2x16x256xf32>
    %10 = vector.shape_cast %9 : vector<2x16x256xf32> to vector<32x256xf32>
    %11 = arith.truncf %10 : vector<32x256xf32> to vector<32x256xbf16>
    %c0_11 = arith.constant 0 : index
    %c256 = arith.constant 256 : index
    %12 = vector.load %arg10[%c0_11, %c256] : memref<32x1280xbf16, #tpu.memory_space<vmem>>, vector<32x256xbf16>
    tpu.vector_store %arg10[%c0_11, %c256], %11 {strides = array<i32>} : memref<32x1280xbf16, #tpu.memory_space<vmem>>, vector<32x256xbf16>,
    %c0_12 = arith.constant 0 : index
    %c8_13 = arith.constant 8 : index
    %c0_14 = arith.constant 0 : index
    %13 = vector.load %arg9[%c0_12, %c8_13, %c0_14] : memref<2x26x256xf32, #tpu.memory_space<vmem>>, vector<2x16x256xf32>
    %14 = vector.shape_cast %13 : vector<2x16x256xf32> to vector<32x256xf32>
    %15 = arith.truncf %14 : vector<32x256xf32> to vector<32x256xbf16>
    %c0_15 = arith.constant 0 : index
    %c512 = arith.constant 512 : index
    %16 = vector.load %arg10[%c0_15, %c512] : memref<32x1280xbf16, #tpu.memory_space<vmem>>, vector<32x256xbf16>
    tpu.vector_store %arg10[%c0_15, %c512], %15 {strides = array<i32>} : memref<32x1280xbf16, #tpu.memory_space<vmem>>, vector<32x256xbf16>,
    %c0_16 = arith.constant 0 : index
    %c9 = arith.constant 9 : index
    %c0_17 = arith.constant 0 : index
    %17 = vector.load %arg9[%c0_16, %c9, %c0_17] : memref<2x26x256xf32, #tpu.memory_space<vmem>>, vector<2x16x256xf32>
    %18 = vector.shape_cast %17 : vector<2x16x256xf32> to vector<32x256xf32>
    %19 = arith.truncf %18 : vector<32x256xf32> to vector<32x256xbf16>
    %c0_18 = arith.constant 0 : index
    %c768 = arith.constant 768 : index
    %20 = vector.load %arg10[%c0_18, %c768] : memref<32x1280xbf16, #tpu.memory_space<vmem>>, vector<32x256xbf16>
    tpu.vector_store %arg10[%c0_18, %c768], %19 {strides = array<i32>} : memref<32x1280xbf16, #tpu.memory_space<vmem>>, vector<32x256xbf16>,
    %c0_19 = arith.constant 0 : index
    %c10 = arith.constant 10 : index
    %c0_20 = arith.constant 0 : index
    %21 = vector.load %arg9[%c0_19, %c10, %c0_20] : memref<2x26x256xf32, #tpu.memory_space<vmem>>, vector<2x16x256xf32>
    %22 = vector.shape_cast %21 : vector<2x16x256xf32> to vector<32x256xf32>
    %23 = arith.truncf %22 : vector<32x256xf32> to vector<32x256xbf16>
    %c0_21 = arith.constant 0 : index
    %c1024 = arith.constant 1024 : index
    %24 = vector.load %arg10[%c0_21, %c1024] : memref<32x1280xbf16, #tpu.memory_space<vmem>>, vector<32x256xbf16>
    tpu.vector_store %arg10[%c0_21, %c1024], %23 {strides = array<i32>} : memref<32x1280xbf16, #tpu.memory_space<vmem>>, vector<32x256xbf16>,
    %c0_22 = arith.constant 0 : index
    %c0_23 = arith.constant 0 : index
    %25 = vector.load %arg10[%c0_22, %c0_23] : memref<32x1280xbf16, #tpu.memory_space<vmem>>, vector<32x1280xbf16>
    %c0_24 = arith.constant 0 : index
    %c0_25 = arith.constant 0 : index
    %26 = vector.load %arg2[%c0_24, %c0_25] : memref<1280x512xbf16, #tpu.memory_space<vmem>>, vector<1280x512xbf16>
    %cst = arith.constant dense<0.000000e+00> : vector<32x512xf32>
    %27 = tpu.matmul %25, %26, %cst {dimension_numbers = #tpu.dot_dimension_numbers<[1], [0], [0], [1], [0, 0, 1, 1], [], []>} : vector<32x1280xbf16>, vector<1280x512xbf16>, vector<32x512xf32> -> vector<32x512xf32>
    %c0_26 = arith.constant 0 : index
    %c0_27 = arith.constant 0 : index
    %28 = vector.load %arg3[%c0_26, %c0_27] : memref<1x512xf32, #tpu.memory_space<vmem>>, vector<1x512xf32>
    %29 = vector.broadcast %28 : vector<1x512xf32> to vector<32x512xf32>
    %30 = arith.mulf %27, %29 : vector<32x512xf32>
    %c0_28 = arith.constant 0 : index
    %c0_29 = arith.constant 0 : index
    %31 = vector.load %arg4[%c0_28, %c0_29] : memref<1x512xf32, #tpu.memory_space<vmem>>, vector<1x512xf32>
    %32 = vector.broadcast %31 : vector<1x512xf32> to vector<32x512xf32>
    %33 = arith.addf %30, %32 : vector<32x512xf32>
    %cst_30 = arith.constant 0.000000e+00 : f32
    %34 = vector.broadcast %cst_30 : f32 to vector<32x512xf32>
    %35 = arith.maximumf %33, %34 : vector<32x512xf32>
    %36 = vector.shape_cast %35 : vector<32x512xf32> to vector<2x16x512xf32>
    %37 = arith.extui %0 : i1 to i32
    %c0_i32_31 = arith.constant 0 : i32
    %38 = arith.cmpi ne, %37, %c0_i32_31 : i32
    scf.if %38 {
      %cst_71 = arith.constant 0.000000e+00 : f32
      %73 = vector.broadcast %cst_71 : f32 to vector<2x2x512xf32>
      %c0_72 = arith.constant 0 : index
      %c6_73 = arith.constant 6 : index
      %c0_74 = arith.constant 0 : index
      %74 = vector.load %arg11[%c0_72, %c6_73, %c0_74] : memref<2x26x512xf32, #tpu.memory_space<vmem>>, vector<2x2x512xf32>
      tpu.vector_store %arg11[%c0_72, %c6_73, %c0_74], %73 {strides = array<i32>} : memref<2x26x512xf32, #tpu.memory_space<vmem>>, vector<2x2x512xf32>,
      %cst_75 = arith.constant 0.000000e+00 : f32
      %75 = vector.broadcast %cst_75 : f32 to vector<2x2x512xf32>
      %c0_76 = arith.constant 0 : index
      %c24 = arith.constant 24 : index
      %c0_77 = arith.constant 0 : index
      %76 = vector.load %arg11[%c0_76, %c24, %c0_77] : memref<2x26x512xf32, #tpu.memory_space<vmem>>, vector<2x2x512xf32>
      tpu.vector_store %arg11[%c0_76, %c24, %c0_77], %75 {strides = array<i32>} : memref<2x26x512xf32, #tpu.memory_space<vmem>>, vector<2x2x512xf32>,
    } else {
    }
    %c0_32 = arith.constant 0 : index
    %c8_33 = arith.constant 8 : index
    %c0_34 = arith.constant 0 : index
    %39 = vector.load %arg11[%c0_32, %c8_33, %c0_34] : memref<2x26x512xf32, #tpu.memory_space<vmem>>, vector<2x16x512xf32>
    tpu.vector_store %arg11[%c0_32, %c8_33, %c0_34], %36 {strides = array<i32>} : memref<2x26x512xf32, #tpu.memory_space<vmem>>, vector<2x16x512xf32>,
    %c0_35 = arith.constant 0 : index
    %c6_36 = arith.constant 6 : index
    %c0_37 = arith.constant 0 : index
    %40 = vector.load %arg11[%c0_35, %c6_36, %c0_37] : memref<2x26x512xf32, #tpu.memory_space<vmem>>, vector<2x16x512xf32>
    %41 = vector.shape_cast %40 : vector<2x16x512xf32> to vector<32x512xf32>
    %42 = arith.truncf %41 : vector<32x512xf32> to vector<32x512xbf16>
    %c0_38 = arith.constant 0 : index
    %c0_39 = arith.constant 0 : index
    %43 = vector.load %arg12[%c0_38, %c0_39] : memref<32x2560xbf16, #tpu.memory_space<vmem>>, vector<32x512xbf16>
    tpu.vector_store %arg12[%c0_38, %c0_39], %42 {strides = array<i32>} : memref<32x2560xbf16, #tpu.memory_space<vmem>>, vector<32x512xbf16>,
    %c0_40 = arith.constant 0 : index
    %c7_41 = arith.constant 7 : index
    %c0_42 = arith.constant 0 : index
    %44 = vector.load %arg11[%c0_40, %c7_41, %c0_42] : memref<2x26x512xf32, #tpu.memory_space<vmem>>, vector<2x16x512xf32>
    %45 = vector.shape_cast %44 : vector<2x16x512xf32> to vector<32x512xf32>
    %46 = arith.truncf %45 : vector<32x512xf32> to vector<32x512xbf16>
    %c0_43 = arith.constant 0 : index
    %c512_44 = arith.constant 512 : index
    %47 = vector.load %arg12[%c0_43, %c512_44] : memref<32x2560xbf16, #tpu.memory_space<vmem>>, vector<32x512xbf16>
    tpu.vector_store %arg12[%c0_43, %c512_44], %46 {strides = array<i32>} : memref<32x2560xbf16, #tpu.memory_space<vmem>>, vector<32x512xbf16>,
    %c0_45 = arith.constant 0 : index
    %c8_46 = arith.constant 8 : index
    %c0_47 = arith.constant 0 : index
    %48 = vector.load %arg11[%c0_45, %c8_46, %c0_47] : memref<2x26x512xf32, #tpu.memory_space<vmem>>, vector<2x16x512xf32>
    %49 = vector.shape_cast %48 : vector<2x16x512xf32> to vector<32x512xf32>
    %50 = arith.truncf %49 : vector<32x512xf32> to vector<32x512xbf16>
    %c0_48 = arith.constant 0 : index
    %c1024_49 = arith.constant 1024 : index
    %51 = vector.load %arg12[%c0_48, %c1024_49] : memref<32x2560xbf16, #tpu.memory_space<vmem>>, vector<32x512xbf16>
    tpu.vector_store %arg12[%c0_48, %c1024_49], %50 {strides = array<i32>} : memref<32x2560xbf16, #tpu.memory_space<vmem>>, vector<32x512xbf16>,
    %c0_50 = arith.constant 0 : index
    %c9_51 = arith.constant 9 : index
    %c0_52 = arith.constant 0 : index
    %52 = vector.load %arg11[%c0_50, %c9_51, %c0_52] : memref<2x26x512xf32, #tpu.memory_space<vmem>>, vector<2x16x512xf32>
    %53 = vector.shape_cast %52 : vector<2x16x512xf32> to vector<32x512xf32>
    %54 = arith.truncf %53 : vector<32x512xf32> to vector<32x512xbf16>
    %c0_53 = arith.constant 0 : index
    %c1536 = arith.constant 1536 : index
    %55 = vector.load %arg12[%c0_53, %c1536] : memref<32x2560xbf16, #tpu.memory_space<vmem>>, vector<32x512xbf16>
    tpu.vector_store %arg12[%c0_53, %c1536], %54 {strides = array<i32>} : memref<32x2560xbf16, #tpu.memory_space<vmem>>, vector<32x512xbf16>,
    %c0_54 = arith.constant 0 : index
    %c10_55 = arith.constant 10 : index
    %c0_56 = arith.constant 0 : index
    %56 = vector.load %arg11[%c0_54, %c10_55, %c0_56] : memref<2x26x512xf32, #tpu.memory_space<vmem>>, vector<2x16x512xf32>
    %57 = vector.shape_cast %56 : vector<2x16x512xf32> to vector<32x512xf32>
    %58 = arith.truncf %57 : vector<32x512xf32> to vector<32x512xbf16>
    %c0_57 = arith.constant 0 : index
    %c2048 = arith.constant 2048 : index
    %59 = vector.load %arg12[%c0_57, %c2048] : memref<32x2560xbf16, #tpu.memory_space<vmem>>, vector<32x512xbf16>
    tpu.vector_store %arg12[%c0_57, %c2048], %58 {strides = array<i32>} : memref<32x2560xbf16, #tpu.memory_space<vmem>>, vector<32x512xbf16>,
    %c0_58 = arith.constant 0 : index
    %c0_59 = arith.constant 0 : index
    %60 = vector.load %arg12[%c0_58, %c0_59] : memref<32x2560xbf16, #tpu.memory_space<vmem>>, vector<32x2560xbf16>
    %c0_60 = arith.constant 0 : index
    %c0_61 = arith.constant 0 : index
    %61 = vector.load %arg5[%c0_60, %c0_61] : memref<2560x128xbf16, #tpu.memory_space<vmem>>, vector<2560x128xbf16>
    %cst_62 = arith.constant dense<0.000000e+00> : vector<32x128xf32>
    %62 = tpu.matmul %60, %61, %cst_62 {dimension_numbers = #tpu.dot_dimension_numbers<[1], [0], [0], [1], [0, 0, 1, 1], [], []>} : vector<32x2560xbf16>, vector<2560x128xbf16>, vector<32x128xf32> -> vector<32x128xf32>
    %c0_63 = arith.constant 0 : index
    %c0_64 = arith.constant 0 : index
    %63 = vector.load %arg6[%c0_63, %c0_64] : memref<1x128xf32, #tpu.memory_space<vmem>>, vector<1x128xf32>
    %64 = vector.broadcast %63 : vector<1x128xf32> to vector<32x128xf32>
    %65 = arith.mulf %62, %64 : vector<32x128xf32>
    %c0_65 = arith.constant 0 : index
    %c0_66 = arith.constant 0 : index
    %66 = vector.load %arg7[%c0_65, %c0_66] : memref<1x128xf32, #tpu.memory_space<vmem>>, vector<1x128xf32>
    %67 = vector.broadcast %66 : vector<1x128xf32> to vector<32x128xf32>
    %68 = arith.addf %65, %67 : vector<32x128xf32>
    %cst_67 = arith.constant 0.000000e+00 : f32
    %69 = vector.broadcast %cst_67 : f32 to vector<32x128xf32>
    %70 = arith.maximumf %68, %69 : vector<32x128xf32>
    %71 = vector.shape_cast %70 : vector<32x128xf32> to vector<2x16x128xf32>
    %c0_68 = arith.constant 0 : index
    %c0_69 = arith.constant 0 : index
    %c0_70 = arith.constant 0 : index
    %72 = vector.load %arg8[%c0_68, %c0_69, %c0_70] : memref<2x16x128xf32, #tpu.memory_space<vmem>>, vector<2x16x128xf32>
    tpu.vector_store %arg8[%c0_68, %c0_69, %c0_70], %71 {strides = array<i32>} : memref<2x16x128xf32, #tpu.memory_space<vmem>>, vector<2x16x128xf32>,
    return
  }
  func.func @transform_0(%arg0: i32) -> (i32, i32, i32) {
    %c0_i32 = arith.constant 0 : i32
    %c0_i32_0 = arith.constant 0 : i32
    %c0_i32_1 = arith.constant 0 : i32
    return %arg0, %c0_i32, %c0_i32_0 : i32, i32, i32
  }
  func.func @transform_1(%arg0: i32) -> (i32, i32) {
    %c0_i32 = arith.constant 0 : i32
    %c0_i32_0 = arith.constant 0 : i32
    %c0_i32_1 = arith.constant 0 : i32
    return %c0_i32, %c0_i32_0 : i32, i32
  }
  func.func @transform_2(%arg0: i32) -> (i32, i32) {
    %c0_i32 = arith.constant 0 : i32
    %c0_i32_0 = arith.constant 0 : i32
    %c0_i32_1 = arith.constant 0 : i32
    return %c0_i32, %c0_i32_0 : i32, i32
  }
  func.func @transform_3(%arg0: i32) -> (i32, i32) {
    %c0_i32 = arith.constant 0 : i32
    %c0_i32_0 = arith.constant 0 : i32
    %c0_i32_1 = arith.constant 0 : i32
    return %c0_i32, %c0_i32_0 : i32, i32
  }
  func.func @transform_4(%arg0: i32) -> (i32, i32) {
    %c0_i32 = arith.constant 0 : i32
    %c0_i32_0 = arith.constant 0 : i32
    %c0_i32_1 = arith.constant 0 : i32
    return %c0_i32, %c0_i32_0 : i32, i32
  }
  func.func @transform_5(%arg0: i32) -> (i32, i32) {
    %c0_i32 = arith.constant 0 : i32
    %c0_i32_0 = arith.constant 0 : i32
    %c0_i32_1 = arith.constant 0 : i32
    return %c0_i32, %c0_i32_0 : i32, i32
  }
  func.func @transform_6(%arg0: i32) -> (i32, i32) {
    %c0_i32 = arith.constant 0 : i32
    %c0_i32_0 = arith.constant 0 : i32
    %c0_i32_1 = arith.constant 0 : i32
    return %c0_i32, %c0_i32_0 : i32, i32
  }
  func.func @transform_7(%arg0: i32) -> (i32, i32, i32) {
    %c0_i32 = arith.constant 0 : i32
    %c0_i32_0 = arith.constant 0 : i32
    %c0_i32_1 = arith.constant 0 : i32
    return %arg0, %c0_i32, %c0_i32_0 : i32, i32, i32
  }
}

</mosaic_0001>

<bundles_post_ra>
// kernel: voxel_pooling_forward.1
= control target key start
LH: loop header
LB: loop body
LE: loop exit
PB: predicated region body
PF: predicated region fallthrough
CT: control target
= control target key end

     0   :  { %12 = vsyncpa [#allocation7], 0  ;;  %s7665_s0 = inlined_call_operand.hbm [shape: f32[2,16,256], index: 0, kind: input, shape index: {}]   ;;  %s7666_s1 = inlined_call_operand.hbm [shape: bf16[1280,512], index: 1, kind: input, shape index: {}]   ;;  %s7667_s2 = inlined_call_operand.hbm [shape: f32[1,512], index: 2, kind: input, shape index: {}]   ;;  %s7668_s3 = inlined_call_operand.hbm [shape: f32[1,512], index: 3, kind: input, shape index: {}]   ;;  %s7669_s4 = inlined_call_operand.hbm [shape: bf16[2560,128], index: 4, kind: input, shape index: {}]   ;;  %s7670_s5 = inlined_call_operand.hbm [shape: f32[1,128], index: 5, kind: input, shape index: {}]   ;;  %s7671_s6 = inlined_call_operand.hbm [shape: f32[1,128], index: 6, kind: input, shape index: {}]   ;;  %s7672_s7 = inlined_call_operand.hbm [shape: f32[2,16,128], index: 7, kind: output, shape index: {}]  }
   0x1   :  { %13 = vsyncpa [#allocation10], 0 }
   0x2   :  { %14 = vsyncpa [#allocation13], 0 }
   0x3   :  { %15 = vsyncpa [#allocation16], 0 }
   0x4   :  { %16 = vsyncpa [#allocation8], 0  ;;  %s7039_s24 = smov [#allocation9]   ;;  %s7040_s26 = smov [#allocation12]  }
   0x5   :  { %s34_s25 = sshll.u32 %s7039_s24, 4  ;;  %s57_s27 = sshll.u32 %s7040_s26, 4  ;;  %s35_s25 = int_to_ptr.vmem [resolvable:$true] %s34_s25  ;;  %s58_s27 = int_to_ptr.vmem [resolvable:$true] %s57_s27 }
   0x6   :  { %s6853_s30 = scalar_lea.hbm %s7666_s1, 40960 }
   0x7   :  { %p6854_p0 = scmp.ne.s32.totalorder %s7666_s1, %s6853_s30  ;;  %p6857_p1 = scmp.lt.u32.totalorder %s6853_s30, %s7666_s1 }
   0x9   :  { %p6859_p2 = pnand %p6857_p1, %p6854_p0 }
   0xb   :  { %6862 = shalt.err (!%p6859_p2)
}
   0xc   :  { %s6863_s12 = scalar_lea.vmem %s35_s25, 40960  ;;  %p6868_p4 = scmp.lt.s32.totalorder %s35_s25, %s35_s25 }
   0xd   :  { %p6864_p3 = scmp.ne.s32.totalorder %s35_s25, %s6863_s12  ;;  %p6869_p5 = scmp.lt.s32.totalorder %s6863_s12, %s6863_s12 }
   0xf   :  { %p6870_p6 = por %p6869_p5, %p6868_p4 }
  0x11   :  { %p6871_p7 = pnand %p6870_p6, %p6864_p3 }
  0x13   :  { %6874 = shalt.err (!%p6871_p7)
}
  0x14   :  { %s7041_s13 = smov 256   ;;  %s7042_s14 = smov 16  }
  0x15   :  { %40 = dma.hbm_to_vmem [thread:$0]  %s7666_s1, 40960, %s35_s25, [#allocation10], %s7041_s13, %s7041_s13, %s7042_s14  }
  0x16   :  { %s6875_s19 = scalar_lea.hbm %s7668_s3, 64 }
  0x17   :  { %p6876_p8 = scmp.ne.s32.totalorder %s7668_s3, %s6875_s19  ;;  %p6879_p9 = scmp.lt.u32.totalorder %s6875_s19, %s7668_s3 }
  0x19   :  { %p6881_p10 = pnand %p6879_p9, %p6876_p8 }
  0x1b   :  { %6884 = shalt.err (!%p6881_p10)
}
  0x1c   :  { %s6885_s24 = scalar_lea.vmem %s58_s27, 64  ;;  %p6890_p12 = scmp.lt.s32.totalorder %s58_s27, %s58_s27 }
  0x1d   :  { %p6886_p11 = scmp.ne.s32.totalorder %s58_s27, %s6885_s24  ;;  %p6891_p13 = scmp.lt.s32.totalorder %s6885_s24, %s6885_s24 }
  0x1f   :  { %p6892_p0 = por %p6891_p13, %p6890_p12 }
  0x21   :  { %p6893_p1 = pnand %p6892_p0, %p6886_p11 }
  0x23   :  { %6896 = shalt.err (!%p6893_p1)
}
  0x24   :  { %60 = dma.hbm_to_vmem [thread:$0]  %s7668_s3, 64, %s58_s27, [#allocation13]  }
  0x25   :  { %s7043_s26 = smov [#allocation15]   ;;  %s7044_s29 = smov [#allocation6]  }
  0x26   :  { %s79_s28 = sshll.u32 %s7043_s26, 4  ;;  %s22_s30 = sshll.u32 %s7044_s29, 4  ;;  %s80_s28 = int_to_ptr.vmem [resolvable:$true] %s79_s28  ;;  %s7121_s30 = int_to_ptr.vmem [resolvable:$true] %s22_s30 }
  0x27   :  { %s6897_s10 = scalar_lea.hbm %s7670_s5, 16 }
  0x28   :  { %p6898_p2 = scmp.ne.s32.totalorder %s7670_s5, %s6897_s10  ;;  %p6901_p3 = scmp.lt.u32.totalorder %s6897_s10, %s7670_s5 }
  0x2a   :  { %p6903_p4 = pnand %p6901_p3, %p6898_p2 }
  0x2c   :  { %6906 = shalt.err (!%p6903_p4)
}
  0x2d   :  { %s6907_s3 = scalar_lea.vmem %s80_s28, 16  ;;  %s6911_s27 = scalar_lea.vmem %s80_s28, 32 }
  0x2e   :  { %p6908_p5 = scmp.ne.s32.totalorder %s80_s28, %s6907_s3  ;;  %p6912_p6 = scmp.lt.s32.totalorder %s80_s28, %s80_s28 }
  0x2f   :  { %p6913_p7 = scmp.lt.s32.totalorder %s6911_s27, %s6907_s3 }
  0x31   :  { %p6914_p8 = por %p6913_p7, %p6912_p6 }
  0x33   :  { %p6915_p9 = pnand %p6914_p8, %p6908_p5 }
  0x35   :  { %6918 = shalt.err (!%p6915_p9)
}
  0x36   :  { %82 = dma.hbm_to_vmem [thread:$0]  %s7670_s5, 16, %s80_s28, [#allocation16]  }
  0x37   :  { %s6919_s21 = scalar_lea.hbm %s7665_s0, 1024 }
  0x38   :  { %p6920_p10 = scmp.ne.s32.totalorder %s7665_s0, %s6919_s21  ;;  %p6923_p11 = scmp.lt.u32.totalorder %s6919_s21, %s7665_s0 }
  0x3a   :  { %p6925_p12 = pnand %p6923_p11, %p6920_p10 }
  0x3c   :  { %6928 = shalt.err (!%p6925_p12)
}
  0x3d   :  { %s6929_s25 = scalar_lea.vmem %s7121_s30, 1024  ;;  %p6934_p0 = scmp.lt.s32.totalorder %s7121_s30, %s7121_s30 }
  0x3e   :  { %p6930_p13 = scmp.ne.s32.totalorder %s7121_s30, %s6929_s25  ;;  %p6935_p1 = scmp.lt.s32.totalorder %s6929_s25, %s6929_s25 }
  0x40   :  { %p6936_p2 = por %p6935_p1, %p6934_p0 }
  0x42   :  { %p6937_p3 = pnand %p6936_p2, %p6930_p13 }
  0x44   :  { %6940 = shalt.err (!%p6937_p3)
}
  0x45   :  { %28 = dma.hbm_to_vmem [thread:$0]  %s7665_s0, 1024, %s7121_s30, [#allocation7], %s7041_s13, %s7041_s13, %s7042_s14  }
  0x46   :  { %s7045_s28 = smov [#allocation11]   ;;  %s7046_s8 = smov [#allocation14]  }
  0x47   :  { %s47_s29 = sshll.u32 %s7045_s28, 4  ;;  %s66_s9 = sshll.u32 %s7046_s8, 4  ;;  %s48_s29 = int_to_ptr.vmem [resolvable:$true] %s47_s29  ;;  %s7155_s9 = int_to_ptr.vmem [resolvable:$true] %s66_s9 }
  0x48   :  { %s6941_s12 = scalar_lea.hbm %s7667_s2, 64 }
  0x49   :  { %p6942_p4 = scmp.ne.s32.totalorder %s7667_s2, %s6941_s12  ;;  %p6945_p5 = scmp.lt.u32.totalorder %s6941_s12, %s7667_s2 }
  0x4b   :  { %p6947_p6 = pnand %p6945_p5, %p6942_p4 }
  0x4d   :  { %6950 = shalt.err (!%p6947_p6)
}
  0x4e   :  { %s6951_s0 = scalar_lea.vmem %s48_s29, 64  ;;  %p6956_p8 = scmp.lt.s32.totalorder %s48_s29, %s48_s29 }
  0x4f   :  { %p6952_p7 = scmp.ne.s32.totalorder %s48_s29, %s6951_s0  ;;  %p6957_p9 = scmp.lt.s32.totalorder %s6951_s0, %s6951_s0 }
  0x51   :  { %p6958_p10 = por %p6957_p9, %p6956_p8 }
  0x53   :  { %p6959_p11 = pnand %p6958_p10, %p6952_p7 }
  0x55   :  { %6962 = shalt.err (!%p6959_p11)
}
  0x56   :  { %50 = dma.hbm_to_vmem [thread:$0]  %s7667_s2, 64, %s48_s29, [#allocation10]  }
  0x57   :  { %s6963_s18 = scalar_lea.hbm %s7669_s4, 20480 }
  0x58   :  { %p6964_p12 = scmp.ne.s32.totalorder %s7669_s4, %s6963_s18  ;;  %p6967_p13 = scmp.lt.u32.totalorder %s6963_s18, %s7669_s4 }
  0x5a   :  { %p6969_p0 = pnand %p6967_p13, %p6964_p12 }
  0x5c   :  { %6972 = shalt.err (!%p6969_p0)
}
  0x5d   :  { %s6973_s23 = scalar_lea.vmem %s7155_s9, 20480  ;;  %p6978_p2 = scmp.lt.s32.totalorder %s7155_s9, %s7155_s9 }
  0x5e   :  { %p6974_p1 = scmp.ne.s32.totalorder %s7155_s9, %s6973_s23  ;;  %p6979_p3 = scmp.lt.s32.totalorder %s6973_s23, %s6973_s23 }
  0x60   :  { %p6980_p4 = por %p6979_p3, %p6978_p2 }
  0x62   :  { %p6981_p5 = pnand %p6980_p4, %p6974_p1 }
  0x64   :  { %6984 = shalt.err (!%p6981_p5)
}
  0x65   :  { %s7047_s2 = smov 64   ;;  %s7048_s24 = smov 4  }
  0x66   :  { %72 = dma.hbm_to_vmem [thread:$0]  %s7669_s4, 20480, %s7155_s9, [#allocation13], %s7047_s2, %s7047_s2, %s7048_s24  }
  0x67   :  { %s7049_s5 = smov [#allocation17]   ;;  %s6985_s8 = scalar_lea.hbm %s7671_s6, 16 }
  0x68   :  { %s89_s26 = sshll.u32 %s7049_s5, 4  ;;  %p6986_p6 = scmp.ne.s32.totalorder %s7671_s6, %s6985_s8  ;;  %s90_s26 = int_to_ptr.vmem [resolvable:$true] %s89_s26 }
  0x69   :  { %p6989_p7 = scmp.lt.u32.totalorder %s6985_s8, %s7671_s6 }
  0x6b   :  { %p6991_p8 = pnand %p6989_p7, %p6986_p6 }
  0x6d   :  { %6994 = shalt.err (!%p6991_p8)
}
  0x6e   :  { %s6995_s16 = scalar_lea.vmem %s90_s26, 16  ;;  %s6999_s4 = scalar_lea.vmem %s90_s26, 32 }
  0x6f   :  { %p6996_p9 = scmp.ne.s32.totalorder %s90_s26, %s6995_s16  ;;  %p7000_p10 = scmp.lt.s32.totalorder %s90_s26, %s90_s26 }
  0x70   :  { %p7001_p11 = scmp.lt.s32.totalorder %s6999_s4, %s6995_s16 }
  0x72   :  { %p7002_p12 = por %p7001_p11, %p7000_p10 }
  0x74   :  { %p7003_p13 = pnand %p7002_p12, %p6996_p9 }
  0x76   :  { %7006 = shalt.err (!%p7003_p13)
}
  0x77   :  { %92 = dma.hbm_to_vmem [thread:$0]  %s7671_s6, 16, %s90_s26, [#allocation16]  }
  0x78   :  { %7029 = dma.done.wait [#allocation7], 1024  }
  0x79   :  { %7030 = vsyncadd [#allocation7], 4294966272 }
  0x7a   :  { %7031 = dma.done.wait [#allocation10], 41024  }
  0x7b   :  { %7032 = vsyncadd [#allocation10], 4294926272 }
  0x7c   :  { %7033 = dma.done.wait [#allocation13], 20544  }
  0x7d   :  { %7034 = vsyncadd [#allocation13], 4294946752 }
  0x7e   :  { %7035 = dma.done.wait [#allocation16], 32  }
  0x7f   :  { %7036 = vsyncadd [#allocation16], 4294967264  ;;  %v7050_v0 = vmov 0.0   ;;  %v6213_v1 = vld [vmem:[#allocation9 + $0x4] ss:$16 sps:$4 sm:$0xff]   ;;  %v7198_v48 = vld [vmem:[#allocation6 + $0x8] sm:$0xff] }
  0x80   :  { %128 = vst [vmem:[#allocation2 + $0x8] sm:$0xc0] %v7050_v0  ;;  %127 = vst [vmem:[#allocation2] sm:$0xc0] %v7050_v0  ;;  %v6215_v2 = vld [vmem:[#allocation9 + $0xc] ss:$16 sps:$4 sm:$0xff]   ;;  %2343 = vmatprep.subr.bf16.mxu0 %v6213_v1 }
  0x81   :  { %129 = vst [vmem:[#allocation2 + $0x40] sm:$0xc0] %v7050_v0  ;;  %130 = vst [vmem:[#allocation2 + $0x48] sm:$0xc0] %v7050_v0  ;;  %v6217_v3 = vld [vmem:[#allocation9] ss:$16 sps:$4 sm:$0xff]   ;;  %2608 = vmatprep.subr.bf16.mxu1 %v6215_v2 }
  0x82   :  { %131 = vst [vmem:[#allocation2 + $0x30] sm:$0x3] %v7050_v0  ;;  %132 = vst [vmem:[#allocation2 + $0x38] sm:$0x3] %v7050_v0  ;;  %v6218_v4 = vld [vmem:[#allocation9 + $0x8] ss:$16 sps:$4 sm:$0xff]   ;;  %2344 = vmatpush1.bf16.msra.mxu0 %v6217_v3 }
  0x83   :  { %133 = vst [vmem:[#allocation2 + $0x70] sm:$0x3] %v7050_v0  ;;  %134 = vst [vmem:[#allocation2 + $0x78] sm:$0x3] %v7050_v0  ;;  %v6219_v5 = vld [vmem:[#allocation9 + $0x24] ss:$16 sps:$4 sm:$0xff]   ;;  %2609 = vmatpush1.bf16.msra.mxu1 %v6218_v4 }
  0x84   :  { %2968 = vst [vmem:[#allocation4] sm:$0xc0] %v7050_v0  ;;  %2969 = vst [vmem:[#allocation4 + $0x8] sm:$0xc0] %v7050_v0  ;;  %v6221_v6 = vld [vmem:[#allocation9 + $0x2c] ss:$16 sps:$4 sm:$0xff]   ;;  %2345 = vmatprep.subr.bf16.mxu0 %v6219_v5 }
  0x85   :  { %2970 = vst [vmem:[#allocation4 + $0x10] sm:$0xc0] %v7050_v0  ;;  %2971 = vst [vmem:[#allocation4 + $0x18] sm:$0xc0] %v7050_v0  ;;  %v6223_v7 = vld [vmem:[#allocation9 + $0x20] ss:$16 sps:$4 sm:$0xff]   ;;  %2610 = vmatprep.subr.bf16.mxu1 %v6221_v6 }
  0x86   :  { %2972 = vst [vmem:[#allocation4 + $0x80] sm:$0xc0] %v7050_v0  ;;  %2973 = vst [vmem:[#allocation4 + $0x88] sm:$0xc0] %v7050_v0  ;;  %v6224_v8 = vld [vmem:[#allocation9 + $0x28] ss:$16 sps:$4 sm:$0xff]   ;;  %2346 = vmatpush1.bf16.msra.mxu0 %v6223_v7 }
  0x87   :  { %2974 = vst [vmem:[#allocation4 + $0x90] sm:$0xc0] %v7050_v0  ;;  %2975 = vst [vmem:[#allocation4 + $0x98] sm:$0xc0] %v7050_v0  ;;  %v6225_v9 = vld [vmem:[#allocation9 + $0x44] ss:$16 sps:$4 sm:$0xff]   ;;  %2611 = vmatpush1.bf16.msra.mxu1 %v6224_v8 }
  0x88   :  { %2976 = vst [vmem:[#allocation4 + $0x60] sm:$0x3] %v7050_v0  ;;  %2977 = vst [vmem:[#allocation4 + $0x68] sm:$0x3] %v7050_v0  ;;  %v6227_v10 = vld [vmem:[#allocation9 + $0x4c] ss:$16 sps:$4 sm:$0xff]   ;;  %2347 = vmatprep.subr.bf16.mxu0 %v6225_v9 }
  0x89   :  { %2978 = vst [vmem:[#allocation4 + $0x70] sm:$0x3] %v7050_v0  ;;  %2979 = vst [vmem:[#allocation4 + $0x78] sm:$0x3] %v7050_v0  ;;  %v6229_v11 = vld [vmem:[#allocation9 + $0x40] ss:$16 sps:$4 sm:$0xff]   ;;  %2612 = vmatprep.subr.bf16.mxu1 %v6227_v10 }
  0x8a   :  { %2980 = vst [vmem:[#allocation4 + $0xe0] sm:$0x3] %v7050_v0  ;;  %2981 = vst [vmem:[#allocation4 + $0xe8] sm:$0x3] %v7050_v0  ;;  %v6230_v12 = vld [vmem:[#allocation9 + $0x48] ss:$16 sps:$4 sm:$0xff]   ;;  %2348 = vmatpush1.bf16.msra.mxu0 %v6229_v11 }
  0x8b   :  { %2982 = vst [vmem:[#allocation4 + $0xf0] sm:$0x3] %v7050_v0  ;;  %2983 = vst [vmem:[#allocation4 + $0xf8] sm:$0x3] %v7050_v0  ;;  %v6231_v13 = vld [vmem:[#allocation9 + $0x64] ss:$16 sps:$4 sm:$0xff]   ;;  %2613 = vmatpush1.bf16.msra.mxu1 %v6230_v12 }
  0x8c   :  { %v6233_v14 = vld [vmem:[#allocation9 + $0x6c] ss:$16 sps:$4 sm:$0xff]   ;;  %v6235_v15 = vld [vmem:[#allocation9 + $0x60] ss:$16 sps:$4 sm:$0xff]   ;;  %v6236_v16 = vld [vmem:[#allocation9 + $0x68] ss:$16 sps:$4 sm:$0xff]   ;;  %2349 = vmatprep.subr.bf16.mxu0 %v6231_v13 }
  0x8d   :  { %v6237_v17 = vld [vmem:[#allocation9 + $0x84] ss:$16 sps:$4 sm:$0xff]   ;;  %2614 = vmatprep.subr.bf16.mxu1 %v6233_v14  ;;  %v6239_v18 = vld [vmem:[#allocation9 + $0x8c] ss:$16 sps:$4 sm:$0xff]   ;;  %v6241_v19 = vld [vmem:[#allocation9 + $0x80] ss:$16 sps:$4 sm:$0xff]  }
  0x8e   :  { %v6242_v20 = vld [vmem:[#allocation9 + $0x88] ss:$16 sps:$4 sm:$0xff]   ;;  %2350 = vmatpush1.bf16.msra.mxu0 %v6235_v15  ;;  %v6243_v21 = vld [vmem:[#allocation9 + $0xa4] ss:$16 sps:$4 sm:$0xff]   ;;  %v6245_v22 = vld [vmem:[#allocation9 + $0xac] ss:$16 sps:$4 sm:$0xff]  }
  0x8f   :  { %2615 = vmatpush1.bf16.msra.mxu1 %v6236_v16  ;;  %2351 = vmatprep.subr.bf16.mxu0 %v6237_v17  ;;  %v6247_v23 = vld [vmem:[#allocation9 + $0xa0] ss:$16 sps:$4 sm:$0xff]   ;;  %v6248_v24 = vld [vmem:[#allocation9 + $0xa8] ss:$16 sps:$4 sm:$0xff]   ;;  %v6249_v25 = vld [vmem:[#allocation9 + $0xc4] ss:$16 sps:$4 sm:$0xff]  }
  0x90   :  { %2616 = vmatprep.subr.bf16.mxu1 %v6239_v18  ;;  %v6251_v26 = vld [vmem:[#allocation9 + $0xcc] ss:$16 sps:$4 sm:$0xff]   ;;  %v6253_v27 = vld [vmem:[#allocation9 + $0xc0] ss:$16 sps:$4 sm:$0xff]   ;;  %v6254_v28 = vld [vmem:[#allocation9 + $0xc8] ss:$16 sps:$4 sm:$0xff]  }
  0x91   :  { %v6255_v29 = vld [vmem:[#allocation9 + $0xe4] ss:$16 sps:$4 sm:$0xff]   ;;  %v6257_v30 = vld [vmem:[#allocation9 + $0xec] ss:$16 sps:$4 sm:$0xff]   ;;  %v6259_v31 = vld [vmem:[#allocation9 + $0xe0] ss:$16 sps:$4 sm:$0xff]  }
  0x92   :  { %2352 = vmatpush1.bf16.msra.mxu0 %v6241_v19  ;;  %v6260_v32 = vld [vmem:[#allocation9 + $0xe8] ss:$16 sps:$4 sm:$0xff]   ;;  %v6261_v33 = vld [vmem:[#allocation9 + $0x104] ss:$16 sps:$4 sm:$0xff]   ;;  %v6263_v34 = vld [vmem:[#allocation9 + $0x10c] ss:$16 sps:$4 sm:$0xff]  }
  0x93   :  { %2617 = vmatpush1.bf16.msra.mxu1 %v6242_v20  ;;  %2353 = vmatprep.subr.bf16.mxu0 %v6243_v21  ;;  %v6265_v35 = vld [vmem:[#allocation9 + $0x100] ss:$16 sps:$4 sm:$0xff]   ;;  %v6266_v36 = vld [vmem:[#allocation9 + $0x108] ss:$16 sps:$4 sm:$0xff]   ;;  %v6267_v37 = vld [vmem:[#allocation9 + $0x124] ss:$16 sps:$4 sm:$0xff]  }
  0x94   :  { %2618 = vmatprep.subr.bf16.mxu1 %v6245_v22  ;;  %v6269_v38 = vld [vmem:[#allocation9 + $0x12c] ss:$16 sps:$4 sm:$0xff]   ;;  %v6271_v39 = vld [vmem:[#allocation9 + $0x120] ss:$16 sps:$4 sm:$0xff]   ;;  %v6272_v40 = vld [vmem:[#allocation9 + $0x128] ss:$16 sps:$4 sm:$0xff]  }
  0x95   :  { %v6273_v41 = vld [vmem:[#allocation9 + $0x144] ss:$16 sps:$4 sm:$0xff]   ;;  %v6275_v42 = vld [vmem:[#allocation9 + $0x14c] ss:$16 sps:$4 sm:$0xff]   ;;  %v6277_v43 = vld [vmem:[#allocation9 + $0x140] ss:$16 sps:$4 sm:$0xff]  }
  0x96   :  { %2354 = vmatpush1.bf16.msra.mxu0 %v6247_v23  ;;  %v6278_v44 = vld [vmem:[#allocation9 + $0x148] ss:$16 sps:$4 sm:$0xff]   ;;  %v6279_v45 = vld [vmem:[#allocation9 + $0x164] ss:$16 sps:$4 sm:$0xff]   ;;  %v6281_v46 = vld [vmem:[#allocation9 + $0x16c] ss:$16 sps:$4 sm:$0xff]  }
  0x97   :  { %2619 = vmatpush1.bf16.msra.mxu1 %v6248_v24  ;;  %2355 = vmatprep.subr.bf16.mxu0 %v6249_v25  ;;  %v6283_v47 = vld [vmem:[#allocation9 + $0x160] ss:$16 sps:$4 sm:$0xff]   ;;  %v6284_v49 = vld [vmem:[#allocation9 + $0x168] ss:$16 sps:$4 sm:$0xff]   ;;  %136 = vst [vmem:[#allocation2 + $0x18] sm:$0xff] %v7198_v48  ;;  %v172_v59 = vrot.slane %v7198_v48, 6 }
  0x98   :  { %2620 = vmatprep.subr.bf16.mxu1 %v6251_v26  ;;  %v7200_v50 = vld [vmem:[#allocation6 + $0x18] sm:$0xff]  ;;  %v6285_v51 = vld [vmem:[#allocation9 + $0x184] ss:$16 sps:$4 sm:$0xff]   ;;  %v144_v53 = vld [vmem:[#allocation2 + $0x8] sm:$0xc0]  ;;  %vm167_vm0 = vcmask 1041408  }
  0x99   :  { %v6287_v52 = vld [vmem:[#allocation9 + $0x18c] ss:$16 sps:$4 sm:$0xff]   ;;  %138 = vst [vmem:[#allocation2 + $0x28] sm:$0xff] %v7200_v50  ;;  %v7204_v54 = vld [vmem:[#allocation6] sm:$0xff]  ;;  %v118_v55 = vld [vmem:[#allocation6 + $0x10] sm:$0xff]  ;;  %v171_v58 = vrot.slane %v144_v53, 6  ;;  %v7215_v26 = vpack.c.bf16 %v7200_v50, %v7198_v48 }
  0x9a   :  { %2356 = vmatpush1.bf16.msra.mxu0 %v6253_v27  ;;  %v6289_v56 = vld [vmem:[#allocation9 + $0x180] ss:$16 sps:$4 sm:$0xff]   ;;  %135 = vst [vmem:[#allocation2 + $0x10] sm:$0xff] %v7204_v54  ;;  %137 = vst [vmem:[#allocation2 + $0x20] sm:$0xff] %v118_v55  ;;  %v6290_v57 = vld [vmem:[#allocation9 + $0x188] ss:$16 sps:$4 sm:$0xff]  }
  0x9b   :  { %2621 = vmatpush1.bf16.msra.mxu1 %v6254_v28  ;;  %2357 = vmatprep.subr.bf16.mxu0 %v6255_v29  ;;  %v6291_v60 = vld [vmem:[#allocation9 + $0x1a4] ss:$16 sps:$4 sm:$0xff]   ;;  %v6293_v61 = vld [vmem:[#allocation9 + $0x1ac] ss:$16 sps:$4 sm:$0xff]   ;;  %v6295_v62 = vld [vmem:[#allocation9 + $0x1a0] ss:$16 sps:$4 sm:$0xff]   ;;  %v173_v3 = vsel %vm167_vm0, %v171_v58, %v172_v59  ;;  %v7218_v28 = vpack.c.bf16 %v118_v55, %v7204_v54 }
  0x9c   :  { %2622 = vmatprep.subr.bf16.mxu1 %v6257_v30  ;;  %v6296_v63 = vld [vmem:[#allocation9 + $0x1a8] ss:$16 sps:$4 sm:$0xff]   ;;  %v6297_v1 = vld [vmem:[#allocation9 + $0x1c4] ss:$16 sps:$4 sm:$0xff]   ;;  %v6299_v2 = vld [vmem:[#allocation9 + $0x1cc] ss:$16 sps:$4 sm:$0xff]  }
  0x9d   :  { %v143_v5 = vld [vmem:[#allocation2] sm:$0xc0]  ;;  %v6301_v6 = vld [vmem:[#allocation9 + $0x1c0] ss:$16 sps:$4 sm:$0xff]   ;;  %v6302_v9 = vld [vmem:[#allocation9 + $0x1c8] ss:$16 sps:$4 sm:$0xff]  }
  0x9e   :  { %2358 = vmatpush1.bf16.msra.mxu0 %v6259_v31  ;;  %v6303_v10 = vld [vmem:[#allocation9 + $0x1e4] ss:$16 sps:$4 sm:$0xff]   ;;  %v168_v12 = vrot.slane %v143_v5, 6  ;;  %v169_v13 = vrot.slane %v7204_v54, 6  ;;  %v6305_v15 = vld [vmem:[#allocation9 + $0x1ec] ss:$16 sps:$4 sm:$0xff]  }
  0x9f   :  { %2623 = vmatpush1.bf16.msra.mxu1 %v6260_v32  ;;  %2359 = vmatprep.subr.bf16.mxu0 %v6261_v33  ;;  %v6307_v16 = vld [vmem:[#allocation9 + $0x1e0] ss:$16 sps:$4 sm:$0xff]   ;;  %v6308_v17 = vld [vmem:[#allocation9 + $0x1e8] ss:$16 sps:$4 sm:$0xff]   ;;  %v6311_v18 = vld [vmem:[#allocation9 + $0x204] ss:$16 sps:$4 sm:$0xff]  }
  0xa0   :  { %2624 = vmatprep.subr.bf16.mxu1 %v6263_v34  ;;  %v148_v0 = vld [vmem:[#allocation2 + $0x28] sm:$0x3f]  ;;  %v170_v19 = vsel %vm167_vm0, %v168_v12, %v169_v13  ;;  %v6309_v22 = vld [vmem:[#allocation9 + $0x200] ss:$16 sps:$4 sm:$0xff]   ;;  %v6317_v25 = vld [vmem:[#allocation9 + $0x224] ss:$16 sps:$4 sm:$0xff]  }
  0xa1   :  { %v176_v4 = vrot.slane %v148_v0, 6  ;;  %v147_v8 = vld [vmem:[#allocation2 + $0x20] sm:$0x3f]  ;;  %v6314_v21 = vld [vmem:[#allocation9 + $0x20c] ss:$16 sps:$4 sm:$0xff]   ;;  %vm228_vm1 = vcmask 1040384  }
  0xa2   :  { %2360 = vmatpush1.bf16.msra.mxu0 %v6265_v35  ;;  %v174_v14 = vrot.slane %v147_v8, 6  ;;  %v6312_v23 = vld [vmem:[#allocation9 + $0x208] ss:$16 sps:$4 sm:$0xff]   ;;  %v6320_v27 = vld [vmem:[#allocation9 + $0x22c] ss:$16 sps:$4 sm:$0xff]   ;;  %v7226_v55 = vld [vmem:[#allocation6 + $0x20] sm:$0xff] }
  0xa3   :  { %2625 = vmatpush1.bf16.msra.mxu1 %v6266_v36  ;;  %2361 = vmatprep.subr.bf16.mxu0 %v6267_v37  ;;  %v177_v7 = vsel %vm167_vm0, %v172_v59, %v176_v4  ;;  %v6315_v29 = vld [vmem:[#allocation9 + $0x220] ss:$16 sps:$4 sm:$0xff]   ;;  %v6318_v30 = vld [vmem:[#allocation9 + $0x228] ss:$16 sps:$4 sm:$0xff]   ;;  %v6323_v31 = vld [vmem:[#allocation9 + $0x244] ss:$16 sps:$4 sm:$0xff]  }
  0xa4   :  { %2626 = vmatprep.subr.bf16.mxu1 %v6269_v38  ;;  %v197_v11 = vpack.c.bf16 %v177_v7, %v173_v3  ;;  %v175_v20 = vsel %vm167_vm0, %v169_v13, %v174_v14  ;;  %v6326_v32 = vld [vmem:[#allocation9 + $0x24c] ss:$16 sps:$4 sm:$0xff]   ;;  %v6321_v33 = vld [vmem:[#allocation9 + $0x240] ss:$16 sps:$4 sm:$0xff]   ;;  %v6324_v34 = vld [vmem:[#allocation9 + $0x248] ss:$16 sps:$4 sm:$0xff]  }
  0xa5   :  { %v196_v24 = vpack.c.bf16 %v175_v20, %v170_v19  ;;  %v6329_v35 = vld [vmem:[#allocation9 + $0x264] ss:$16 sps:$4 sm:$0xff]   ;;  %v6332_v36 = vld [vmem:[#allocation9 + $0x26c] ss:$16 sps:$4 sm:$0xff]   ;;  %v6327_v37 = vld [vmem:[#allocation9 + $0x260] ss:$16 sps:$4 sm:$0xff]  }
  0xa6   :  { %2362 = vmatpush1.bf16.msra.mxu0 %v6271_v39  ;;  %2375 = vmatprep.mubr.bf16.mxu0 %v197_v11  ;;  %v6330_v38 = vld [vmem:[#allocation9 + $0x268] ss:$16 sps:$4 sm:$0xff]   ;;  %v6335_v39 = vld [vmem:[#allocation9 + $0x284] ss:$16 sps:$4 sm:$0xff]   ;;  %v6345_v53 = vld [vmem:[#allocation9 + $0x2c0] ss:$16 sps:$4 sm:$0xff]  }
  0xa7   :  { %2627 = vmatpush1.bf16.msra.mxu1 %v6272_v40  ;;  %2363 = vmatprep.subr.bf16.mxu0 %v6273_v41  ;;  %v6338_v40 = vld [vmem:[#allocation9 + $0x28c] ss:$16 sps:$4 sm:$0xff]   ;;  %v6333_v41 = vld [vmem:[#allocation9 + $0x280] ss:$16 sps:$4 sm:$0xff]   ;;  %v6347_v50 = vld [vmem:[#allocation9 + $0x2c4] ss:$16 sps:$4 sm:$0xff]  }
  0xa8   :  { %2628 = vmatprep.subr.bf16.mxu1 %v6275_v42  ;;  %2640 = vmatprep.mubr.bf16.mxu1 %v197_v11  ;;  %v6336_v42 = vld [vmem:[#allocation9 + $0x288] ss:$16 sps:$4 sm:$0xff]   ;;  %139 = vst [vmem:[#allocation2 + $0x50] sm:$0xff] %v7226_v55  ;;  %v205_v0 = vld [vmem:[#allocation2 + $0x8] sm:$0x80]  ;;  %v179_v5 = vrot.slane %v7226_v55, 6 }
  0xa9   :  { %v6359_v11 = vld [vmem:[#allocation9 + $0x304] ss:$16 sps:$4 sm:$0xff]   ;;  %v6362_v12 = vld [vmem:[#allocation9 + $0x30c] ss:$16 sps:$4 sm:$0xff]   ;;  %v6357_v14 = vld [vmem:[#allocation9 + $0x300] ss:$16 sps:$4 sm:$0xff]  }
  0xaa   :  { %2364 = vmatpush1.bf16.msra.mxu0 %v6277_v43  ;;  %v6341_v43 = vld [vmem:[#allocation9 + $0x2a4] ss:$16 sps:$4 sm:$0xff]   ;;  %vm305_vm2 = vcmask 1046528   ;;  %vm366_vm3 = vcmask 1045504   ;;  %s7051_s6 = smov [#allocation18]  }
  0xab   :  { %2629 = vmatpush1.bf16.msra.mxu1 %v6278_v44  ;;  %2365 = vmatprep.subr.bf16.mxu0 %v6279_v45  ;;  %v6344_v44 = vld [vmem:[#allocation9 + $0x2ac] ss:$16 sps:$4 sm:$0xff]   ;;  %v6339_v45 = vld [vmem:[#allocation9 + $0x2a0] ss:$16 sps:$4 sm:$0xff]   ;;  %v6365_v19 = vld [vmem:[#allocation9 + $0x324] ss:$16 sps:$4 sm:$0xff]  }
  0xac   :  { %2630 = vmatprep.subr.bf16.mxu1 %v6281_v46  ;;  %v7220_v46 = vld [vmem:[#allocation6 + $0x28] sm:$0xff]  ;;  %s5357_s27 = sshll.u32 %s7051_s6, 4  ;;  %s5358_s27 = int_to_ptr.vmem [resolvable:$true] %s5357_s27 }
  0xad   :  { %140 = vst [vmem:[#allocation2 + $0x58] sm:$0xff] %v7220_v46  ;;  %v182_v59 = vrot.slane %v7220_v46, 6  ;;  %s7007_s0 = scalar_lea.vmem %s5358_s27, 512  ;;  %p7012_p1 = scmp.lt.s32.totalorder %s5358_s27, %s5358_s27 }
  0xae   :  { %2366 = vmatpush1.bf16.msra.mxu0 %v6283_v47  ;;  %v6342_v47 = vld [vmem:[#allocation9 + $0x2a8] ss:$16 sps:$4 sm:$0xff]   ;;  %p7008_p0 = scmp.ne.s32.totalorder %s5358_s27, %s7007_s0  ;;  %p7013_p2 = scmp.lt.s32.totalorder %s7007_s0, %s7007_s0 }
  0xaf   :  { %2631 = vmatpush1.bf16.msra.mxu1 %v6284_v49  ;;  %2367 = vmatprep.subr.bf16.mxu0 %v6285_v51  ;;  %v7222_v49 = vld [vmem:[#allocation6 + $0x38] sm:$0xff] }
  0xb0   :  { %2632 = vmatprep.subr.bf16.mxu1 %v6287_v52  ;;  %v6350_v51 = vld [vmem:[#allocation9 + $0x2cc] ss:$16 sps:$4 sm:$0xff]   ;;  %142 = vst [vmem:[#allocation2 + $0x68] sm:$0xff] %v7222_v49  ;;  %p7014_p3 = por %p7013_p2, %p7012_p1 }
  0xb1   :  { %v150_v52 = vld [vmem:[#allocation2 + $0x48] sm:$0xc0] }
  0xb2   :  { %2368 = vmatpush1.bf16.msra.mxu0 %v6289_v56  ;;  %v7228_v56 = vld [vmem:[#allocation6 + $0x30] sm:$0xff]  ;;  %v181_v58 = vrot.slane %v150_v52, 6  ;;  %v208_v52 = vld [vmem:[#allocation2 + $0x20] sm:$0x7f]  ;;  %p7015_p4 = pnand %p7014_p3, %p7008_p0 }
  0xb3   :  { %2633 = vmatpush1.bf16.msra.mxu1 %v6290_v57  ;;  %2369 = vmatprep.subr.bf16.mxu0 %v6291_v60  ;;  %v6348_v57 = vld [vmem:[#allocation9 + $0x2c8] ss:$16 sps:$4 sm:$0xff]   ;;  %141 = vst [vmem:[#allocation2 + $0x60] sm:$0xff] %v7228_v56  ;;  %v149_v60 = vld [vmem:[#allocation2 + $0x40] sm:$0xc0] }
  0xb4   :  { %2634 = vmatprep.subr.bf16.mxu1 %v6293_v61  ;;  %v6353_v61 = vld [vmem:[#allocation9 + $0x2e4] ss:$16 sps:$4 sm:$0xff]   ;;  %v178_v4 = vrot.slane %v149_v60, 6  ;;  %v183_v7 = vsel %vm167_vm0, %v181_v58, %v182_v59  ;;  %v230_v58 = vrot.slane %v7204_v54, 7 }
  0xb5   :  { %v6407_v54 = vld [vmem:[#allocation9 + $0x404] ss:$16 sps:$4 sm:$0xff]  }
  0xb6   :  { %2370 = vmatpush1.bf16.msra.mxu0 %v6295_v62  ;;  %v6356_v62 = vld [vmem:[#allocation9 + $0x2ec] ss:$16 sps:$4 sm:$0xff]  }
  0xb7   :  { %2635 = vmatpush1.bf16.msra.mxu1 %v6296_v63  ;;  %2371 = vmatprep.subr.bf16.mxu0 %v6297_v1  ;;  %v6351_v63 = vld [vmem:[#allocation9 + $0x2e0] ss:$16 sps:$4 sm:$0xff]   ;;  %v209_v1 = vld [vmem:[#allocation2 + $0x28] sm:$0x7f] }
  0xb8   :  { %2636 = vmatprep.subr.bf16.mxu1 %v6299_v2  ;;  %v233_v2 = vrot.slane %v7198_v48, 7  ;;  %v154_v3 = vld [vmem:[#allocation2 + $0x68] sm:$0x3f] }
  0xb9   :  { %v186_v8 = vrot.slane %v154_v3, 6 }
  0xba   :  { %2372 = vmatpush1.bf16.msra.mxu0 %v6301_v6  ;;  %v6354_v6 = vld [vmem:[#allocation9 + $0x2e8] ss:$16 sps:$4 sm:$0xff]   ;;  %v153_v48 = vld [vmem:[#allocation2 + $0x60] sm:$0x3f] }
  0xbb   :  { %2637 = vmatpush1.bf16.msra.mxu1 %v6302_v9  ;;  %2373 = vmatprep.subr.bf16.mxu0 %v6303_v10  ;;  %v232_v9 = vrot.slane %v205_v0, 7  ;;  %v237_v10 = vrot.slane %v209_v1, 7  ;;  %v187_v13 = vsel %vm167_vm0, %v182_v59, %v186_v8  ;;  %v6401_v59 = vld [vmem:[#allocation9 + $0x3e4] ss:$16 sps:$4 sm:$0xff]   ;;  %v7248_v0 = vpack.c.bf16 %v7228_v56, %v7226_v55  ;;  %v6399_v1 = vld [vmem:[#allocation9 + $0x3e0] ss:$16 sps:$4 sm:$0xff]  }
  0xbc   :  { %2638 = vmatprep.subr.bf16.mxu1 %v6305_v15  ;;  %v199_v15 = vpack.c.bf16 %v187_v13, %v183_v7  ;;  %v6413_v8 = vld [vmem:[#allocation9 + $0x424] ss:$16 sps:$4 sm:$0xff]   ;;  %v243_v56 = vrot.slane %v7220_v46, 7 }
  0xbd   :  { %v234_v20 = vsel %vm228_vm1, %v232_v9, %v233_v2  ;;  %v6416_v9 = vld [vmem:[#allocation9 + $0x42c] ss:$16 sps:$4 sm:$0xff]  }
  0xbe   :  { %2374 = vmatpush1.bf16.msra.mxu0 %v6307_v16  ;;  %v180_v16 = vsel %vm167_vm0, %v178_v4, %v179_v5 }
  0xbf   :  { %2639 = vmatpush1.bf16.msra.mxu1 %v6308_v17  ;;  %2396 = vmatprep.subr.bf16.mxu0 %v6311_v18  ;;  %v184_v17 = vrot.slane %v153_v48, 6  ;;  %v6360_v18 = vld [vmem:[#allocation9 + $0x308] ss:$16 sps:$4 sm:$0xff]  }
  0xc0   :  { %2661 = vmatprep.subr.bf16.mxu1 %v6314_v21  ;;  %v238_v21 = vsel %vm228_vm1, %v233_v2, %v237_v10  ;;  %v6402_v2 = vld [vmem:[#allocation9 + $0x3e8] ss:$16 sps:$4 sm:$0xff]   ;;  %v211_v10 = vld [vmem:[#allocation2 + $0x48] sm:$0x80] }
  0xc1   :  { %2376 = vmatmul.mubr.bf16.vlgmr.msra.gmra.mrb[0].mxu0 %v196_v24  ;;  %v242_v13 = vrot.slane %v211_v10, 7  ;;  %v6485_v10 = vld [vmem:[#allocation9 + $0x5a4] ss:$16 sps:$4 sm:$0xff]  }
  0xc2   :  { %2641 = vmatmul.mubr.bf16.vlgmr.msra.gmra.mrb[0].mxu1 %v196_v24  ;;  %2397 = vmatpush1.bf16.msra.mxu0 %v6309_v22  ;;  %v6368_v22 = vld [vmem:[#allocation9 + $0x32c] ss:$16 sps:$4 sm:$0xff]  }
  0xc3   :  { %2662 = vmatpush1.bf16.msra.mxu1 %v6312_v23  ;;  %2398 = vmatprep.subr.bf16.mxu0 %v6317_v25  ;;  %v185_v23 = vsel %vm167_vm0, %v179_v5, %v184_v17  ;;  %v6363_v25 = vld [vmem:[#allocation9 + $0x320] ss:$16 sps:$4 sm:$0xff]   ;;  %v6422_v17 = vld [vmem:[#allocation9 + $0x44c] ss:$16 sps:$4 sm:$0xff]  }
  0xc4   :  { %2663 = vmatprep.subr.bf16.mxu1 %v6320_v27  ;;  %2385 = vmatprep.mubr.bf16.mxu0 %v199_v15  ;;  %v198_v24 = vpack.c.bf16 %v185_v23, %v180_v16  ;;  %v6366_v27 = vld [vmem:[#allocation9 + $0x328] ss:$16 sps:$4 sm:$0xff]   ;;  %v6405_v5 = vld [vmem:[#allocation9 + $0x400] ss:$16 sps:$4 sm:$0xff]   ;;  %v6419_v16 = vld [vmem:[#allocation9 + $0x444] ss:$16 sps:$4 sm:$0xff]  }
  0xc5   :  { %2650 = vmatprep.mubr.bf16.mxu1 %v199_v15  ;;  %v240_v15 = vrot.slane %v7226_v55, 7 }
  0xc6   :  { %2399 = vmatpush1.bf16.msra.mxu0 %v6315_v29  ;;  %v258_v29 = vpack.c.bf16 %v238_v21, %v234_v20  ;;  %v214_v21 = vld [vmem:[#allocation2 + $0x60] sm:$0x7f] }
  0xc7   :  { %2664 = vmatpush1.bf16.msra.mxu1 %v6318_v30  ;;  %2400 = vmatprep.subr.bf16.mxu0 %v6323_v31  ;;  %v6371_v30 = vld [vmem:[#allocation9 + $0x344] ss:$16 sps:$4 sm:$0xff]   ;;  %v6374_v31 = vld [vmem:[#allocation9 + $0x34c] ss:$16 sps:$4 sm:$0xff]   ;;  %v245_v23 = vrot.slane %v214_v21, 7 }
  0xc8   :  { %2665 = vmatprep.subr.bf16.mxu1 %v6326_v32  ;;  %v6369_v32 = vld [vmem:[#allocation9 + $0x340] ss:$16 sps:$4 sm:$0xff]   ;;  %v6506_v21 = vld [vmem:[#allocation9 + $0x60c] ss:$16 sps:$4 sm:$0xff]  }
  0xc9   :  { %2386 = vmatmul.mubr.bf16.gmra.mrb[4].mxu0 %v198_v24 }
  0xca   :  { %2401 = vmatpush1.bf16.msra.mxu0 %v6321_v33  ;;  %2651 = vmatmul.mubr.bf16.gmra.mrb[4].mxu1 %v198_v24  ;;  %v6372_v33 = vld [vmem:[#allocation9 + $0x348] ss:$16 sps:$4 sm:$0xff]   ;;  %v6417_v24 = vld [vmem:[#allocation9 + $0x440] ss:$16 sps:$4 sm:$0xff]  }
  0xcb   :  { %2666 = vmatpush1.bf16.msra.mxu1 %v6324_v34  ;;  %2402 = vmatprep.subr.bf16.mxu0 %v6329_v35  ;;  %v6377_v34 = vld [vmem:[#allocation9 + $0x364] ss:$16 sps:$4 sm:$0xff]   ;;  %v6380_v35 = vld [vmem:[#allocation9 + $0x36c] ss:$16 sps:$4 sm:$0xff]  }
  0xcc   :  { %2667 = vmatprep.subr.bf16.mxu1 %v6332_v36  ;;  %2428 = vmatprep.mubr.bf16.mxu0 %v258_v29  ;;  %v6375_v36 = vld [vmem:[#allocation9 + $0x360] ss:$16 sps:$4 sm:$0xff]  }
  0xcd   :  { %2693 = vmatprep.mubr.bf16.mxu1 %v258_v29  ;;  %v246_v29 = vsel %vm228_vm1, %v240_v15, %v245_v23  ;;  %v6504_v23 = vld [vmem:[#allocation9 + $0x608] ss:$16 sps:$4 sm:$0xff]  }
  0xce   :  { %2403 = vmatpush1.bf16.msra.mxu0 %v6327_v37  ;;  %v6378_v37 = vld [vmem:[#allocation9 + $0x368] ss:$16 sps:$4 sm:$0xff]  }
  0xcf   :  { %2668 = vmatpush1.bf16.msra.mxu1 %v6330_v38  ;;  %2404 = vmatprep.subr.bf16.mxu0 %v6335_v39  ;;  %v6383_v38 = vld [vmem:[#allocation9 + $0x384] ss:$16 sps:$4 sm:$0xff]   ;;  %v6386_v39 = vld [vmem:[#allocation9 + $0x38c] ss:$16 sps:$4 sm:$0xff]  }
  0xd0   :  { %2669 = vmatprep.subr.bf16.mxu1 %v6338_v40  ;;  %v6381_v40 = vld [vmem:[#allocation9 + $0x380] ss:$16 sps:$4 sm:$0xff]  }
  0xd2   :  { %2405 = vmatpush1.bf16.msra.mxu0 %v6333_v41  ;;  %v6384_v41 = vld [vmem:[#allocation9 + $0x388] ss:$16 sps:$4 sm:$0xff]  }
  0xd3   :  { %2670 = vmatpush1.bf16.msra.mxu1 %v6336_v42  ;;  %2406 = vmatprep.subr.bf16.mxu0 %v6341_v43  ;;  %v6389_v42 = vld [vmem:[#allocation9 + $0x3a4] ss:$16 sps:$4 sm:$0xff]   ;;  %v6392_v43 = vld [vmem:[#allocation9 + $0x3ac] ss:$16 sps:$4 sm:$0xff]  }
  0xd4   :  { %2671 = vmatprep.subr.bf16.mxu1 %v6344_v44  ;;  %v6387_v44 = vld [vmem:[#allocation9 + $0x3a0] ss:$16 sps:$4 sm:$0xff]  }
  0xd6   :  { %2407 = vmatpush1.bf16.msra.mxu0 %v6339_v45  ;;  %v6390_v45 = vld [vmem:[#allocation9 + $0x3a8] ss:$16 sps:$4 sm:$0xff]  }
  0xd7   :  { %2672 = vmatpush1.bf16.msra.mxu1 %v6342_v47  ;;  %2408 = vmatprep.subr.bf16.mxu0 %v6347_v50  ;;  %v6395_v47 = vld [vmem:[#allocation9 + $0x3c4] ss:$16 sps:$4 sm:$0xff]   ;;  %v6398_v50 = vld [vmem:[#allocation9 + $0x3cc] ss:$16 sps:$4 sm:$0xff]  }
  0xd8   :  { %2673 = vmatprep.subr.bf16.mxu1 %v6350_v51  ;;  %v204_v51 = vld [vmem:[#allocation2] sm:$0x80] }
  0xd9   :  { %v229_v60 = vrot.slane %v204_v51, 7  ;;  %v6450_v51 = vld [vmem:[#allocation9 + $0x4e8] ss:$16 sps:$4 sm:$0xff]  }
  0xda   :  { %2409 = vmatpush1.bf16.msra.mxu0 %v6345_v53  ;;  %v6393_v53 = vld [vmem:[#allocation9 + $0x3c0] ss:$16 sps:$4 sm:$0xff]  }
  0xdb   :  { %2674 = vmatpush1.bf16.msra.mxu1 %v6348_v57  ;;  %2410 = vmatprep.subr.bf16.mxu0 %v6353_v61  ;;  %v6396_v57 = vld [vmem:[#allocation9 + $0x3c8] ss:$16 sps:$4 sm:$0xff]   ;;  %v235_v61 = vrot.slane %v208_v52, 7  ;;  %v231_v3 = vsel %vm228_vm1, %v229_v60, %v230_v58  ;;  %v6455_v52 = vld [vmem:[#allocation9 + $0x504] ss:$16 sps:$4 sm:$0xff]  }
  0xdc   :  { %2675 = vmatprep.subr.bf16.mxu1 %v6356_v62  ;;  %v7244_v62 = vpack.c.bf16 %v7222_v49, %v7220_v46  ;;  %v6410_v49 = vld [vmem:[#allocation9 + $0x40c] ss:$16 sps:$4 sm:$0xff]  }
  0xdd   :  { %v236_v4 = vsel %vm228_vm1, %v230_v58, %v235_v61  ;;  %v6456_v58 = vld [vmem:[#allocation9 + $0x508] ss:$16 sps:$4 sm:$0xff]   ;;  %v6464_v60 = vld [vmem:[#allocation9 + $0x52c] ss:$16 sps:$4 sm:$0xff]   ;;  %v6459_v61 = vld [vmem:[#allocation9 + $0x520] ss:$16 sps:$4 sm:$0xff]  }
  0xde   :  { %2411 = vmatpush1.bf16.msra.mxu0 %v6351_v63  ;;  %v6404_v63 = vld [vmem:[#allocation9 + $0x3ec] ss:$16 sps:$4 sm:$0xff]   ;;  %v257_v7 = vpack.c.bf16 %v236_v4, %v231_v3  ;;  %v6468_v3 = vld [vmem:[#allocation9 + $0x548] ss:$16 sps:$4 sm:$0xff]   ;;  %v6473_v4 = vld [vmem:[#allocation9 + $0x564] ss:$16 sps:$4 sm:$0xff]  }
  0xdf   :  { %2676 = vmatpush1.bf16.msra.mxu1 %v6354_v6  ;;  %2412 = vmatprep.subr.bf16.mxu0 %v6359_v11  ;;  %v6408_v6 = vld [vmem:[#allocation9 + $0x408] ss:$16 sps:$4 sm:$0xff]  }
  0xe0   :  { %2677 = vmatprep.subr.bf16.mxu1 %v6362_v12  ;;  %v215_v11 = vld [vmem:[#allocation2 + $0x68] sm:$0x7f]  ;;  %v6411_v12 = vld [vmem:[#allocation9 + $0x420] ss:$16 sps:$4 sm:$0xff]  }
  0xe1   :  { %v247_v48 = vrot.slane %v215_v11, 7  ;;  %v6488_v11 = vld [vmem:[#allocation9 + $0x5ac] ss:$16 sps:$4 sm:$0xff]  }
  0xe2   :  { %2413 = vmatpush1.bf16.msra.mxu0 %v6357_v14  ;;  %v6414_v14 = vld [vmem:[#allocation9 + $0x428] ss:$16 sps:$4 sm:$0xff]  }
  0xe3   :  { %2678 = vmatpush1.bf16.msra.mxu1 %v6360_v18  ;;  %2414 = vmatprep.subr.bf16.mxu0 %v6365_v19  ;;  %v244_v18 = vsel %vm228_vm1, %v242_v13, %v243_v56  ;;  %v248_v46 = vsel %vm228_vm1, %v243_v56, %v247_v48  ;;  %v210_v19 = vld [vmem:[#allocation2 + $0x40] sm:$0x80]  ;;  %v6477_v56 = vld [vmem:[#allocation9 + $0x580] ss:$16 sps:$4 sm:$0xff]   ;;  %v6486_v13 = vld [vmem:[#allocation9 + $0x5a8] ss:$16 sps:$4 sm:$0xff]  }
  0xe4   :  { %2679 = vmatprep.subr.bf16.mxu1 %v6368_v22  ;;  %v260_v20 = vpack.c.bf16 %v248_v46, %v244_v18  ;;  %v239_v22 = vrot.slane %v210_v19, 7  ;;  %v6491_v48 = vld [vmem:[#allocation9 + $0x5c4] ss:$16 sps:$4 sm:$0xff]   ;;  %v6500_v18 = vld [vmem:[#allocation9 + $0x5ec] ss:$16 sps:$4 sm:$0xff]  }
  0xe5   :  { %v6495_v46 = vld [vmem:[#allocation9 + $0x5e0] ss:$16 sps:$4 sm:$0xff]   ;;  %v6498_v19 = vld [vmem:[#allocation9 + $0x5e8] ss:$16 sps:$4 sm:$0xff]  }
  0xe6   :  { %2415 = vmatpush1.bf16.msra.mxu0 %v6363_v25  ;;  %v6420_v25 = vld [vmem:[#allocation9 + $0x448] ss:$16 sps:$4 sm:$0xff]   ;;  %v241_v55 = vsel %vm228_vm1, %v239_v22, %v240_v15  ;;  %v6489_v15 = vld [vmem:[#allocation9 + $0x5c0] ss:$16 sps:$4 sm:$0xff]  }
  0xe7   :  { %2680 = vmatpush1.bf16.msra.mxu1 %v6366_v27  ;;  %2416 = vmatprep.subr.bf16.mxu0 %v6371_v30  ;;  %v6425_v27 = vld [vmem:[#allocation9 + $0x464] ss:$16 sps:$4 sm:$0xff]   ;;  %v6428_v30 = vld [vmem:[#allocation9 + $0x46c] ss:$16 sps:$4 sm:$0xff]   ;;  %v6501_v22 = vld [vmem:[#allocation9 + $0x600] ss:$16 sps:$4 sm:$0xff]  }
  0xe8   :  { %2681 = vmatprep.subr.bf16.mxu1 %v6374_v31  ;;  %v259_v31 = vpack.c.bf16 %v246_v29, %v241_v55  ;;  %v286_v55 = vld [vmem:[#allocation2 + $0x38] sm:$0x1]  ;;  %v6512_v29 = vld [vmem:[#allocation9 + $0x62c] ss:$16 sps:$4 sm:$0xff]  }
  0xea   :  { %2417 = vmatpush1.bf16.msra.mxu0 %v6369_v32  ;;  %v6423_v32 = vld [vmem:[#allocation9 + $0x460] ss:$16 sps:$4 sm:$0xff]  }
  0xeb   :  { %2682 = vmatpush1.bf16.msra.mxu1 %v6372_v33  ;;  %2418 = vmatprep.subr.bf16.mxu0 %v6377_v34  ;;  %v6426_v33 = vld [vmem:[#allocation9 + $0x468] ss:$16 sps:$4 sm:$0xff]   ;;  %v6431_v34 = vld [vmem:[#allocation9 + $0x484] ss:$16 sps:$4 sm:$0xff]  }
  0xec   :  { %2683 = vmatprep.subr.bf16.mxu1 %v6380_v35  ;;  %v6434_v35 = vld [vmem:[#allocation9 + $0x48c] ss:$16 sps:$4 sm:$0xff]  }
  0xee   :  { %2419 = vmatpush1.bf16.msra.mxu0 %v6375_v36  ;;  %v6429_v36 = vld [vmem:[#allocation9 + $0x480] ss:$16 sps:$4 sm:$0xff]  }
  0xef   :  { %2684 = vmatpush1.bf16.msra.mxu1 %v6378_v37  ;;  %2420 = vmatprep.subr.bf16.mxu0 %v6383_v38  ;;  %v6432_v37 = vld [vmem:[#allocation9 + $0x488] ss:$16 sps:$4 sm:$0xff]   ;;  %v6437_v38 = vld [vmem:[#allocation9 + $0x4a4] ss:$16 sps:$4 sm:$0xff]  }
  0xf0   :  { %2685 = vmatprep.subr.bf16.mxu1 %v6386_v39  ;;  %v6440_v39 = vld [vmem:[#allocation9 + $0x4ac] ss:$16 sps:$4 sm:$0xff]  }
  0xf2   :  { %2421 = vmatpush1.bf16.msra.mxu0 %v6381_v40  ;;  %v6435_v40 = vld [vmem:[#allocation9 + $0x4a0] ss:$16 sps:$4 sm:$0xff]  }
  0xf3   :  { %2686 = vmatpush1.bf16.msra.mxu1 %v6384_v41  ;;  %2422 = vmatprep.subr.bf16.mxu0 %v6389_v42  ;;  %v6438_v41 = vld [vmem:[#allocation9 + $0x4a8] ss:$16 sps:$4 sm:$0xff]   ;;  %v6443_v42 = vld [vmem:[#allocation9 + $0x4c4] ss:$16 sps:$4 sm:$0xff]  }
  0xf4   :  { %2687 = vmatprep.subr.bf16.mxu1 %v6392_v43  ;;  %v6446_v43 = vld [vmem:[#allocation9 + $0x4cc] ss:$16 sps:$4 sm:$0xff]  }
  0xf6   :  { %2423 = vmatpush1.bf16.msra.mxu0 %v6387_v44  ;;  %v6441_v44 = vld [vmem:[#allocation9 + $0x4c0] ss:$16 sps:$4 sm:$0xff]  }
  0xf7   :  { %2688 = vmatpush1.bf16.msra.mxu1 %v6390_v45  ;;  %2424 = vmatprep.subr.bf16.mxu0 %v6395_v47  ;;  %v6444_v45 = vld [vmem:[#allocation9 + $0x4c8] ss:$16 sps:$4 sm:$0xff]   ;;  %v6452_v47 = vld [vmem:[#allocation9 + $0x4ec] ss:$16 sps:$4 sm:$0xff]  }
  0xf8   :  { %2689 = vmatprep.subr.bf16.mxu1 %v6398_v50  ;;  %v6447_v50 = vld [vmem:[#allocation9 + $0x4e0] ss:$16 sps:$4 sm:$0xff]  }
  0xfa   :  { %2425 = vmatpush1.bf16.msra.mxu0 %v6393_v53  ;;  %v6458_v53 = vld [vmem:[#allocation9 + $0x50c] ss:$16 sps:$4 sm:$0xff]  }
  0xfb   :  { %2690 = vmatpush1.bf16.msra.mxu1 %v6396_v57  ;;  %2426 = vmatprep.subr.bf16.mxu0 %v6401_v59  ;;  %v6453_v57 = vld [vmem:[#allocation9 + $0x500] ss:$16 sps:$4 sm:$0xff]   ;;  %v6461_v59 = vld [vmem:[#allocation9 + $0x524] ss:$16 sps:$4 sm:$0xff]  }
  0xfc   :  { %2691 = vmatprep.subr.bf16.mxu1 %v6404_v63  ;;  %v6462_v63 = vld [vmem:[#allocation9 + $0x528] ss:$16 sps:$4 sm:$0xff]  }
  0xfe   :  { %2427 = vmatpush1.bf16.msra.mxu0 %v6399_v1  ;;  %v6467_v1 = vld [vmem:[#allocation9 + $0x544] ss:$16 sps:$4 sm:$0xff]  }
  0xff   :  { %2692 = vmatpush1.bf16.msra.mxu1 %v6402_v2  ;;  %2449 = vmatprep.subr.bf16.mxu0 %v6407_v54  ;;  %v6470_v2 = vld [vmem:[#allocation9 + $0x54c] ss:$16 sps:$4 sm:$0xff]   ;;  %v6465_v54 = vld [vmem:[#allocation9 + $0x540] ss:$16 sps:$4 sm:$0xff]  }
 0x100   :  { %2714 = vmatprep.subr.bf16.mxu1 %v6410_v49  ;;  %v6476_v49 = vld [vmem:[#allocation9 + $0x56c] ss:$16 sps:$4 sm:$0xff]  }
 0x101   :  { %2429 = vmatmul.mubr.bf16.vlgmr.msra.gmra.mrb[0].mxu0 %v257_v7 }
 0x102   :  { %2694 = vmatmul.mubr.bf16.vlgmr.msra.gmra.mrb[0].mxu1 %v257_v7  ;;  %2450 = vmatpush1.bf16.msra.mxu0 %v6405_v5  ;;  %v6471_v5 = vld [vmem:[#allocation9 + $0x560] ss:$16 sps:$4 sm:$0xff]   ;;  %v6479_v7 = vld [vmem:[#allocation9 + $0x584] ss:$16 sps:$4 sm:$0xff]  }
 0x103   :  { %2715 = vmatpush1.bf16.msra.mxu1 %v6408_v6  ;;  %2451 = vmatprep.subr.bf16.mxu0 %v6413_v8  ;;  %v6474_v6 = vld [vmem:[#allocation9 + $0x568] ss:$16 sps:$4 sm:$0xff]   ;;  %v6482_v8 = vld [vmem:[#allocation9 + $0x58c] ss:$16 sps:$4 sm:$0xff]  }
 0x104   :  { %2716 = vmatprep.subr.bf16.mxu1 %v6416_v9  ;;  %2438 = vmatprep.mubr.bf16.mxu0 %v260_v20  ;;  %v6480_v9 = vld [vmem:[#allocation9 + $0x588] ss:$16 sps:$4 sm:$0xff]  }
 0x105   :  { %2703 = vmatprep.mubr.bf16.mxu1 %v260_v20  ;;  %v6503_v20 = vld [vmem:[#allocation9 + $0x604] ss:$16 sps:$4 sm:$0xff]  }
 0x106   :  { %2452 = vmatpush1.bf16.msra.mxu0 %v6411_v12  ;;  %v6483_v12 = vld [vmem:[#allocation9 + $0x5a0] ss:$16 sps:$4 sm:$0xff]  }
 0x107   :  { %2717 = vmatpush1.bf16.msra.mxu1 %v6414_v14  ;;  %2453 = vmatprep.subr.bf16.mxu0 %v6419_v16  ;;  %v6494_v14 = vld [vmem:[#allocation9 + $0x5cc] ss:$16 sps:$4 sm:$0xff]   ;;  %v6492_v16 = vld [vmem:[#allocation9 + $0x5c8] ss:$16 sps:$4 sm:$0xff]  }
 0x108   :  { %2718 = vmatprep.subr.bf16.mxu1 %v6422_v17  ;;  %v6497_v17 = vld [vmem:[#allocation9 + $0x5e4] ss:$16 sps:$4 sm:$0xff]  }
 0x109   :  { %2439 = vmatmul.mubr.bf16.gmra.mrb[4].mxu0 %v259_v31 }
 0x10a   :  { %2704 = vmatmul.mubr.bf16.gmra.mrb[4].mxu1 %v259_v31  ;;  %2454 = vmatpush1.bf16.msra.mxu0 %v6417_v24  ;;  %v282_v24 = vld [vmem:[#allocation2 + $0x18] sm:$0xfe] }
 0x10b   :  { %2719 = vmatpush1.bf16.msra.mxu1 %v6420_v25  ;;  %2455 = vmatprep.subr.bf16.mxu0 %v6425_v27  ;;  %v7260_v25 = vld [vmem:[#allocation2 + $0x28] sm:$0xff]  ;;  %v6509_v27 = vld [vmem:[#allocation9 + $0x624] ss:$16 sps:$4 sm:$0xff]  }
 0x10c   :  { %2720 = vmatprep.subr.bf16.mxu1 %v6428_v30  ;;  %2481 = vmatprep.mubr.bf16.mxu0 %v7215_v26  ;;  %v309_v30 = vrot.slane %v282_v24, 1  ;;  %v310_v31 = vrot.slane %v7260_v25, 1 }
 0x10d   :  { %2746 = vmatprep.mubr.bf16.mxu1 %v7215_v26  ;;  %v6449_v26 = vld [vmem:[#allocation9 + $0x4e4] ss:$16 sps:$4 sm:$0xff]  }
 0x10e   :  { %2456 = vmatpush1.bf16.msra.mxu0 %v6423_v32  ;;  %v314_v32 = vrot.slane %v286_v55, 1 }
 0x10f   :  { %2721 = vmatpush1.bf16.msra.mxu1 %v6426_v33  ;;  %2457 = vmatprep.subr.bf16.mxu0 %v6431_v34  ;;  %v6507_v33 = vld [vmem:[#allocation9 + $0x620] ss:$16 sps:$4 sm:$0xff]   ;;  %v6510_v34 = vld [vmem:[#allocation9 + $0x628] ss:$16 sps:$4 sm:$0xff]  }
 0x110   :  { %2722 = vmatprep.subr.bf16.mxu1 %v6434_v35  ;;  %v6515_v35 = vld [vmem:[#allocation9 + $0x644] ss:$16 sps:$4 sm:$0xff]  }
 0x112   :  { %2458 = vmatpush1.bf16.msra.mxu0 %v6429_v36  ;;  %v6518_v36 = vld [vmem:[#allocation9 + $0x64c] ss:$16 sps:$4 sm:$0xff]  }
 0x113   :  { %2723 = vmatpush1.bf16.msra.mxu1 %v6432_v37  ;;  %2459 = vmatprep.subr.bf16.mxu0 %v6437_v38  ;;  %v311_v37 = vsel %vm305_vm2, %v309_v30, %v310_v31  ;;  %v6513_v38 = vld [vmem:[#allocation9 + $0x640] ss:$16 sps:$4 sm:$0xff]  }
 0x114   :  { %2724 = vmatprep.subr.bf16.mxu1 %v6440_v39  ;;  %v6516_v39 = vld [vmem:[#allocation9 + $0x648] ss:$16 sps:$4 sm:$0xff]  }
 0x116   :  { %2460 = vmatpush1.bf16.msra.mxu0 %v6435_v40  ;;  %v6521_v40 = vld [vmem:[#allocation9 + $0x664] ss:$16 sps:$4 sm:$0xff]  }
 0x117   :  { %2725 = vmatpush1.bf16.msra.mxu1 %v6438_v41  ;;  %2461 = vmatprep.subr.bf16.mxu0 %v6443_v42  ;;  %v6524_v41 = vld [vmem:[#allocation9 + $0x66c] ss:$16 sps:$4 sm:$0xff]  }
 0x118   :  { %2726 = vmatprep.subr.bf16.mxu1 %v6446_v43  ;;  %v6522_v43 = vld [vmem:[#allocation9 + $0x668] ss:$16 sps:$4 sm:$0xff]  }
 0x11a   :  { %2462 = vmatpush1.bf16.msra.mxu0 %v6441_v44  ;;  %v6527_v44 = vld [vmem:[#allocation9 + $0x684] ss:$16 sps:$4 sm:$0xff]  }
 0x11b   :  { %2727 = vmatpush1.bf16.msra.mxu1 %v6444_v45  ;;  %2463 = vmatprep.subr.bf16.mxu0 %v6449_v26  ;;  %v6530_v45 = vld [vmem:[#allocation9 + $0x68c] ss:$16 sps:$4 sm:$0xff]   ;;  %v6525_v26 = vld [vmem:[#allocation9 + $0x680] ss:$16 sps:$4 sm:$0xff]  }
 0x11c   :  { %2728 = vmatprep.subr.bf16.mxu1 %v6452_v47  ;;  %v6528_v47 = vld [vmem:[#allocation9 + $0x688] ss:$16 sps:$4 sm:$0xff]  }
 0x11e   :  { %2464 = vmatpush1.bf16.msra.mxu0 %v6447_v50  ;;  %v6533_v50 = vld [vmem:[#allocation9 + $0x6a4] ss:$16 sps:$4 sm:$0xff]  }
 0x11f   :  { %2729 = vmatpush1.bf16.msra.mxu1 %v6450_v51  ;;  %2465 = vmatprep.subr.bf16.mxu0 %v6455_v52  ;;  %v6536_v51 = vld [vmem:[#allocation9 + $0x6ac] ss:$16 sps:$4 sm:$0xff]   ;;  %v6534_v52 = vld [vmem:[#allocation9 + $0x6a8] ss:$16 sps:$4 sm:$0xff]  }
 0x120   :  { %2730 = vmatprep.subr.bf16.mxu1 %v6458_v53  ;;  %v6539_v53 = vld [vmem:[#allocation9 + $0x6c4] ss:$16 sps:$4 sm:$0xff]  }
 0x122   :  { %2466 = vmatpush1.bf16.msra.mxu0 %v6453_v57  ;;  %v6542_v57 = vld [vmem:[#allocation9 + $0x6cc] ss:$16 sps:$4 sm:$0xff]  }
 0x123   :  { %2731 = vmatpush1.bf16.msra.mxu1 %v6456_v58  ;;  %2467 = vmatprep.subr.bf16.mxu0 %v6461_v59  ;;  %v6537_v58 = vld [vmem:[#allocation9 + $0x6c0] ss:$16 sps:$4 sm:$0xff]   ;;  %v6540_v59 = vld [vmem:[#allocation9 + $0x6c8] ss:$16 sps:$4 sm:$0xff]  }
 0x124   :  { %2732 = vmatprep.subr.bf16.mxu1 %v6464_v60  ;;  %v6545_v60 = vld [vmem:[#allocation9 + $0x6e4] ss:$16 sps:$4 sm:$0xff]  }
 0x126   :  { %2468 = vmatpush1.bf16.msra.mxu0 %v6459_v61  ;;  %v6548_v61 = vld [vmem:[#allocation9 + $0x6ec] ss:$16 sps:$4 sm:$0xff]  }
 0x127   :  { %2733 = vmatpush1.bf16.msra.mxu1 %v6462_v63  ;;  %2469 = vmatprep.subr.bf16.mxu0 %v6467_v1  ;;  %v6543_v63 = vld [vmem:[#allocation9 + $0x6e0] ss:$16 sps:$4 sm:$0xff]   ;;  %v6546_v1 = vld [vmem:[#allocation9 + $0x6e8] ss:$16 sps:$4 sm:$0xff]  }
 0x128   :  { %2734 = vmatprep.subr.bf16.mxu1 %v6470_v2  ;;  %v6551_v2 = vld [vmem:[#allocation9 + $0x704] ss:$16 sps:$4 sm:$0xff]  }
 0x12a   :  { %2470 = vmatpush1.bf16.msra.mxu0 %v6465_v54  ;;  %v6554_v54 = vld [vmem:[#allocation9 + $0x70c] ss:$16 sps:$4 sm:$0xff]  }
 0x12b   :  { %2735 = vmatpush1.bf16.msra.mxu1 %v6468_v3  ;;  %2471 = vmatprep.subr.bf16.mxu0 %v6473_v4  ;;  %v6549_v3 = vld [vmem:[#allocation9 + $0x700] ss:$16 sps:$4 sm:$0xff]   ;;  %v6552_v4 = vld [vmem:[#allocation9 + $0x708] ss:$16 sps:$4 sm:$0xff]  }
 0x12c   :  { %2736 = vmatprep.subr.bf16.mxu1 %v6476_v49  ;;  %v7271_v49 = vld [vmem:[#allocation2 + $0x10] sm:$0xfe] }
 0x12e   :  { %2472 = vmatpush1.bf16.msra.mxu0 %v6471_v5  ;;  %v7273_v5 = vld [vmem:[#allocation2 + $0x20] sm:$0xff] }
 0x12f   :  { %2737 = vmatpush1.bf16.msra.mxu1 %v6474_v6  ;;  %2473 = vmatprep.subr.bf16.mxu0 %v6479_v7  ;;  %v6557_v6 = vld [vmem:[#allocation9 + $0x724] ss:$16 sps:$4 sm:$0xff]   ;;  %v6560_v7 = vld [vmem:[#allocation9 + $0x72c] ss:$16 sps:$4 sm:$0xff]  }
 0x130   :  { %2738 = vmatprep.subr.bf16.mxu1 %v6482_v8  ;;  %v7275_v8 = vld [vmem:[#allocation2 + $0x30] sm:$0x1] }
 0x132   :  { %2474 = vmatpush1.bf16.msra.mxu0 %v6477_v56  ;;  %v7277_v56 = vld [vmem:[#allocation2 + $0x58] sm:$0xfe] }
 0x133   :  { %2739 = vmatpush1.bf16.msra.mxu1 %v6480_v9  ;;  %2475 = vmatprep.subr.bf16.mxu0 %v6485_v10  ;;  %v7279_v9 = vld [vmem:[#allocation2 + $0x68] sm:$0xff]  ;;  %v7281_v10 = vld [vmem:[#allocation2 + $0x78] sm:$0x1] }
 0x134   :  { %2740 = vmatprep.subr.bf16.mxu1 %v6488_v11  ;;  %v7283_v11 = vld [vmem:[#allocation2 + $0x50] sm:$0xfe]  ;;  %v320_v24 = vrot.slane %v7279_v9, 1  ;;  %v324_v55 = vrot.slane %v7281_v10, 1 }
 0x136   :  { %2476 = vmatpush1.bf16.msra.mxu0 %v6483_v12  ;;  %v6555_v12 = vld [vmem:[#allocation9 + $0x720] ss:$16 sps:$4 sm:$0xff]  }
 0x137   :  { %2741 = vmatpush1.bf16.msra.mxu1 %v6486_v13  ;;  %2477 = vmatprep.subr.bf16.mxu0 %v6491_v48  ;;  %v6558_v13 = vld [vmem:[#allocation9 + $0x728] ss:$16 sps:$4 sm:$0xff]   ;;  %v306_v48 = vrot.slane %v7271_v49, 1 }
 0x138   :  { %2742 = vmatprep.subr.bf16.mxu1 %v6494_v14  ;;  %v307_v14 = vrot.slane %v7273_v5, 1 }
 0x13a   :  { %2478 = vmatpush1.bf16.msra.mxu0 %v6489_v15  ;;  %v312_v15 = vrot.slane %v7275_v8, 1  ;;  %v325_v8 = vsel %vm305_vm2, %v320_v24, %v324_v55  ;;  %v6617_v55 = vld [vmem:[#allocation9 + $0x864] ss:$16 sps:$4 sm:$0xff]  }
 0x13b   :  { %2743 = vmatpush1.bf16.msra.mxu1 %v6492_v16  ;;  %2479 = vmatprep.subr.bf16.mxu0 %v6497_v17  ;;  %v7288_v16 = vld [vmem:[#allocation2 + $0x60] sm:$0xff]  ;;  %v7290_v17 = vld [vmem:[#allocation2 + $0x70] sm:$0x1] }
 0x13c   :  { %2744 = vmatprep.subr.bf16.mxu1 %v6500_v18  ;;  %v6563_v18 = vld [vmem:[#allocation9 + $0x744] ss:$16 sps:$4 sm:$0xff]   ;;  %v322_v30 = vrot.slane %v7290_v17, 1 }
 0x13e   :  { %2480 = vmatpush1.bf16.msra.mxu0 %v6495_v46  ;;  %v7292_v46 = vld [vmem:[#allocation2 + $0x18] sm:$0xfc] }
 0x13f   :  { %2745 = vmatpush1.bf16.msra.mxu1 %v6498_v19  ;;  %2502 = vmatprep.subr.bf16.mxu0 %v6503_v20  ;;  %v7294_v19 = vld [vmem:[#allocation2 + $0x38] sm:$0x3]  ;;  %v371_v20 = vrot.slane %v7260_v25, 2  ;;  %v6629_v25 = vld [vmem:[#allocation9 + $0x8a4] ss:$16 sps:$4 sm:$0xff]  }
 0x140   :  { %2767 = vmatprep.subr.bf16.mxu1 %v6506_v21  ;;  %v368_v21 = vrot.slane %v7273_v5, 2 }
 0x141   :  { %2482 = vmatmul.mubr.bf16.vlgmr.msra.gmra.mrb[0].mxu0 %v7218_v28 }
 0x142   :  { %2747 = vmatmul.mubr.bf16.vlgmr.msra.gmra.mrb[0].mxu1 %v7218_v28  ;;  %2503 = vmatpush1.bf16.msra.mxu0 %v6501_v22  ;;  %v315_v28 = vsel %vm305_vm2, %v310_v31, %v314_v32  ;;  %v6566_v22 = vld [vmem:[#allocation9 + $0x74c] ss:$16 sps:$4 sm:$0xff]   ;;  %v381_v31 = vrot.slane %v7279_v9, 2  ;;  %v378_v32 = vrot.slane %v7288_v16, 2 }
 0x143   :  { %2768 = vmatpush1.bf16.msra.mxu1 %v6504_v23  ;;  %2504 = vmatprep.subr.bf16.mxu0 %v6509_v27  ;;  %v335_v42 = vpack.c.bf16 %v315_v28, %v311_v37  ;;  %v319_v23 = vrot.slane %v7277_v56, 1  ;;  %v316_v27 = vrot.slane %v7283_v11, 1  ;;  %v6569_v37 = vld [vmem:[#allocation9 + $0x764] ss:$16 sps:$4 sm:$0xff]   ;;  %v6572_v28 = vld [vmem:[#allocation9 + $0x76c] ss:$16 sps:$4 sm:$0xff]  }
 0x144   :  { %2769 = vmatprep.subr.bf16.mxu1 %v6512_v29  ;;  %2491 = vmatprep.mubr.bf16.mxu0 %v7244_v62  ;;  %v317_v29 = vrot.slane %v7288_v16, 1  ;;  %v6705_v16 = vld [vmem:[#allocation14 + $0x58] sm:$0xff]  }
 0x145   :  { %2756 = vmatprep.mubr.bf16.mxu1 %v7244_v62  ;;  %v6519_v62 = vld [vmem:[#allocation9 + $0x660] ss:$16 sps:$4 sm:$0xff]   ;;  %v321_v49 = vsel %vm305_vm2, %v319_v23, %v320_v24  ;;  %v6612_v24 = vld [vmem:[#allocation9 + $0x848] ss:$16 sps:$4 sm:$0xff]  }
 0x146   :  { %2505 = vmatpush1.bf16.msra.mxu0 %v6507_v33  ;;  %v6561_v33 = vld [vmem:[#allocation9 + $0x740] ss:$16 sps:$4 sm:$0xff]   ;;  %v318_v56 = vsel %vm305_vm2, %v316_v27, %v317_v29  ;;  %v323_v10 = vsel %vm305_vm2, %v317_v29, %v322_v30  ;;  %v6618_v29 = vld [vmem:[#allocation9 + $0x868] ss:$16 sps:$4 sm:$0xff]  }
 0x147   :  { %2770 = vmatpush1.bf16.msra.mxu1 %v6510_v34  ;;  %2506 = vmatprep.subr.bf16.mxu0 %v6515_v35  ;;  %v6564_v34 = vld [vmem:[#allocation9 + $0x748] ss:$16 sps:$4 sm:$0xff]   ;;  %v370_v35 = vrot.slane %v7292_v46, 2  ;;  %v6609_v23 = vld [vmem:[#allocation9 + $0x840] ss:$16 sps:$4 sm:$0xff]  }
 0x148   :  { %2771 = vmatprep.subr.bf16.mxu1 %v6518_v36  ;;  %v375_v36 = vrot.slane %v7294_v19, 2  ;;  %v6615_v27 = vld [vmem:[#allocation9 + $0x860] ss:$16 sps:$4 sm:$0xff]   ;;  %v6624_v19 = vld [vmem:[#allocation9 + $0x888] ss:$16 sps:$4 sm:$0xff]  }
 0x149   :  { %2492 = vmatmul.mubr.bf16.gmra.mrb[4].mxu0 %v7248_v0  ;;  %v372_v11 = vsel %vm366_vm3, %v370_v35, %v371_v20  ;;  %v6621_v46 = vld [vmem:[#allocation9 + $0x880] ss:$16 sps:$4 sm:$0xff]  }
 0x14a   :  { %2757 = vmatmul.mubr.bf16.gmra.mrb[4].mxu1 %v7248_v0  ;;  %2507 = vmatpush1.bf16.msra.mxu0 %v6513_v38  ;;  %v6531_v0 = vld [vmem:[#allocation9 + $0x6a0] ss:$16 sps:$4 sm:$0xff]   ;;  %v376_v17 = vsel %vm366_vm3, %v371_v20, %v375_v36  ;;  %v6632_v20 = vld [vmem:[#allocation9 + $0x8ac] ss:$16 sps:$4 sm:$0xff]   ;;  %v6630_v36 = vld [vmem:[#allocation9 + $0x8a8] ss:$16 sps:$4 sm:$0xff]  }
 0x14b   :  { %2772 = vmatpush1.bf16.msra.mxu1 %v6516_v39  ;;  %2508 = vmatprep.subr.bf16.mxu0 %v6521_v40  ;;  %v7308_v38 = vld [vmem:[#allocation2 + $0x10] sm:$0xfc]  ;;  %v7310_v39 = vld [vmem:[#allocation2 + $0x30] sm:$0x3]  ;;  %v7312_v40 = vld [vmem:[#allocation2 + $0x58] sm:$0xfc]  ;;  %v396_v30 = vpack.c.bf16 %v376_v17, %v372_v11 }
 0x14c   :  { %2773 = vmatprep.subr.bf16.mxu1 %v6524_v41  ;;  %2534 = vmatprep.mubr.bf16.mxu0 %v335_v42  ;;  %v6567_v41 = vld [vmem:[#allocation9 + $0x760] ss:$16 sps:$4 sm:$0xff]   ;;  %v6686_v11 = vld [vmem:[#allocation9 + $0x9cc] ss:$16 sps:$4 sm:$0xff]  }
 0x14d   :  { %2799 = vmatprep.mubr.bf16.mxu1 %v335_v42  ;;  %v6570_v42 = vld [vmem:[#allocation9 + $0x768] ss:$16 sps:$4 sm:$0xff]   ;;  %v6627_v35 = vld [vmem:[#allocation9 + $0x8a0] ss:$16 sps:$4 sm:$0xff]  }
 0x14e   :  { %2509 = vmatpush1.bf16.msra.mxu0 %v6519_v62  ;;  %v7314_v62 = vld [vmem:[#allocation2 + $0x78] sm:$0x3]  ;;  %v6681_v17 = vld [vmem:[#allocation9 + $0x9c0] ss:$16 sps:$4 sm:$0xff]  }
 0x14f   :  { %2774 = vmatpush1.bf16.msra.mxu1 %v6522_v43  ;;  %2510 = vmatprep.subr.bf16.mxu0 %v6527_v44  ;;  %v6575_v43 = vld [vmem:[#allocation9 + $0x784] ss:$16 sps:$4 sm:$0xff]   ;;  %v6578_v44 = vld [vmem:[#allocation9 + $0x78c] ss:$16 sps:$4 sm:$0xff]  }
 0x150   :  { %2775 = vmatprep.subr.bf16.mxu1 %v6530_v45  ;;  %v7316_v45 = vld [vmem:[#allocation2 + $0x50] sm:$0xfc] }
 0x152   :  { %2511 = vmatpush1.bf16.msra.mxu0 %v6525_v26  ;;  %v7318_v26 = vld [vmem:[#allocation2 + $0x70] sm:$0x3] }
 0x153   :  { %2776 = vmatpush1.bf16.msra.mxu1 %v6528_v47  ;;  %2512 = vmatprep.subr.bf16.mxu0 %v6533_v50  ;;  %v367_v47 = vrot.slane %v7308_v38, 2  ;;  %v373_v50 = vrot.slane %v7310_v39, 2  ;;  %v6695_v39 = vld [vmem:[#allocation14] sm:$0xff]  }
 0x154   :  { %2777 = vmatprep.subr.bf16.mxu1 %v6536_v51  ;;  %v6573_v51 = vld [vmem:[#allocation9 + $0x780] ss:$16 sps:$4 sm:$0xff]  }
 0x156   :  { %2513 = vmatpush1.bf16.msra.mxu0 %v6531_v0  ;;  %v6576_v0 = vld [vmem:[#allocation9 + $0x788] ss:$16 sps:$4 sm:$0xff]  }
 0x157   :  { %2778 = vmatpush1.bf16.msra.mxu1 %v6534_v52  ;;  %2514 = vmatprep.subr.bf16.mxu0 %v6539_v53  ;;  %v380_v52 = vrot.slane %v7312_v40, 2  ;;  %v385_v53 = vrot.slane %v7314_v62, 2  ;;  %v6699_v40 = vld [vmem:[#allocation14 + $0x8] sm:$0xff]   ;;  %v6701_v62 = vld [vmem:[#allocation14 + $0x50] sm:$0xff]  }
 0x158   :  { %2779 = vmatprep.subr.bf16.mxu1 %v6542_v57  ;;  %v6581_v57 = vld [vmem:[#allocation9 + $0x7a4] ss:$16 sps:$4 sm:$0xff]  }
 0x159   :  { %v386_v38 = vsel %vm366_vm3, %v381_v31, %v385_v53  ;;  %v6702_v53 = vld [vmem:[#allocation14 + $0xd0] sm:$0xff]  }
 0x15a   :  { %2515 = vmatpush1.bf16.msra.mxu0 %v6537_v58  ;;  %v6584_v58 = vld [vmem:[#allocation9 + $0x7ac] ss:$16 sps:$4 sm:$0xff]  }
 0x15b   :  { %2780 = vmatpush1.bf16.msra.mxu1 %v6540_v59  ;;  %2516 = vmatprep.subr.bf16.mxu0 %v6545_v60  ;;  %v377_v59 = vrot.slane %v7316_v45, 2  ;;  %v383_v60 = vrot.slane %v7318_v26, 2  ;;  %v6703_v45 = vld [vmem:[#allocation14 + $0x10] sm:$0xff]   ;;  %v6706_v26 = vld [vmem:[#allocation14 + $0xd8] sm:$0xff]  }
 0x15c   :  { %2781 = vmatprep.subr.bf16.mxu1 %v6548_v61  ;;  %v6579_v61 = vld [vmem:[#allocation9 + $0x7a0] ss:$16 sps:$4 sm:$0xff]  }
 0x15d   :  { %v379_v9 = vsel %vm366_vm3, %v377_v59, %v378_v32  ;;  %v6704_v59 = vld [vmem:[#allocation14 + $0x90] sm:$0xff]  }
 0x15e   :  { %2517 = vmatpush1.bf16.msra.mxu0 %v6543_v63  ;;  %v6582_v63 = vld [vmem:[#allocation9 + $0x7a8] ss:$16 sps:$4 sm:$0xff]  }
 0x15f   :  { %2782 = vmatpush1.bf16.msra.mxu1 %v6546_v1  ;;  %2518 = vmatprep.subr.bf16.mxu0 %v6551_v2  ;;  %v6587_v1 = vld [vmem:[#allocation9 + $0x7c4] ss:$16 sps:$4 sm:$0xff]   ;;  %v6590_v2 = vld [vmem:[#allocation9 + $0x7cc] ss:$16 sps:$4 sm:$0xff]  }
 0x160   :  { %2783 = vmatprep.subr.bf16.mxu1 %v6554_v54  ;;  %v6585_v54 = vld [vmem:[#allocation9 + $0x7c0] ss:$16 sps:$4 sm:$0xff]  }
 0x162   :  { %2519 = vmatpush1.bf16.msra.mxu0 %v6549_v3  ;;  %v6588_v3 = vld [vmem:[#allocation9 + $0x7c8] ss:$16 sps:$4 sm:$0xff]  }
 0x163   :  { %2784 = vmatpush1.bf16.msra.mxu1 %v6552_v4  ;;  %2520 = vmatprep.subr.bf16.mxu0 %v6557_v6  ;;  %v6593_v4 = vld [vmem:[#allocation9 + $0x7e4] ss:$16 sps:$4 sm:$0xff]   ;;  %v6596_v6 = vld [vmem:[#allocation9 + $0x7ec] ss:$16 sps:$4 sm:$0xff]  }
 0x164   :  { %2785 = vmatprep.subr.bf16.mxu1 %v6560_v7  ;;  %v6591_v7 = vld [vmem:[#allocation9 + $0x7e0] ss:$16 sps:$4 sm:$0xff]  }
 0x166   :  { %2521 = vmatpush1.bf16.msra.mxu0 %v6555_v12  ;;  %v6594_v12 = vld [vmem:[#allocation9 + $0x7e8] ss:$16 sps:$4 sm:$0xff]  }
 0x167   :  { %2786 = vmatpush1.bf16.msra.mxu1 %v6558_v13  ;;  %2522 = vmatprep.subr.bf16.mxu0 %v6563_v18  ;;  %v6599_v13 = vld [vmem:[#allocation9 + $0x804] ss:$16 sps:$4 sm:$0xff]   ;;  %v6602_v18 = vld [vmem:[#allocation9 + $0x80c] ss:$16 sps:$4 sm:$0xff]  }
 0x168   :  { %2787 = vmatprep.subr.bf16.mxu1 %v6566_v22  ;;  %v308_v22 = vsel %vm305_vm2, %v306_v48, %v307_v14  ;;  %v6603_v48 = vld [vmem:[#allocation9 + $0x820] ss:$16 sps:$4 sm:$0xff]  }
 0x16a   :  { %2523 = vmatpush1.bf16.msra.mxu0 %v6561_v33  ;;  %v313_v33 = vsel %vm305_vm2, %v307_v14, %v312_v15  ;;  %v6606_v14 = vld [vmem:[#allocation9 + $0x828] ss:$16 sps:$4 sm:$0xff]   ;;  %v337_v15 = vpack.c.bf16 %v325_v8, %v321_v49  ;;  %v6665_v8 = vld [vmem:[#allocation9 + $0x964] ss:$16 sps:$4 sm:$0xff]  }
 0x16b   :  { %2788 = vmatpush1.bf16.msra.mxu1 %v6564_v34  ;;  %2524 = vmatprep.subr.bf16.mxu0 %v6569_v37  ;;  %v6597_v34 = vld [vmem:[#allocation9 + $0x800] ss:$16 sps:$4 sm:$0xff]   ;;  %v6600_v37 = vld [vmem:[#allocation9 + $0x808] ss:$16 sps:$4 sm:$0xff]  }
 0x16c   :  { %2789 = vmatprep.subr.bf16.mxu1 %v6572_v28  ;;  %v334_v28 = vpack.c.bf16 %v313_v33, %v308_v22  ;;  %v6653_v22 = vld [vmem:[#allocation9 + $0x924] ss:$16 sps:$4 sm:$0xff]   ;;  %v6656_v33 = vld [vmem:[#allocation9 + $0x92c] ss:$16 sps:$4 sm:$0xff]   ;;  %v6660_v49 = vld [vmem:[#allocation9 + $0x948] ss:$16 sps:$4 sm:$0xff]  }
 0x16e   :  { %2525 = vmatpush1.bf16.msra.mxu0 %v6567_v41  ;;  %v6605_v41 = vld [vmem:[#allocation9 + $0x824] ss:$16 sps:$4 sm:$0xff]  }
 0x16f   :  { %2790 = vmatpush1.bf16.msra.mxu1 %v6570_v42  ;;  %2526 = vmatprep.subr.bf16.mxu0 %v6575_v43  ;;  %v6608_v42 = vld [vmem:[#allocation9 + $0x82c] ss:$16 sps:$4 sm:$0xff]   ;;  %v6611_v43 = vld [vmem:[#allocation9 + $0x844] ss:$16 sps:$4 sm:$0xff]  }
 0x170   :  { %2791 = vmatprep.subr.bf16.mxu1 %v6578_v44  ;;  %v6614_v44 = vld [vmem:[#allocation9 + $0x84c] ss:$16 sps:$4 sm:$0xff]  }
 0x172   :  { %2527 = vmatpush1.bf16.msra.mxu0 %v6573_v51  ;;  %v6620_v51 = vld [vmem:[#allocation9 + $0x86c] ss:$16 sps:$4 sm:$0xff]  }
 0x173   :  { %2792 = vmatpush1.bf16.msra.mxu1 %v6576_v0  ;;  %2528 = vmatprep.subr.bf16.mxu0 %v6581_v57  ;;  %v336_v0 = vpack.c.bf16 %v323_v10, %v318_v56  ;;  %v6623_v57 = vld [vmem:[#allocation9 + $0x884] ss:$16 sps:$4 sm:$0xff]   ;;  %v6669_v56 = vld [vmem:[#allocation9 + $0x980] ss:$16 sps:$4 sm:$0xff]   ;;  %v6672_v10 = vld [vmem:[#allocation9 + $0x988] ss:$16 sps:$4 sm:$0xff]  }
 0x174   :  { %2793 = vmatprep.subr.bf16.mxu1 %v6584_v58  ;;  %v6626_v58 = vld [vmem:[#allocation9 + $0x88c] ss:$16 sps:$4 sm:$0xff]  }
 0x176   :  { %2529 = vmatpush1.bf16.msra.mxu0 %v6579_v61  ;;  %v6635_v61 = vld [vmem:[#allocation9 + $0x8c4] ss:$16 sps:$4 sm:$0xff]  }
 0x177   :  { %2794 = vmatpush1.bf16.msra.mxu1 %v6582_v63  ;;  %2530 = vmatprep.subr.bf16.mxu0 %v6587_v1  ;;  %v6638_v63 = vld [vmem:[#allocation9 + $0x8cc] ss:$16 sps:$4 sm:$0xff]   ;;  %v6633_v1 = vld [vmem:[#allocation9 + $0x8c0] ss:$16 sps:$4 sm:$0xff]  }
 0x178   :  { %2795 = vmatprep.subr.bf16.mxu1 %v6590_v2  ;;  %v6636_v2 = vld [vmem:[#allocation9 + $0x8c8] ss:$16 sps:$4 sm:$0xff]  }
 0x17a   :  { %2531 = vmatpush1.bf16.msra.mxu0 %v6585_v54  ;;  %v6641_v54 = vld [vmem:[#allocation9 + $0x8e4] ss:$16 sps:$4 sm:$0xff]  }
 0x17b   :  { %2796 = vmatpush1.bf16.msra.mxu1 %v6588_v3  ;;  %2532 = vmatprep.subr.bf16.mxu0 %v6593_v4  ;;  %v6644_v3 = vld [vmem:[#allocation9 + $0x8ec] ss:$16 sps:$4 sm:$0xff]   ;;  %v6639_v4 = vld [vmem:[#allocation9 + $0x8e0] ss:$16 sps:$4 sm:$0xff]  }
 0x17c   :  { %2797 = vmatprep.subr.bf16.mxu1 %v6596_v6  ;;  %v6642_v6 = vld [vmem:[#allocation9 + $0x8e8] ss:$16 sps:$4 sm:$0xff]  }
 0x17e   :  { %2533 = vmatpush1.bf16.msra.mxu0 %v6591_v7  ;;  %v6647_v7 = vld [vmem:[#allocation9 + $0x904] ss:$16 sps:$4 sm:$0xff]  }
 0x17f   :  { %2798 = vmatpush1.bf16.msra.mxu1 %v6594_v12  ;;  %2555 = vmatprep.subr.bf16.mxu0 %v6599_v13  ;;  %v6650_v12 = vld [vmem:[#allocation9 + $0x90c] ss:$16 sps:$4 sm:$0xff]   ;;  %v6645_v13 = vld [vmem:[#allocation9 + $0x900] ss:$16 sps:$4 sm:$0xff]  }
 0x180   :  { %2820 = vmatprep.subr.bf16.mxu1 %v6602_v18  ;;  %v6648_v18 = vld [vmem:[#allocation9 + $0x908] ss:$16 sps:$4 sm:$0xff]  }
 0x181   :  { %2535 = vmatmul.mubr.bf16.vlgmr.msra.gmra.mrb[0].mxu0 %v334_v28 }
 0x182   :  { %2800 = vmatmul.mubr.bf16.vlgmr.msra.gmra.mrb[0].mxu1 %v334_v28  ;;  %2556 = vmatpush1.bf16.msra.mxu0 %v6597_v34  ;;  %v6651_v34 = vld [vmem:[#allocation9 + $0x920] ss:$16 sps:$4 sm:$0xff]   ;;  %v6659_v28 = vld [vmem:[#allocation9 + $0x944] ss:$16 sps:$4 sm:$0xff]  }
 0x183   :  { %2821 = vmatpush1.bf16.msra.mxu1 %v6600_v37  ;;  %2557 = vmatprep.subr.bf16.mxu0 %v6605_v41  ;;  %v6654_v37 = vld [vmem:[#allocation9 + $0x928] ss:$16 sps:$4 sm:$0xff]   ;;  %v6662_v41 = vld [vmem:[#allocation9 + $0x94c] ss:$16 sps:$4 sm:$0xff]  }
 0x184   :  { %2822 = vmatprep.subr.bf16.mxu1 %v6608_v42  ;;  %2544 = vmatprep.mubr.bf16.mxu0 %v337_v15  ;;  %v6657_v42 = vld [vmem:[#allocation9 + $0x940] ss:$16 sps:$4 sm:$0xff]  }
 0x185   :  { %2809 = vmatprep.mubr.bf16.mxu1 %v337_v15  ;;  %v6666_v15 = vld [vmem:[#allocation9 + $0x968] ss:$16 sps:$4 sm:$0xff]  }
 0x186   :  { %2558 = vmatpush1.bf16.msra.mxu0 %v6603_v48  ;;  %v6668_v48 = vld [vmem:[#allocation9 + $0x96c] ss:$16 sps:$4 sm:$0xff]  }
 0x187   :  { %2823 = vmatpush1.bf16.msra.mxu1 %v6606_v14  ;;  %2559 = vmatprep.subr.bf16.mxu0 %v6611_v43  ;;  %v6663_v14 = vld [vmem:[#allocation9 + $0x960] ss:$16 sps:$4 sm:$0xff]   ;;  %v6671_v43 = vld [vmem:[#allocation9 + $0x984] ss:$16 sps:$4 sm:$0xff]  }
 0x188   :  { %2824 = vmatprep.subr.bf16.mxu1 %v6614_v44  ;;  %v6674_v44 = vld [vmem:[#allocation9 + $0x98c] ss:$16 sps:$4 sm:$0xff]  }
 0x189   :  { %2545 = vmatmul.mubr.bf16.gmra.mrb[4].mxu0 %v336_v0 }
 0x18a   :  { %2810 = vmatmul.mubr.bf16.gmra.mrb[4].mxu1 %v336_v0  ;;  %2560 = vmatpush1.bf16.msra.mxu0 %v6609_v23  ;;  %v6677_v23 = vld [vmem:[#allocation9 + $0x9a4] ss:$16 sps:$4 sm:$0xff]  }
 0x18b   :  { %2825 = vmatpush1.bf16.msra.mxu1 %v6612_v24  ;;  %2561 = vmatprep.subr.bf16.mxu0 %v6617_v55  ;;  %v6680_v24 = vld [vmem:[#allocation9 + $0x9ac] ss:$16 sps:$4 sm:$0xff]   ;;  %v6675_v55 = vld [vmem:[#allocation9 + $0x9a0] ss:$16 sps:$4 sm:$0xff]   ;;  %v6683_v0 = vld [vmem:[#allocation9 + $0x9c4] ss:$16 sps:$4 sm:$0xff]  }
 0x18c   :  { %2826 = vmatprep.subr.bf16.mxu1 %v6620_v51  ;;  %2587 = vmatprep.mubr.bf16.mxu0 %v396_v30  ;;  %v6678_v51 = vld [vmem:[#allocation9 + $0x9a8] ss:$16 sps:$4 sm:$0xff]  }
 0x18d   :  { %2852 = vmatprep.mubr.bf16.mxu1 %v396_v30  ;;  %v6692_v30 = vld [vmem:[#allocation9 + $0x9ec] ss:$16 sps:$4 sm:$0xff]  }
 0x18e   :  { %2562 = vmatpush1.bf16.msra.mxu0 %v6615_v27  ;;  %v6684_v27 = vld [vmem:[#allocation9 + $0x9c8] ss:$16 sps:$4 sm:$0xff]  }
 0x18f   :  { %2827 = vmatpush1.bf16.msra.mxu1 %v6618_v29  ;;  %2563 = vmatprep.subr.bf16.mxu0 %v6623_v57  ;;  %v6689_v29 = vld [vmem:[#allocation9 + $0x9e4] ss:$16 sps:$4 sm:$0xff]   ;;  %v6687_v57 = vld [vmem:[#allocation9 + $0x9e0] ss:$16 sps:$4 sm:$0xff]  }
 0x190   :  { %2828 = vmatprep.subr.bf16.mxu1 %v6626_v58  ;;  %v6690_v58 = vld [vmem:[#allocation9 + $0x9e8] ss:$16 sps:$4 sm:$0xff]  }
 0x192   :  { %2564 = vmatpush1.bf16.msra.mxu0 %v6621_v46  ;;  %v6693_v46 = vld [vmem:[#allocation14 + $0x40] sm:$0xff]  }
 0x193   :  { %2829 = vmatpush1.bf16.msra.mxu1 %v6624_v19  ;;  %2565 = vmatprep.subr.bf16.mxu0 %v6629_v25  ;;  %v6694_v19 = vld [vmem:[#allocation14 + $0xc0] sm:$0xff]   ;;  %v369_v25 = vsel %vm366_vm3, %v367_v47, %v368_v21 }
 0x194   :  { %2830 = vmatprep.subr.bf16.mxu1 %v6632_v20  ;;  %v374_v20 = vsel %vm366_vm3, %v368_v21, %v373_v50  ;;  %v6697_v21 = vld [vmem:[#allocation14 + $0x48] sm:$0xff]  }
 0x195   :  { %v395_v47 = vpack.c.bf16 %v374_v20, %v369_v25  ;;  %v6698_v50 = vld [vmem:[#allocation14 + $0xc8] sm:$0xff]  }
 0x196   :  { %2566 = vmatpush1.bf16.msra.mxu0 %v6627_v35  ;;  %v382_v35 = vsel %vm366_vm3, %v380_v52, %v381_v31  ;;  %v6700_v52 = vld [vmem:[#allocation14 + $0x88] sm:$0xff]   ;;  %v384_v31 = vsel %vm366_vm3, %v378_v32, %v383_v60  ;;  %v6707_v32 = vld [vmem:[#allocation14 + $0x18] sm:$0xff]  }
 0x197   :  { %2831 = vmatpush1.bf16.msra.mxu1 %v6630_v36  ;;  %2567 = vmatprep.subr.bf16.mxu0 %v6635_v61  ;;  %v6696_v36 = vld [vmem:[#allocation14 + $0x80] sm:$0xff]   ;;  %v398_v5 = vpack.c.bf16 %v386_v38, %v382_v35  ;;  %v397_v61 = vpack.c.bf16 %v384_v31, %v379_v9  ;;  %v6708_v60 = vld [vmem:[#allocation14 + $0x98] sm:$0xff]  }
 0x198   :  { %2832 = vmatprep.subr.bf16.mxu1 %v6638_v63  ;;  %v6709_v63 = vld [vmem:[#allocation14 + $0x60] sm:$0xff]  }
 0x19a   :  { %2568 = vmatpush1.bf16.msra.mxu0 %v6633_v1  ;;  %v6710_v1 = vld [vmem:[#allocation14 + $0xe0] sm:$0xff]  }
 0x19b   :  { %2833 = vmatpush1.bf16.msra.mxu1 %v6636_v2  ;;  %2569 = vmatprep.subr.bf16.mxu0 %v6641_v54  ;;  %v6711_v2 = vld [vmem:[#allocation14 + $0x20] sm:$0xff]  }
 0x19c   :  { %2834 = vmatprep.subr.bf16.mxu1 %v6644_v3  ;;  %v6712_v54 = vld [vmem:[#allocation14 + $0xa0] sm:$0xff]   ;;  %v6713_v3 = vld [vmem:[#allocation14 + $0x68] sm:$0xff]  }
 0x19e   :  { %2570 = vmatpush1.bf16.msra.mxu0 %v6639_v4  ;;  %v6714_v4 = vld [vmem:[#allocation14 + $0xe8] sm:$0xff]  }
 0x19f   :  { %2835 = vmatpush1.bf16.msra.mxu1 %v6642_v6  ;;  %2571 = vmatprep.subr.bf16.mxu0 %v6647_v7  ;;  %v6715_v6 = vld [vmem:[#allocation14 + $0x28] sm:$0xff]  }
 0x1a0   :  { %2836 = vmatprep.subr.bf16.mxu1 %v6650_v12  ;;  %v6716_v7 = vld [vmem:[#allocation14 + $0xa8] sm:$0xff]   ;;  %v6717_v12 = vld [vmem:[#allocation14 + $0x70] sm:$0xff]  }
 0x1a2   :  { %2572 = vmatpush1.bf16.msra.mxu0 %v6645_v13  ;;  %v6718_v13 = vld [vmem:[#allocation14 + $0xf0] sm:$0xff]  }
 0x1a3   :  { %2837 = vmatpush1.bf16.msra.mxu1 %v6648_v18  ;;  %2573 = vmatprep.subr.bf16.mxu0 %v6653_v22  ;;  %v6719_v18 = vld [vmem:[#allocation14 + $0x30] sm:$0xff]  }
 0x1a4   :  { %2838 = vmatprep.subr.bf16.mxu1 %v6656_v33  ;;  %v6720_v22 = vld [vmem:[#allocation14 + $0xb0] sm:$0xff]   ;;  %v6721_v33 = vld [vmem:[#allocation14 + $0x78] sm:$0xff]  }
 0x1a6   :  { %2574 = vmatpush1.bf16.msra.mxu0 %v6651_v34  ;;  %v6722_v34 = vld [vmem:[#allocation14 + $0xf8] sm:$0xff]  }
 0x1a7   :  { %2839 = vmatpush1.bf16.msra.mxu1 %v6654_v37  ;;  %2575 = vmatprep.subr.bf16.mxu0 %v6659_v28  ;;  %v6723_v37 = vld [vmem:[#allocation14 + $0x38] sm:$0xff]  }
 0x1a8   :  { %2840 = vmatprep.subr.bf16.mxu1 %v6662_v41  ;;  %v6724_v28 = vld [vmem:[#allocation14 + $0xb8] sm:$0xff]   ;;  %v6725_v41 = vld [vmem:[#allocation14 + $0x140] sm:$0xff]  }
 0x1aa   :  { %2576 = vmatpush1.bf16.msra.mxu0 %v6657_v42  ;;  %v6726_v42 = vld [vmem:[#allocation14 + $0x1c0] sm:$0xff]  }
 0x1ab   :  { %2841 = vmatpush1.bf16.msra.mxu1 %v6660_v49  ;;  %2577 = vmatprep.subr.bf16.mxu0 %v6665_v8  ;;  %v2875_v49 = vlaneseq }
 0x1ac   :  { %2842 = vmatprep.subr.bf16.mxu1 %v6668_v48 }
 0x1ad   :  { %v2876_v8 = vshrl.u32 %v2875_v49, 7 }
 0x1ae   :  { %2578 = vmatpush1.bf16.msra.mxu0 %v6663_v14 }
 0x1af   :  { %2843 = vmatpush1.bf16.msra.mxu1 %v6666_v15  ;;  %2579 = vmatprep.subr.bf16.mxu0 %v6671_v43  ;;  %v2877_v48 = vsub.s32 0, %v2876_v8  ;;  %v2885_v14 = vsub.s32 2, %v2876_v8  ;;  %v2873_v15 = vld [vmem:[#allocation11] sm:$0xf]  ;;  %v2881_v43 = vsub.s32 1, %v2876_v8 }
 0x1b0   :  { %2844 = vmatprep.subr.bf16.mxu1 %v6674_v44  ;;  %v2889_v44 = vsub.s32 3, %v2876_v8 }
 0x1b2   :  { %2580 = vmatpush1.bf16.msra.mxu0 %v6669_v56  ;;  %v2911_v56 = vld [vmem:[#allocation12] sm:$0xf] }
 0x1b3   :  { %2845 = vmatpush1.bf16.msra.mxu1 %v6672_v10  ;;  %2581 = vmatprep.subr.bf16.mxu0 %v6677_v23  ;;  %v7396_v10 = vrot.slane %v2873_v15, %v2877_v48  ;;  %v7398_v23 = vrot.slane %v2873_v15, %v2885_v14 }
 0x1b4   :  { %2846 = vmatprep.subr.bf16.mxu1 %v6680_v24  ;;  %v7400_v24 = vrot.slane %v2873_v15, %v2881_v43 }
 0x1b6   :  { %2582 = vmatpush1.bf16.msra.mxu0 %v6675_v55  ;;  %v7402_v55 = vrot.slane %v2873_v15, %v2889_v44 }
 0x1b7   :  { %2847 = vmatpush1.bf16.msra.mxu1 %v6678_v51  ;;  %2583 = vmatprep.subr.bf16.mxu0 %v6683_v0  ;;  %v7404_v51 = vrot.slane %v2911_v56, %v2877_v48  ;;  %v7406_v0 = vrot.slane %v2911_v56, %v2885_v14 }
 0x1b8   :  { %2848 = vmatprep.subr.bf16.mxu1 %v6686_v11 }
 0x1ba   :  { %2584 = vmatpush1.bf16.msra.mxu0 %v6681_v17 }
 0x1bb   :  { %2849 = vmatpush1.bf16.msra.mxu1 %v6684_v27  ;;  %2585 = vmatprep.subr.bf16.mxu0 %v6689_v29  ;;  %v7408_v27 = vrot.slane %v2911_v56, %v2881_v43  ;;  %v7410_v29 = vrot.slane %v2911_v56, %v2889_v44 }
 0x1bc   :  { %2850 = vmatprep.subr.bf16.mxu1 %v6692_v30 }
 0x1be   :  { %2586 = vmatpush1.bf16.msra.mxu0 %v6687_v57 }
 0x1bf   :  { %2851 = vmatpush1.bf16.msra.mxu1 %v6690_v58  ;;  %5854 = vmatprep.subr.bf16.mxu0 %v6693_v46 }
 0x1c0   :  { %5882 = vmatprep.subr.bf16.mxu1 %v6694_v19 }
 0x1c1   :  { %2588 = vmatmul.mubr.bf16.vlgmr.msra.gmra.mrb[0].mxu0 %v395_v47 }
 0x1c2   :  { %2853 = vmatmul.mubr.bf16.vlgmr.msra.gmra.mrb[0].mxu1 %v395_v47  ;;  %2597 = vmatprep.mubr.bf16.mxu0 %v398_v5 }
 0x1c3   :  { %2862 = vmatprep.mubr.bf16.mxu1 %v398_v5  ;;  %5855 = vmatpush3.bf16.msra.mxu0 %v6695_v39 }
 0x1c4   :  { %5883 = vmatpush3.bf16.msra.mxu1 %v6696_v36  ;;  %5856 = vmatprep.subr.bf16.mxu0 %v6697_v21 }
 0x1c5   :  { %5884 = vmatprep.subr.bf16.mxu1 %v6698_v50 }
 0x1c7   :  { %5857 = vmatpush3.bf16.msra.mxu0 %v6699_v40 }
 0x1c8   :  { %5885 = vmatpush3.bf16.msra.mxu1 %v6700_v52  ;;  %5858 = vmatprep.subr.bf16.mxu0 %v6701_v62 }
 0x1c9   :  { %5886 = vmatprep.subr.bf16.mxu1 %v6702_v53  ;;  %2598 = vmatmul.mubr.bf16.gmra.mrb[4].mxu0 %v397_v61 }
 0x1ca   :  { %2863 = vmatmul.mubr.bf16.gmra.mrb[4].mxu1 %v397_v61 }
 0x1cb   :  { %5859 = vmatpush3.bf16.msra.mxu0 %v6703_v45  ;;  %v7430_v45 = vld [vmem:[#allocation4 + $0x8] sm:$0xc0] }
 0x1cc   :  { %5887 = vmatpush3.bf16.msra.mxu1 %v6704_v59  ;;  %5860 = vmatprep.subr.bf16.mxu0 %v6705_v16  ;;  %v7432_v59 = vld [vmem:[#allocation4] sm:$0xc0] }
 0x1cd   :  { %5888 = vmatprep.subr.bf16.mxu1 %v6706_v26 }
 0x1cf   :  { %5861 = vmatpush3.bf16.msra.mxu0 %v6707_v32 }
 0x1d0   :  { %5889 = vmatpush3.bf16.msra.mxu1 %v6708_v60  ;;  %5862 = vmatprep.subr.bf16.mxu0 %v6709_v63  ;;  %v7444_v63 = vld [vmem:[#allocation4 + $0x18] sm:$0xc0] }
 0x1d1   :  { %5890 = vmatprep.subr.bf16.mxu1 %v6710_v1  ;;  %v7446_v1 = vld [vmem:[#allocation4 + $0x10] sm:$0xc0] }
 0x1d3   :  { %5863 = vmatpush3.bf16.msra.mxu0 %v6711_v2 }
 0x1d4   :  { %5891 = vmatpush3.bf16.msra.mxu1 %v6712_v54  ;;  %5864 = vmatprep.subr.bf16.mxu0 %v6713_v3 }
 0x1d5   :  { %5892 = vmatprep.subr.bf16.mxu1 %v6714_v4 }
 0x1d7   :  { %5865 = vmatpush3.bf16.msra.mxu0 %v6715_v6 }
 0x1d8   :  { %5893 = vmatpush3.bf16.msra.mxu1 %v6716_v7  ;;  %5866 = vmatprep.subr.bf16.mxu0 %v6717_v12  ;;  %v3051_v12 = vrot.slane %v7430_v45, 6 }
 0x1d9   :  { %5894 = vmatprep.subr.bf16.mxu1 %v6718_v13  ;;  %v3048_v13 = vrot.slane %v7432_v59, 6 }
 0x1db   :  { %5867 = vmatpush3.bf16.msra.mxu0 %v6719_v18 }
 0x1dc   :  { %5895 = vmatpush3.bf16.msra.mxu1 %v6720_v22  ;;  %5868 = vmatprep.subr.bf16.mxu0 %v6721_v33 }
 0x1dd   :  { %5896 = vmatprep.subr.bf16.mxu1 %v6722_v34 }
 0x1df   :  { %5869 = vmatpush3.bf16.msra.mxu0 %v6723_v37  ;;  %v3057_v37 = vrot.slane %v7444_v63, 6 }
 0x1e0   :  { %5897 = vmatpush3.bf16.msra.mxu1 %v6724_v28  ;;  %5910 = vmatprep.subr.bf16.mxu0 %v6725_v41  ;;  %v3054_v28 = vrot.slane %v7446_v1, 6 }
 0x1e1   :  { %5938 = vmatprep.subr.bf16.mxu1 %v6726_v42 }
 0x294   :  { %v2589_v11 = vpop.f32.mrb[0].mxu0 }
 0x295   :  { %v2854_v17 = vpop.f32.mrb[0].mxu1  ;;  %v2895_v30 = vmul.f32 %v7396_v10, %v2589_v11  ;;  %v2591_v58 = vpop.f32.mrb[1].mxu0 }
 0x296   :  { %v2897_v57 = vmul.f32 %v7398_v23, %v2854_v17  ;;  %v2856_v46 = vpop.f32.mrb[1].mxu1  ;;  %v2896_v19 = vmul.f32 %v7400_v24, %v2591_v58  ;;  %v2593_v20 = vpop.f32.mrb[2].mxu0 }
 0x297   :  { %v2898_v25 = vmul.f32 %v7402_v55, %v2856_v46  ;;  %v2858_v35 = vpop.f32.mrb[2].mxu1  ;;  %v2933_v38 = vadd.f32 %v7404_v51, %v2895_v30  ;;  %v2899_v39 = vmul.f32 %v7396_v10, %v2593_v20  ;;  %v2595_v5 = vpop.f32.mrb[3].mxu0 }
 0x298   :  { %v2935_v47 = vadd.f32 %v7406_v0, %v2897_v57  ;;  %v2901_v36 = vmul.f32 %v7398_v23, %v2858_v35  ;;  %v2860_v21 = vpop.f32.mrb[3].mxu1  ;;  %v2934_v50 = vadd.f32 %v7408_v27, %v2896_v19  ;;  %v2900_v52 = vmul.f32 %v7400_v24, %v2595_v5  ;;  %v7496_v5 = vld [vmem:[#allocation4 + $0x80] sm:$0xc0] }
 0x299   :  { %v2936_v40 = vadd.f32 %v7410_v29, %v2898_v25  ;;  %v2902_v9 = vmul.f32 %v7402_v55, %v2860_v21  ;;  %v7424_v31 = vmax.f32 %v2933_v38, 0.0  ;;  %v2937_v53 = vadd.f32 %v7404_v51, %v2899_v39 }
 0x29a   :  { %v7426_v62 = vmax.f32 %v2935_v47, 0.0  ;;  %v2939_v61 = vadd.f32 %v7406_v0, %v2901_v36  ;;  %v7434_v16 = vmax.f32 %v2934_v50, 0.0  ;;  %v7439_v32 = vadd.f32 %v7408_v27, %v2900_v52 }
 0x29b   :  { %v7436_v26 = vmax.f32 %v2936_v40, 0.0  ;;  %v7442_v60 = vadd.f32 %v7410_v29, %v2902_v9  ;;  %2984 = vst [vmem:[#allocation4 + $0x20] sm:$0xff] %v7424_v31  ;;  %v2953_v2 = vmax.f32 %v2937_v53, 0.0  ;;  %v3049_v48 = vrot.slane %v7424_v31, 6 }
 0x29c   :  { %2986 = vst [vmem:[#allocation4 + $0x30] sm:$0xff] %v7426_v62  ;;  %v2955_v54 = vmax.f32 %v2939_v61, 0.0  ;;  %2985 = vst [vmem:[#allocation4 + $0x28] sm:$0xff] %v7434_v16  ;;  %v2954_v3 = vmax.f32 %v7439_v32, 0.0  ;;  %v2599_v6 = vpop.f32.mrb[4].mxu0  ;;  %v3055_v14 = vrot.slane %v7426_v62, 6 }
 0x29d   :  { %2987 = vst [vmem:[#allocation4 + $0x38] sm:$0xff] %v7436_v26  ;;  %v2956_v4 = vmax.f32 %v7442_v60, 0.0  ;;  %v2864_v7 = vpop.f32.mrb[4].mxu1  ;;  %2988 = vst [vmem:[#allocation4 + $0x40] sm:$0xff] %v2953_v2  ;;  %v2903_v18 = vmul.f32 %v7396_v10, %v2599_v6  ;;  %v2601_v33 = vpop.f32.mrb[5].mxu0  ;;  %v3052_v39 = vrot.slane %v7434_v16, 6 }
 0x29e   :  { %2990 = vst [vmem:[#allocation4 + $0x50] sm:$0xff] %v2955_v54  ;;  %v2905_v22 = vmul.f32 %v7398_v23, %v2864_v7  ;;  %v2866_v34 = vpop.f32.mrb[5].mxu1  ;;  %2989 = vst [vmem:[#allocation4 + $0x48] sm:$0xff] %v2954_v3  ;;  %v2904_v41 = vmul.f32 %v7400_v24, %v2601_v33  ;;  %v2603_v49 = vpop.f32.mrb[6].mxu0  ;;  %v3058_v36 = vrot.slane %v7436_v26, 6  ;;  %v7503_v40 = vpack.c.bf16 %v2954_v3, %v7434_v16 }
 0x29f   :  { %2991 = vst [vmem:[#allocation4 + $0x58] sm:$0xff] %v2956_v4  ;;  %v2906_v42 = vmul.f32 %v7402_v55, %v2866_v34  ;;  %v2868_v8 = vpop.f32.mrb[6].mxu1  ;;  %v2941_v15 = vadd.f32 %v7404_v51, %v2903_v18  ;;  %v2907_v44 = vmul.f32 %v7396_v10, %v2603_v49  ;;  %v2605_v11 = vpop.f32.mrb[7].mxu0  ;;  %v7506_v52 = vpack.c.bf16 %v2956_v4, %v7436_v26  ;;  %v7530_v49 = vld [vmem:[#allocation4 + $0x18] sm:$0x80] }
 0x2a0   :  { %v2943_v43 = vadd.f32 %v7406_v0, %v2905_v22  ;;  %v2909_v56 = vmul.f32 %v7398_v23, %v2868_v8  ;;  %v2870_v17 = vpop.f32.mrb[7].mxu1  ;;  %v2942_v30 = vadd.f32 %v7408_v27, %v2904_v41  ;;  %v2908_v58 = vmul.f32 %v7400_v24, %v2605_v11  ;;  %v7488_v24 = vld [vmem:[#allocation4 + $0x88] sm:$0xc0]  ;;  %v3014_v22 = vld [vmem:[#allocation4 + $0x90] sm:$0xc0] }
 0x2a1   :  { %v2944_v57 = vadd.f32 %v7410_v29, %v2906_v42  ;;  %v2910_v46 = vmul.f32 %v7402_v55, %v2870_v17  ;;  %v7472_v19 = vmax.f32 %v2941_v15, 0.0  ;;  %v2945_v20 = vadd.f32 %v7404_v51, %v2907_v44  ;;  %v7490_v55 = vld [vmem:[#allocation4 + $0x8] sm:$0x80]  ;;  %v3015_v42 = vld [vmem:[#allocation4 + $0x98] sm:$0xc0]  ;;  %v6730_v11 = vld [vmem:[#allocation14 + $0x1c8] sm:$0xff]  }
 0x2a2   :  { %v7474_v25 = vmax.f32 %v2943_v43, 0.0  ;;  %v2947_v10 = vadd.f32 %v7406_v0, %v2909_v56  ;;  %v7478_v35 = vmax.f32 %v2942_v30, 0.0  ;;  %v7483_v38 = vadd.f32 %v7408_v27, %v2908_v58  ;;  %v6727_v41 = vld [vmem:[#allocation14 + $0x100] sm:$0xff]   ;;  %v6729_v56 = vld [vmem:[#allocation14 + $0x148] sm:$0xff]  }
 0x2a3   :  { %v7480_v23 = vmax.f32 %v2944_v57, 0.0  ;;  %v7486_v47 = vadd.f32 %v7410_v29, %v2910_v46  ;;  %2992 = vst [vmem:[#allocation4 + $0xa0] sm:$0xff] %v7472_v19  ;;  %v2961_v51 = vmax.f32 %v2945_v20, 0.0  ;;  %v3071_v54 = vrot.slane %v7488_v24, 6  ;;  %v6731_v57 = vld [vmem:[#allocation14 + $0x108] sm:$0xff]  }
 0x2a4   :  { %2994 = vst [vmem:[#allocation4 + $0xb0] sm:$0xff] %v7474_v25  ;;  %v2963_v0 = vmax.f32 %v2947_v10, 0.0  ;;  %2993 = vst [vmem:[#allocation4 + $0xa8] sm:$0xff] %v7478_v35  ;;  %v2962_v27 = vmax.f32 %v7483_v38, 0.0  ;;  %v3008_v21 = vld [vmem:[#allocation4 + $0x40] sm:$0x3f]  ;;  %v3050_v4 = vsel %vm167_vm0, %v3048_v13, %v3049_v48  ;;  %v3053_v33 = vsel %vm167_vm0, %v3051_v12, %v3052_v39 }
 0x2a5   :  { %2995 = vst [vmem:[#allocation4 + $0xb8] sm:$0xff] %v7480_v23  ;;  %v2964_v29 = vmax.f32 %v7486_v47, 0.0  ;;  %v3010_v50 = vld [vmem:[#allocation4 + $0x50] sm:$0x3f]  ;;  %2996 = vst [vmem:[#allocation4 + $0xc0] sm:$0xff] %v2961_v51  ;;  %v3060_v61 = vrot.slane %v3008_v21, 6  ;;  %v3059_v59 = vsel %vm167_vm0, %v3057_v37, %v3058_v36  ;;  %v3056_v45 = vsel %vm167_vm0, %v3054_v28, %v3055_v14 }
 0x2a6   :  { %2998 = vst [vmem:[#allocation4 + $0xd0] sm:$0xff] %v2963_v0  ;;  %v3009_v9 = vld [vmem:[#allocation4 + $0x48] sm:$0x3f]  ;;  %v3011_v53 = vld [vmem:[#allocation4 + $0x58] sm:$0x3f]  ;;  %v3064_v32 = vrot.slane %v3010_v50, 6 }
 0x2a7   :  { %2997 = vst [vmem:[#allocation4 + $0xc8] sm:$0xff] %v2962_v27  ;;  %2999 = vst [vmem:[#allocation4 + $0xd8] sm:$0xff] %v2964_v29  ;;  %v3062_v60 = vrot.slane %v3009_v9, 6  ;;  %v3066_v2 = vrot.slane %v3011_v53, 6  ;;  %v3171_v3 = vrot.slane %v7490_v55, 7  ;;  %v3061_v6 = vsel %vm167_vm0, %v3049_v48, %v3060_v61  ;;  %v6728_v12 = vld [vmem:[#allocation14 + $0x180] sm:$0xff]  }
 0x2a8   :  { %v3065_v7 = vsel %vm167_vm0, %v3055_v14, %v3064_v32  ;;  %v3068_v18 = vrot.slane %v7496_v5, 6  ;;  %v3069_v15 = vrot.slane %v7472_v19, 6  ;;  %v3129_v63 = vld [vmem:[#allocation4 + $0x48] sm:$0x7f]  ;;  %v3131_v43 = vld [vmem:[#allocation4 + $0x58] sm:$0x7f]  ;;  %v3104_v37 = vpack.c.bf16 %v3061_v6, %v3050_v4 }
 0x2a9   :  { %v3063_v34 = vsel %vm167_vm0, %v3052_v39, %v3062_v60  ;;  %v3067_v13 = vsel %vm167_vm0, %v3058_v36, %v3066_v2  ;;  %v3106_v44 = vpack.c.bf16 %v3065_v7, %v3056_v45  ;;  %v3074_v17 = vrot.slane %v3014_v22, 6  ;;  %v6732_v58 = vld [vmem:[#allocation14 + $0x188] sm:$0xff]   ;;  %v6733_v53 = vld [vmem:[#allocation14 + $0x150] sm:$0xff]   ;;  %v6738_v45 = vld [vmem:[#allocation14 + $0x1d8] sm:$0xff]  }
 0x2aa   :  { %v3105_v8 = vpack.c.bf16 %v3063_v34, %v3053_v33  ;;  %v3107_v48 = vpack.c.bf16 %v3067_v13, %v3059_v59  ;;  %v3075_v30 = vrot.slane %v7474_v25, 6  ;;  %v3072_v1 = vrot.slane %v7478_v35, 6  ;;  %v6734_v61 = vld [vmem:[#allocation14 + $0x1d0] sm:$0xff]   ;;  %v6743_v55 = vld [vmem:[#allocation14 + $0x120] sm:$0xff]   ;;  %v6795_v38 = vld [vmem:[#allocation14 + $0x308] sm:$0xff]  }
 0x2ab   :  { %v3077_v46 = vrot.slane %v3015_v42, 6  ;;  %v3078_v28 = vrot.slane %v7480_v23, 6  ;;  %v3177_v14 = vrot.slane %v7530_v49, 7  ;;  %v3182_v24 = vrot.slane %v3129_v63, 7  ;;  %v6735_v13 = vld [vmem:[#allocation14 + $0x110] sm:$0xff]   ;;  %v6739_v63 = vld [vmem:[#allocation14 + $0x118] sm:$0xff]  }
 0x2ac   :  { %4864 = vmatprep.mubr.bf16.mxu0 %v3105_v8  ;;  %4913 = vmatprep.mubr.bf16.mxu1 %v3107_v48  ;;  %v3020_v20 = vld [vmem:[#allocation4 + $0xc0] sm:$0x3f]  ;;  %v3186_v51 = vrot.slane %v3131_v43, 7  ;;  %v3070_v36 = vsel %vm167_vm0, %v3068_v18, %v3069_v15  ;;  %v3076_v32 = vsel %vm167_vm0, %v3074_v17, %v3075_v30  ;;  %v3172_v60 = vrot.slane %v7434_v16, 7  ;;  %v6747_v17 = vld [vmem:[#allocation14 + $0x128] sm:$0xff]  }
 0x2ad   :  { %4865 = vmatmul.mubr.bf16.vlgmr.msra.gmra.mrb[8].mxu0 %v3104_v37  ;;  %4914 = vmatmul.mubr.bf16.vlgmr.msra.gmra.mrb[8].mxu1 %v3106_v44  ;;  %v3022_v10 = vld [vmem:[#allocation4 + $0xd0] sm:$0x3f]  ;;  %v3080_v5 = vrot.slane %v3020_v20, 6  ;;  %v3073_v2 = vsel %vm167_vm0, %v3071_v54, %v3072_v1  ;;  %v3178_v7 = vrot.slane %v7436_v26, 7  ;;  %v3079_v22 = vsel %vm167_vm0, %v3077_v46, %v3078_v28  ;;  %v6736_v54 = vld [vmem:[#allocation14 + $0x190] sm:$0xff]   ;;  %v6737_v48 = vld [vmem:[#allocation14 + $0x158] sm:$0xff]  }
 0x2ae   :  { %5911 = vmatpush3.bf16.msra.mxu0 %v6727_v41  ;;  %5939 = vmatpush3.bf16.msra.mxu1 %v6728_v12  ;;  %v3021_v0 = vld [vmem:[#allocation4 + $0xc8] sm:$0x3f]  ;;  %v3023_v39 = vld [vmem:[#allocation4 + $0xd8] sm:$0x3f]  ;;  %v3084_v21 = vrot.slane %v3022_v10, 6  ;;  %v3183_v34 = vsel %vm228_vm1, %v3172_v60, %v3182_v24  ;;  %v3173_v49 = vsel %vm228_vm1, %v3171_v3, %v3172_v60  ;;  %v6740_v43 = vld [vmem:[#allocation14 + $0x198] sm:$0xff]  }
 0x2af   :  { %5912 = vmatprep.subr.bf16.mxu0 %v6729_v56  ;;  %5940 = vmatprep.subr.bf16.mxu1 %v6730_v11  ;;  %v3082_v50 = vrot.slane %v3021_v0, 6  ;;  %v3086_v9 = vrot.slane %v3023_v39, 6  ;;  %v3081_v4 = vsel %vm167_vm0, %v3069_v15, %v3080_v5  ;;  %v3187_v41 = vsel %vm228_vm1, %v3178_v7, %v3186_v51  ;;  %v6741_v37 = vld [vmem:[#allocation14 + $0x160] sm:$0xff]   ;;  %v6745_v56 = vld [vmem:[#allocation14 + $0x168] sm:$0xff]   ;;  %v3128_v46 = vld [vmem:[#allocation4 + $0x40] sm:$0x7f] }
 0x2b0   :  { %v3085_v6 = vsel %vm167_vm0, %v3075_v30, %v3084_v21  ;;  %v3108_v42 = vpack.c.bf16 %v3081_v4, %v3070_v36  ;;  %v3179_v8 = vsel %vm228_vm1, %v3177_v14, %v3178_v7  ;;  %v3225_v12 = vpack.c.bf16 %v3183_v34, %v3173_v49  ;;  %v6742_v44 = vld [vmem:[#allocation14 + $0x1e0] sm:$0xff]   ;;  %v6746_v11 = vld [vmem:[#allocation14 + $0x1e8] sm:$0xff]   ;;  %v6752_v10 = vld [vmem:[#allocation14 + $0x1b0] sm:$0xff]  }
 0x2b1   :  { %v3083_v18 = vsel %vm167_vm0, %v3072_v1, %v3082_v50  ;;  %v3087_v33 = vsel %vm167_vm0, %v3078_v28, %v3086_v9  ;;  %v3110_v26 = vpack.c.bf16 %v3085_v6, %v3076_v32  ;;  %v3227_v15 = vpack.c.bf16 %v3187_v41, %v3179_v8  ;;  %v6744_v3 = vld [vmem:[#allocation14 + $0x1a0] sm:$0xff]   ;;  %v6748_v30 = vld [vmem:[#allocation14 + $0x1a8] sm:$0xff]   ;;  %v3120_v1 = vld [vmem:[#allocation4] sm:$0x80] }
 0x2b2   :  { %5913 = vmatpush3.bf16.msra.mxu0 %v6731_v57  ;;  %5941 = vmatpush3.bf16.msra.mxu1 %v6732_v58  ;;  %v3109_v59 = vpack.c.bf16 %v3083_v18, %v3073_v2  ;;  %v3111_v16 = vpack.c.bf16 %v3087_v33, %v3079_v22  ;;  %v6749_v57 = vld [vmem:[#allocation14 + $0x170] sm:$0xff]   ;;  %v3122_v14 = vld [vmem:[#allocation4 + $0x10] sm:$0x80]  ;;  %v3130_v20 = vld [vmem:[#allocation4 + $0x50] sm:$0x7f]  ;;  %v3180_v36 = vrot.slane %v3128_v46, 7 }
 0x2b3   :  { %5914 = vmatprep.subr.bf16.mxu0 %v6733_v53  ;;  %5942 = vmatprep.subr.bf16.mxu1 %v6734_v61  ;;  %v6750_v58 = vld [vmem:[#allocation14 + $0x1f0] sm:$0xff]   ;;  %v3141_v24 = vld [vmem:[#allocation4 + $0xc8] sm:$0x7f]  ;;  %v6753_v0 = vld [vmem:[#allocation14 + $0x178] sm:$0xff]   ;;  %v3184_v21 = vrot.slane %v3130_v20, 7  ;;  %v3168_v9 = vrot.slane %v3120_v1, 7 }
 0x2b4   :  { %4872 = vmatprep.mubr.bf16.mxu0 %v3109_v59  ;;  %4921 = vmatprep.mubr.bf16.mxu1 %v3111_v16  ;;  %v6751_v28 = vld [vmem:[#allocation14 + $0x130] sm:$0xff]   ;;  %v6754_v39 = vld [vmem:[#allocation14 + $0x1f8] sm:$0xff]   ;;  %v3133_v5 = vld [vmem:[#allocation4 + $0x88] sm:$0x80]  ;;  %v3169_v53 = vrot.slane %v7424_v31, 7  ;;  %v3202_v61 = vrot.slane %v3141_v24, 7 }
 0x2b5   :  { %4873 = vmatmul.mubr.bf16.gmra.mrb[12].mxu0 %v3108_v42  ;;  %4922 = vmatmul.mubr.bf16.gmra.mrb[12].mxu1 %v3110_v26  ;;  %v3143_v51 = vld [vmem:[#allocation4 + $0xd8] sm:$0x7f]  ;;  %v3135_v50 = vld [vmem:[#allocation4 + $0x98] sm:$0x80]  ;;  %v6755_v60 = vld [vmem:[#allocation14 + $0x138] sm:$0xff]   ;;  %v3174_v4 = vrot.slane %v3122_v14, 7 }
 0x2b6   :  { %5915 = vmatpush3.bf16.msra.mxu0 %v6735_v13  ;;  %5943 = vmatpush3.bf16.msra.mxu1 %v6736_v54  ;;  %v3206_v32 = vrot.slane %v3143_v51, 7  ;;  %v6756_v2 = vld [vmem:[#allocation14 + $0x1b8] sm:$0xff]   ;;  %v3175_v6 = vrot.slane %v7426_v62, 7  ;;  %v3191_v7 = vrot.slane %v3133_v5, 7  ;;  %v3181_v18 = vsel %vm228_vm1, %v3169_v53, %v3180_v36  ;;  %v6757_v22 = vld [vmem:[#allocation14 + $0x240] sm:$0xff]   ;;  %v6766_v14 = vld [vmem:[#allocation14 + $0x2d0] sm:$0xff]  }
 0x2b7   :  { %4962 = vmatprep.mubr.bf16.mxu0 %v3225_v12  ;;  %5011 = vmatprep.mubr.bf16.mxu1 %v3227_v15  ;;  %v6758_v33 = vld [vmem:[#allocation14 + $0x2c0] sm:$0xff]   ;;  %v3192_v34 = vrot.slane %v7478_v35, 7  ;;  %v3197_v59 = vrot.slane %v3135_v50, 7  ;;  %v3198_v31 = vrot.slane %v7480_v23, 7  ;;  %v3170_v13 = vsel %vm228_vm1, %v3168_v9, %v3169_v53  ;;  %v3140_v41 = vld [vmem:[#allocation4 + $0xc0] sm:$0x7f] }
 0x2b8   :  { %5916 = vmatprep.subr.bf16.mxu0 %v6737_v48  ;;  %5944 = vmatprep.subr.bf16.mxu1 %v6738_v45  ;;  %v3185_v16 = vsel %vm228_vm1, %v3175_v6, %v3184_v21  ;;  %v3142_v42 = vld [vmem:[#allocation4 + $0xd0] sm:$0x7f]  ;;  %v3224_v26 = vpack.c.bf16 %v3181_v18, %v3170_v13  ;;  %v3176_v49 = vsel %vm228_vm1, %v3174_v4, %v3175_v6  ;;  %v3132_v8 = vld [vmem:[#allocation4 + $0x80] sm:$0x80]  ;;  %v6759_v45 = vld [vmem:[#allocation14 + $0x200] sm:$0xff]  }
 0x2b9   :  { %v3203_v54 = vsel %vm228_vm1, %v3192_v34, %v3202_v61  ;;  %v3207_v62 = vsel %vm228_vm1, %v3198_v31, %v3206_v32  ;;  %v3226_v35 = vpack.c.bf16 %v3185_v16, %v3176_v49  ;;  %v3193_v23 = vsel %vm228_vm1, %v3191_v7, %v3192_v34  ;;  %v6760_v12 = vld [vmem:[#allocation14 + $0x280] sm:$0xff]   ;;  %v3134_v15 = vld [vmem:[#allocation4 + $0x90] sm:$0x80]  ;;  %v6767_v24 = vld [vmem:[#allocation14 + $0x210] sm:$0xff]  }
 0x2ba   :  { %5917 = vmatpush3.bf16.msra.mxu0 %v6739_v63  ;;  %5945 = vmatpush3.bf16.msra.mxu1 %v6740_v43  ;;  %v3199_v48 = vsel %vm228_vm1, %v3197_v59, %v3198_v31  ;;  %v3229_v63 = vpack.c.bf16 %v3203_v54, %v3193_v23  ;;  %v6768_v51 = vld [vmem:[#allocation14 + $0x290] sm:$0xff]   ;;  %v6771_v36 = vld [vmem:[#allocation14 + $0x218] sm:$0xff]   ;;  %v6773_v21 = vld [vmem:[#allocation14 + $0x260] sm:$0xff]  }
 0x2bb   :  { %5918 = vmatprep.subr.bf16.mxu0 %v6741_v37  ;;  %5946 = vmatprep.subr.bf16.mxu1 %v6742_v44  ;;  %v3231_v43 = vpack.c.bf16 %v3207_v62, %v3199_v48  ;;  %v6761_v37 = vld [vmem:[#allocation14 + $0x248] sm:$0xff]   ;;  %v6772_v5 = vld [vmem:[#allocation14 + $0x298] sm:$0xff]   ;;  %v6774_v50 = vld [vmem:[#allocation14 + $0x2e0] sm:$0xff]  }
 0x2bc   :  { %v6762_v44 = vld [vmem:[#allocation14 + $0x2c8] sm:$0xff]   ;;  %v6775_v9 = vld [vmem:[#allocation14 + $0x220] sm:$0xff]   ;;  %v6783_v4 = vld [vmem:[#allocation14 + $0x230] sm:$0xff]  }
 0x2bd   :  { %v6776_v53 = vld [vmem:[#allocation14 + $0x2a0] sm:$0xff]   ;;  %v6777_v61 = vld [vmem:[#allocation14 + $0x268] sm:$0xff]   ;;  %v6784_v6 = vld [vmem:[#allocation14 + $0x2b0] sm:$0xff]  }
 0x2be   :  { %5919 = vmatpush3.bf16.msra.mxu0 %v6743_v55  ;;  %5947 = vmatpush3.bf16.msra.mxu1 %v6744_v3  ;;  %v3200_v55 = vrot.slane %v3140_v41, 7  ;;  %v3204_v3 = vrot.slane %v3142_v42, 7  ;;  %v6778_v32 = vld [vmem:[#allocation14 + $0x2e8] sm:$0xff]   ;;  %v6785_v7 = vld [vmem:[#allocation14 + $0x278] sm:$0xff]   ;;  %v6789_v34 = vld [vmem:[#allocation14 + $0x340] sm:$0xff]  }
 0x2bf   :  { %5920 = vmatprep.subr.bf16.mxu0 %v6745_v56  ;;  %5948 = vmatprep.subr.bf16.mxu1 %v6746_v11  ;;  %v3188_v56 = vrot.slane %v3132_v8, 7  ;;  %v3189_v11 = vrot.slane %v7472_v19, 7  ;;  %v6786_v18 = vld [vmem:[#allocation14 + $0x2f8] sm:$0xff]   ;;  %v6790_v59 = vld [vmem:[#allocation14 + $0x3c0] sm:$0xff]   ;;  %v7580_v16 = vld [vmem:[#allocation4 + $0x50] sm:$0xff] }
 0x2c0   :  { %v7578_v31 = vld [vmem:[#allocation4 + $0x40] sm:$0xff]  ;;  %v3281_v13 = vld [vmem:[#allocation4 + $0x68] sm:$0x1]  ;;  %v3283_v54 = vld [vmem:[#allocation4 + $0x78] sm:$0x1] }
 0x2c1   :  { %v3201_v1 = vsel %vm228_vm1, %v3189_v11, %v3200_v55  ;;  %v3190_v20 = vsel %vm228_vm1, %v3188_v56, %v3189_v11  ;;  %v3240_v62 = vld [vmem:[#allocation4 + $0x20] sm:$0xff]  ;;  %v3249_v41 = vld [vmem:[#allocation4 + $0xa8] sm:$0xff]  ;;  %v3251_v42 = vld [vmem:[#allocation4 + $0xb8] sm:$0xff]  ;;  %v3338_v11 = vrot.slane %v3283_v54, 1 }
 0x2c2   :  { %5921 = vmatpush3.bf16.msra.mxu0 %v6747_v17  ;;  %5949 = vmatpush3.bf16.msra.mxu1 %v6748_v30  ;;  %v3194_v17 = vrot.slane %v3134_v15, 7  ;;  %v3195_v30 = vrot.slane %v7474_v25, 7  ;;  %v3228_v19 = vpack.c.bf16 %v3201_v1, %v3190_v20  ;;  %v7582_v49 = vld [vmem:[#allocation4 + $0x48] sm:$0xff]  ;;  %v7584_v8 = vld [vmem:[#allocation4 + $0x58] sm:$0xff]  ;;  %v3261_v15 = vpack.c.bf16 %v2962_v27, %v3249_v41  ;;  %v6796_v27 = vld [vmem:[#allocation14 + $0x388] sm:$0xff]  }
 0x2c3   :  { %5922 = vmatprep.subr.bf16.mxu0 %v6749_v57  ;;  %5950 = vmatprep.subr.bf16.mxu1 %v6750_v58  ;;  %v6763_v57 = vld [vmem:[#allocation14 + $0x208] sm:$0xff]   ;;  %v6791_v48 = vld [vmem:[#allocation14 + $0x300] sm:$0xff]   ;;  %v3324_v55 = vrot.slane %v7582_v49, 1  ;;  %v3330_v56 = vrot.slane %v7584_v8, 1  ;;  %v3248_v20 = vld [vmem:[#allocation4 + $0xa0] sm:$0xff] }
 0x2c4   :  { %v6764_v58 = vld [vmem:[#allocation14 + $0x288] sm:$0xff]   ;;  %v3205_v46 = vsel %vm228_vm1, %v3195_v30, %v3204_v3  ;;  %v3334_v3 = vrot.slane %v3281_v13, 1  ;;  %v6817_v13 = vld [vmem:[#allocation14 + $0x378] sm:$0xff]   ;;  %v7606_v41 = vld [vmem:[#allocation4 + $0xd8] sm:$0xff] }
 0x2c6   :  { %5923 = vmatpush3.bf16.msra.mxu0 %v6751_v28  ;;  %5951 = vmatpush3.bf16.msra.mxu1 %v6752_v10  ;;  %v6765_v28 = vld [vmem:[#allocation14 + $0x250] sm:$0xff]   ;;  %v3196_v10 = vsel %vm228_vm1, %v3194_v17, %v3195_v30  ;;  %v7594_v30 = vld [vmem:[#allocation4 + $0xc0] sm:$0xff] }
 0x2c7   :  { %5924 = vmatprep.subr.bf16.mxu0 %v6753_v0  ;;  %5952 = vmatprep.subr.bf16.mxu1 %v6754_v39  ;;  %v3230_v25 = vpack.c.bf16 %v3205_v46, %v3196_v10  ;;  %v6769_v0 = vld [vmem:[#allocation14 + $0x258] sm:$0xff]   ;;  %v6797_v17 = vld [vmem:[#allocation14 + $0x350] sm:$0xff]   ;;  %v3335_v46 = vsel %vm305_vm2, %v3324_v55, %v3334_v3  ;;  %v3250_v10 = vld [vmem:[#allocation4 + $0xb0] sm:$0xff] }
 0x2c8   :  { %v6770_v39 = vld [vmem:[#allocation14 + $0x2d8] sm:$0xff]  }
 0x2c9   :  { %v6820_v3 = vld [vmem:[#allocation14 + $0x3b8] sm:$0xff]  }
 0x2ca   :  { %5925 = vmatpush3.bf16.msra.mxu0 %v6755_v60  ;;  %5953 = vmatpush3.bf16.msra.mxu1 %v6756_v2  ;;  %v6781_v60 = vld [vmem:[#allocation14 + $0x270] sm:$0xff]  }
 0x2cb   :  { %5966 = vmatprep.subr.bf16.mxu0 %v6757_v22  ;;  %5994 = vmatprep.subr.bf16.mxu1 %v6758_v33  ;;  %v6782_v2 = vld [vmem:[#allocation14 + $0x2f0] sm:$0xff]   ;;  %v6787_v22 = vld [vmem:[#allocation14 + $0x238] sm:$0xff]  }
 0x2cc   :  { %v6788_v33 = vld [vmem:[#allocation14 + $0x2b8] sm:$0xff]  }
 0x2cd   :  { %4963 = vmatmul.mubr.bf16.vlgmr.msra.gmra.mrb[16].mxu0 %v3224_v26  ;;  %5012 = vmatmul.mubr.bf16.vlgmr.msra.gmra.mrb[16].mxu1 %v3226_v35  ;;  %v3242_v26 = vld [vmem:[#allocation4 + $0x30] sm:$0xff]  ;;  %v3256_v35 = vpack.c.bf16 %v7578_v31, %v3240_v62  ;;  %v7604_v62 = vld [vmem:[#allocation4 + $0xc8] sm:$0xff] }
 0x2ce   :  { %4970 = vmatprep.mubr.bf16.mxu0 %v3229_v63  ;;  %5019 = vmatprep.mubr.bf16.mxu1 %v3231_v43  ;;  %v3258_v23 = vpack.c.bf16 %v7580_v16, %v3242_v26  ;;  %v3263_v63 = vpack.c.bf16 %v2964_v29, %v3251_v42  ;;  %v6794_v43 = vld [vmem:[#allocation14 + $0x3c8] sm:$0xff]   ;;  %v6818_v42 = vld [vmem:[#allocation14 + $0x3f8] sm:$0xff]  }
 0x2cf   :  { %5967 = vmatpush3.bf16.msra.mxu0 %v6759_v45  ;;  %5995 = vmatpush3.bf16.msra.mxu1 %v6760_v12  ;;  %v6792_v45 = vld [vmem:[#allocation14 + $0x380] sm:$0xff]   ;;  %v6793_v12 = vld [vmem:[#allocation14 + $0x348] sm:$0xff]   ;;  %v3272_v26 = vld [vmem:[#allocation4 + $0x20] sm:$0xfe] }
 0x2d0   :  { %5968 = vmatprep.subr.bf16.mxu0 %v6761_v37  ;;  %5996 = vmatprep.subr.bf16.mxu1 %v6762_v44  ;;  %v3273_v37 = vld [vmem:[#allocation4 + $0x28] sm:$0xfe]  ;;  %v3275_v44 = vld [vmem:[#allocation4 + $0x38] sm:$0xfe] }
 0x2d1   :  { %v3323_v47 = vrot.slane %v3273_v37, 1  ;;  %v3329_v29 = vrot.slane %v3275_v44, 1  ;;  %v3350_v37 = vrot.slane %v7606_v41, 1 }
 0x2d3   :  { %5969 = vmatpush3.bf16.msra.mxu0 %v6763_v57  ;;  %5997 = vmatpush3.bf16.msra.mxu1 %v6764_v58  ;;  %v7596_v57 = vld [vmem:[#allocation4 + $0xd0] sm:$0xff]  ;;  %v6798_v58 = vld [vmem:[#allocation14 + $0x3d0] sm:$0xff]   ;;  %v3325_v1 = vsel %vm305_vm2, %v3323_v47, %v3324_v55  ;;  %v6819_v55 = vld [vmem:[#allocation14 + $0x338] sm:$0xff]  }
 0x2d4   :  { %5970 = vmatprep.subr.bf16.mxu0 %v6765_v28  ;;  %5998 = vmatprep.subr.bf16.mxu1 %v6766_v14  ;;  %v3331_v28 = vsel %vm305_vm2, %v3329_v29, %v3330_v56  ;;  %v3339_v14 = vsel %vm305_vm2, %v3330_v56, %v3338_v11  ;;  %v3320_v56 = vrot.slane %v3272_v26, 1 }
 0x2d5   :  { %4971 = vmatmul.mubr.bf16.gmra.mrb[20].mxu0 %v3228_v19  ;;  %5020 = vmatmul.mubr.bf16.gmra.mrb[20].mxu1 %v3230_v25  ;;  %v3260_v19 = vpack.c.bf16 %v7594_v30, %v3248_v20  ;;  %v3262_v25 = vpack.c.bf16 %v7596_v57, %v3250_v10  ;;  %v3294_v20 = vld [vmem:[#allocation4 + $0xf0] sm:$0x1] }
 0x2d6   :  { %5060 = vmatprep.mubr.bf16.mxu0 %v7503_v40  ;;  %5109 = vmatprep.mubr.bf16.mxu1 %v7506_v52  ;;  %v6779_v40 = vld [vmem:[#allocation14 + $0x228] sm:$0xff]  }
 0x2d7   :  { %5971 = vmatpush3.bf16.msra.mxu0 %v6767_v24  ;;  %5999 = vmatpush3.bf16.msra.mxu1 %v6768_v51  ;;  %v6780_v52 = vld [vmem:[#allocation14 + $0x2a8] sm:$0xff]   ;;  %v6799_v24 = vld [vmem:[#allocation14 + $0x310] sm:$0xff]  }
 0x2d8   :  { %5972 = vmatprep.subr.bf16.mxu0 %v6769_v0  ;;  %6000 = vmatprep.subr.bf16.mxu1 %v6770_v39  ;;  %v6800_v51 = vld [vmem:[#allocation14 + $0x390] sm:$0xff]   ;;  %v3377_v0 = vpack.c.bf16 %v3335_v46, %v3325_v1  ;;  %v3379_v39 = vpack.c.bf16 %v3339_v14, %v3331_v28 }
 0x2db   :  { %5973 = vmatpush3.bf16.msra.mxu0 %v6771_v36  ;;  %6001 = vmatpush3.bf16.msra.mxu1 %v6772_v5  ;;  %v6801_v36 = vld [vmem:[#allocation14 + $0x358] sm:$0xff]  }
 0x2dc   :  { %5974 = vmatprep.subr.bf16.mxu0 %v6773_v21  ;;  %6002 = vmatprep.subr.bf16.mxu1 %v6774_v50  ;;  %v6802_v5 = vld [vmem:[#allocation14 + $0x3d8] sm:$0xff]  }
 0x2dd   :  { %v6803_v21 = vld [vmem:[#allocation14 + $0x318] sm:$0xff]  }
 0x2de   :  { %v6804_v50 = vld [vmem:[#allocation14 + $0x398] sm:$0xff]  }
 0x2df   :  { %5975 = vmatpush3.bf16.msra.mxu0 %v6775_v9  ;;  %6003 = vmatpush3.bf16.msra.mxu1 %v6776_v53  ;;  %v6805_v9 = vld [vmem:[#allocation14 + $0x360] sm:$0xff]  }
 0x2e0   :  { %5976 = vmatprep.subr.bf16.mxu0 %v6777_v61  ;;  %6004 = vmatprep.subr.bf16.mxu1 %v6778_v32  ;;  %v6806_v53 = vld [vmem:[#allocation14 + $0x3e0] sm:$0xff]  }
 0x2e1   :  { %v6807_v61 = vld [vmem:[#allocation14 + $0x320] sm:$0xff]  }
 0x2e2   :  { %v6808_v32 = vld [vmem:[#allocation14 + $0x3a0] sm:$0xff]  }
 0x2e3   :  { %5977 = vmatpush3.bf16.msra.mxu0 %v6779_v40  ;;  %6005 = vmatpush3.bf16.msra.mxu1 %v6780_v52  ;;  %v6809_v40 = vld [vmem:[#allocation14 + $0x368] sm:$0xff]  }
 0x2e4   :  { %5978 = vmatprep.subr.bf16.mxu0 %v6781_v60  ;;  %6006 = vmatprep.subr.bf16.mxu1 %v6782_v2  ;;  %v6810_v52 = vld [vmem:[#allocation14 + $0x3e8] sm:$0xff]  }
 0x2e5   :  { %v6811_v60 = vld [vmem:[#allocation14 + $0x328] sm:$0xff]  }
 0x2e6   :  { %v6812_v2 = vld [vmem:[#allocation14 + $0x3a8] sm:$0xff]  }
 0x2e7   :  { %5979 = vmatpush3.bf16.msra.mxu0 %v6783_v4  ;;  %6007 = vmatpush3.bf16.msra.mxu1 %v6784_v6  ;;  %v6813_v4 = vld [vmem:[#allocation14 + $0x370] sm:$0xff]  }
 0x2e8   :  { %5980 = vmatprep.subr.bf16.mxu0 %v6785_v7  ;;  %6008 = vmatprep.subr.bf16.mxu1 %v6786_v18  ;;  %v6814_v6 = vld [vmem:[#allocation14 + $0x3f0] sm:$0xff]   ;;  %v3280_v7 = vld [vmem:[#allocation4 + $0x60] sm:$0x1]  ;;  %v3282_v18 = vld [vmem:[#allocation4 + $0x70] sm:$0x1] }
 0x2e9   :  { %v3332_v54 = vrot.slane %v3280_v7, 1  ;;  %v3395_v7 = vld [vmem:[#allocation4 + $0x38] sm:$0xfc] }
 0x2eb   :  { %5981 = vmatpush3.bf16.msra.mxu0 %v6787_v22  ;;  %6009 = vmatpush3.bf16.msra.mxu1 %v6788_v33  ;;  %v3293_v22 = vld [vmem:[#allocation4 + $0xe8] sm:$0x1]  ;;  %v6815_v33 = vld [vmem:[#allocation14 + $0x330] sm:$0xff]  }
 0x2ec   :  { %6022 = vmatprep.subr.bf16.mxu0 %v6789_v34  ;;  %6050 = vmatprep.subr.bf16.mxu1 %v6790_v59  ;;  %v6816_v34 = vld [vmem:[#allocation14 + $0x3b0] sm:$0xff]  }
 0x2ed   :  { %v3295_v59 = vld [vmem:[#allocation4 + $0xf8] sm:$0x1] }
 0x2ee   :  { %5061 = vmatmul.mubr.bf16.vlgmr.msra.gmra.mrb[24].mxu0 %v3256_v35  ;;  %5110 = vmatmul.mubr.bf16.vlgmr.msra.gmra.mrb[24].mxu1 %v3258_v23  ;;  %v3274_v35 = vld [vmem:[#allocation4 + $0x30] sm:$0xfe]  ;;  %v3336_v23 = vrot.slane %v3282_v18, 1  ;;  %v3358_v44 = vrot.slane %v3295_v59, 1 }
 0x2ef   :  { %5068 = vmatprep.mubr.bf16.mxu0 %v3261_v15  ;;  %5117 = vmatprep.mubr.bf16.mxu1 %v3263_v63  ;;  %v3287_v15 = vld [vmem:[#allocation4 + $0xb8] sm:$0xfe]  ;;  %v3344_v63 = vrot.slane %v7604_v62, 1  ;;  %v3326_v11 = vrot.slane %v3274_v35, 1  ;;  %v3449_v35 = vrot.slane %v3395_v7, 2  ;;  %v3470_v7 = vrot.slane %v7606_v41, 2 }
 0x2f0   :  { %6023 = vmatpush3.bf16.msra.mxu0 %v6791_v48  ;;  %6051 = vmatpush3.bf16.msra.mxu1 %v6792_v45  ;;  %v3321_v48 = vrot.slane %v7578_v31, 1  ;;  %v3327_v45 = vrot.slane %v7580_v16, 1  ;;  %v3349_v29 = vrot.slane %v3287_v15, 1  ;;  %v3412_v41 = vld [vmem:[#allocation4 + $0xe0] sm:$0x3] }
 0x2f1   :  { %6024 = vmatprep.subr.bf16.mxu0 %v6793_v12  ;;  %6052 = vmatprep.subr.bf16.mxu1 %v6794_v43  ;;  %v3285_v12 = vld [vmem:[#allocation4 + $0xa8] sm:$0xfe]  ;;  %v3354_v43 = vrot.slane %v3293_v22, 1  ;;  %v3444_v22 = vrot.slane %v7582_v49, 2 }
 0x2f2   :  { %v3343_v47 = vrot.slane %v3285_v12, 1  ;;  %v3322_v1 = vsel %vm305_vm2, %v3320_v56, %v3321_v48  ;;  %v3333_v46 = vsel %vm305_vm2, %v3321_v48, %v3332_v54  ;;  %v3328_v28 = vsel %vm305_vm2, %v3326_v11, %v3327_v45  ;;  %v6828_v54 = vld [vmem:[#allocation14 + $0x488] sm:$0xff]   ;;  %v6829_v48 = vld [vmem:[#allocation14 + $0x450] sm:$0xff]  }
 0x2f3   :  { %v3337_v14 = vsel %vm305_vm2, %v3327_v45, %v3336_v23  ;;  %v6830_v45 = vld [vmem:[#allocation14 + $0x4d0] sm:$0xff]  }
 0x2f4   :  { %6025 = vmatpush3.bf16.msra.mxu0 %v6795_v38  ;;  %6053 = vmatpush3.bf16.msra.mxu1 %v6796_v27  ;;  %v7612_v38 = vld [vmem:[#allocation4 + $0x68] sm:$0x3]  ;;  %v3345_v10 = vsel %vm305_vm2, %v3343_v47, %v3344_v63  ;;  %v6836_v47 = vld [vmem:[#allocation14 + $0x498] sm:$0xff]  }
 0x2f5   :  { %6026 = vmatprep.subr.bf16.mxu0 %v6797_v17  ;;  %6054 = vmatprep.subr.bf16.mxu1 %v6798_v58  ;;  %v6821_v27 = vld [vmem:[#allocation14 + $0x440] sm:$0xff]   ;;  %v3292_v58 = vld [vmem:[#allocation4 + $0xe0] sm:$0x1] }
 0x2f6   :  { %5069 = vmatmul.mubr.bf16.gmra.mrb[28].mxu0 %v3260_v19  ;;  %5118 = vmatmul.mubr.bf16.gmra.mrb[28].mxu1 %v3262_v25  ;;  %v6822_v17 = vld [vmem:[#allocation14 + $0x4c0] sm:$0xff]   ;;  %v3355_v19 = vsel %vm305_vm2, %v3344_v63, %v3354_v43  ;;  %v3351_v25 = vsel %vm305_vm2, %v3349_v29, %v3350_v37 }
 0x2f7   :  { %5158 = vmatprep.mubr.bf16.mxu0 %v3377_v0  ;;  %5207 = vmatprep.mubr.bf16.mxu1 %v3379_v39  ;;  %v6823_v0 = vld [vmem:[#allocation14 + $0x400] sm:$0xff]   ;;  %v3284_v39 = vld [vmem:[#allocation4 + $0xa0] sm:$0xfe] }
 0x2f8   :  { %6027 = vmatpush3.bf16.msra.mxu0 %v6799_v24  ;;  %6055 = vmatpush3.bf16.msra.mxu1 %v6800_v51  ;;  %v3359_v24 = vsel %vm305_vm2, %v3350_v37, %v3358_v44  ;;  %v3403_v51 = vld [vmem:[#allocation4 + $0x78] sm:$0x3]  ;;  %v3340_v18 = vrot.slane %v3284_v39, 1  ;;  %v6837_v29 = vld [vmem:[#allocation14 + $0x460] sm:$0xff]  }
 0x2f9   :  { %6028 = vmatprep.subr.bf16.mxu0 %v6801_v36  ;;  %6056 = vmatprep.subr.bf16.mxu1 %v6802_v5  ;;  %v3352_v36 = vrot.slane %v3292_v58, 1  ;;  %v3454_v5 = vrot.slane %v7612_v38, 2  ;;  %v6833_v38 = vld [vmem:[#allocation14 + $0x458] sm:$0xff]   ;;  %v6838_v58 = vld [vmem:[#allocation14 + $0x4e0] sm:$0xff]   ;;  %v3415_v39 = vld [vmem:[#allocation4 + $0xf8] sm:$0x3] }
 0x2fb   :  { %v3455_v15 = vsel %vm366_vm3, %v3444_v22, %v3454_v5  ;;  %v6848_v5 = vld [vmem:[#allocation14 + $0x4b0] sm:$0xff]  }
 0x2fc   :  { %6029 = vmatpush3.bf16.msra.mxu0 %v6803_v21  ;;  %6057 = vmatpush3.bf16.msra.mxu1 %v6804_v50  ;;  %v3376_v21 = vpack.c.bf16 %v3333_v46, %v3322_v1  ;;  %v3378_v50 = vpack.c.bf16 %v3337_v14, %v3328_v28  ;;  %v6839_v1 = vld [vmem:[#allocation14 + $0x420] sm:$0xff]   ;;  %v6841_v28 = vld [vmem:[#allocation14 + $0x468] sm:$0xff]  }
 0x2fd   :  { %6030 = vmatprep.subr.bf16.mxu0 %v6805_v9  ;;  %6058 = vmatprep.subr.bf16.mxu1 %v6806_v53  ;;  %v6824_v9 = vld [vmem:[#allocation14 + $0x480] sm:$0xff]   ;;  %v6825_v53 = vld [vmem:[#allocation14 + $0x448] sm:$0xff]  }
 0x2fe   :  { %v6840_v46 = vld [vmem:[#allocation14 + $0x4a0] sm:$0xff]   ;;  %v6842_v14 = vld [vmem:[#allocation14 + $0x4e8] sm:$0xff]  }
 0x300   :  { %6031 = vmatpush3.bf16.msra.mxu0 %v6807_v61  ;;  %6059 = vmatpush3.bf16.msra.mxu1 %v6808_v32  ;;  %v3341_v61 = vrot.slane %v7594_v30, 1  ;;  %v3286_v32 = vld [vmem:[#allocation4 + $0xb0] sm:$0xfe] }
 0x301   :  { %6032 = vmatprep.subr.bf16.mxu0 %v6809_v40  ;;  %6060 = vmatprep.subr.bf16.mxu1 %v6810_v52  ;;  %v3356_v40 = vrot.slane %v3294_v20, 1  ;;  %v3381_v52 = vpack.c.bf16 %v3355_v19, %v3345_v10  ;;  %v3346_v59 = vrot.slane %v3286_v32, 1  ;;  %v6843_v20 = vld [vmem:[#allocation14 + $0x428] sm:$0xff]   ;;  %v6845_v19 = vld [vmem:[#allocation14 + $0x470] sm:$0xff]  }
 0x302   :  { %v3353_v23 = vsel %vm305_vm2, %v3341_v61, %v3352_v36  ;;  %v6844_v10 = vld [vmem:[#allocation14 + $0x4a8] sm:$0xff]   ;;  %v6847_v36 = vld [vmem:[#allocation14 + $0x430] sm:$0xff]  }
 0x304   :  { %6033 = vmatpush3.bf16.msra.mxu0 %v6811_v60  ;;  %6061 = vmatpush3.bf16.msra.mxu1 %v6812_v2  ;;  %v3383_v60 = vpack.c.bf16 %v3359_v24, %v3351_v25  ;;  %v6826_v2 = vld [vmem:[#allocation14 + $0x4c8] sm:$0xff]   ;;  %v6846_v25 = vld [vmem:[#allocation14 + $0x4f0] sm:$0xff]   ;;  %v3400_v24 = vld [vmem:[#allocation4 + $0x60] sm:$0x3] }
 0x305   :  { %6034 = vmatprep.subr.bf16.mxu0 %v6813_v4  ;;  %6062 = vmatprep.subr.bf16.mxu1 %v6814_v6  ;;  %v3347_v4 = vrot.slane %v7596_v57, 1  ;;  %v3393_v6 = vld [vmem:[#allocation4 + $0x28] sm:$0xfc] }
 0x306   :  { %v3443_v26 = vrot.slane %v3393_v6, 2 }
 0x307   :  { %v3348_v49 = vsel %vm305_vm2, %v3346_v59, %v3347_v4 }
 0x308   :  { %6035 = vmatpush3.bf16.msra.mxu0 %v6815_v33  ;;  %6063 = vmatpush3.bf16.msra.mxu1 %v6816_v34  ;;  %v3450_v33 = vrot.slane %v7584_v8, 2  ;;  %v3458_v34 = vrot.slane %v3403_v51, 2  ;;  %v3357_v8 = vsel %vm305_vm2, %v3347_v4, %v3356_v40  ;;  %v3445_v12 = vsel %vm366_vm3, %v3443_v26, %v3444_v22  ;;  %v3402_v51 = vld [vmem:[#allocation4 + $0x70] sm:$0x3]  ;;  %v6851_v22 = vld [vmem:[#allocation14 + $0x438] sm:$0xff]  }
 0x309   :  { %6036 = vmatprep.subr.bf16.mxu0 %v6817_v13  ;;  %6064 = vmatprep.subr.bf16.mxu1 %v6818_v42  ;;  %v6827_v13 = vld [vmem:[#allocation14 + $0x408] sm:$0xff]   ;;  %v3342_v42 = vsel %vm305_vm2, %v3340_v18, %v3341_v61  ;;  %v3382_v44 = vpack.c.bf16 %v3357_v8, %v3348_v49  ;;  %v3497_v56 = vpack.c.bf16 %v3455_v15, %v3445_v12  ;;  %v3456_v32 = vrot.slane %v3402_v51, 2  ;;  %v3404_v12 = vld [vmem:[#allocation4 + $0xa0] sm:$0xfc] }
 0x30a   :  { %v3451_v63 = vsel %vm366_vm3, %v3449_v35, %v3450_v33  ;;  %v3459_v43 = vsel %vm366_vm3, %v3450_v33, %v3458_v34  ;;  %v3380_v37 = vpack.c.bf16 %v3353_v23, %v3342_v42  ;;  %v3394_v61 = vld [vmem:[#allocation4 + $0x30] sm:$0xfc]  ;;  %v3441_v40 = vrot.slane %v7578_v31, 2  ;;  %v6852_v33 = vld [vmem:[#allocation14 + $0x4b8] sm:$0xff]   ;;  %v3414_v26 = vld [vmem:[#allocation4 + $0xf0] sm:$0x3] }
 0x30b   :  { %v3499_v11 = vpack.c.bf16 %v3459_v43, %v3451_v63  ;;  %v3464_v4 = vrot.slane %v7604_v62, 2  ;;  %v3478_v18 = vrot.slane %v3415_v39, 2  ;;  %v3446_v59 = vrot.slane %v3394_v61, 2  ;;  %v3406_v63 = vld [vmem:[#allocation4 + $0xb0] sm:$0xfc] }
 0x30c   :  { %6037 = vmatpush3.bf16.msra.mxu0 %v6819_v55  ;;  %6065 = vmatpush3.bf16.msra.mxu1 %v6820_v3  ;;  %v6831_v55 = vld [vmem:[#allocation14 + $0x410] sm:$0xff]   ;;  %v3472_v15 = vrot.slane %v3412_v41, 2  ;;  %v3476_v43 = vrot.slane %v3414_v26, 2 }
 0x30d   :  { %6078 = vmatprep.subr.bf16.mxu0 %v6821_v27  ;;  %6106 = vmatprep.subr.bf16.mxu1 %v6822_v17  ;;  %v6832_v3 = vld [vmem:[#allocation14 + $0x490] sm:$0xff]   ;;  %v6834_v27 = vld [vmem:[#allocation14 + $0x4d8] sm:$0xff]   ;;  %v3479_v8 = vsel %vm366_vm3, %v3470_v7, %v3478_v18 }
 0x30e   :  { %v6835_v17 = vld [vmem:[#allocation14 + $0x418] sm:$0xff]  }
 0x30f   :  { %5159 = vmatmul.mubr.bf16.vlgmr.msra.gmra.mrb[32].mxu0 %v3376_v21  ;;  %5208 = vmatmul.mubr.bf16.vlgmr.msra.gmra.mrb[32].mxu1 %v3378_v50  ;;  %v6849_v21 = vld [vmem:[#allocation14 + $0x478] sm:$0xff]   ;;  %v3452_v50 = vrot.slane %v3400_v24, 2 }
 0x310   :  { %5166 = vmatprep.mubr.bf16.mxu0 %v3381_v52  ;;  %5215 = vmatprep.mubr.bf16.mxu1 %v3383_v60  ;;  %v3447_v52 = vrot.slane %v7580_v16, 2  ;;  %v3405_v60 = vld [vmem:[#allocation4 + $0xa8] sm:$0xfc] }
 0x311   :  { %6079 = vmatpush3.bf16.msra.mxu0 %v6823_v0  ;;  %6107 = vmatpush3.bf16.msra.mxu1 %v6824_v9  ;;  %v3413_v0 = vld [vmem:[#allocation4 + $0xe8] sm:$0x3]  ;;  %v6850_v9 = vld [vmem:[#allocation14 + $0x4f8] sm:$0xff]  }
 0x312   :  { %6080 = vmatprep.subr.bf16.mxu0 %v6825_v53  ;;  %6108 = vmatprep.subr.bf16.mxu1 %v6826_v2  ;;  %v3392_v53 = vld [vmem:[#allocation4 + $0x20] sm:$0xfc]  ;;  %v3407_v2 = vld [vmem:[#allocation4 + $0xb8] sm:$0xfc]  ;;  %v3474_v6 = vrot.slane %v3413_v0, 2  ;;  %v3448_v62 = vsel %vm366_vm3, %v3446_v59, %v3447_v52  ;;  %v3457_v42 = vsel %vm366_vm3, %v3447_v52, %v3456_v32 }
 0x313   :  { %v3440_v34 = vrot.slane %v3392_v53, 2  ;;  %v3469_v31 = vrot.slane %v3407_v2, 2 }
 0x314   :  { %v3475_v23 = vsel %vm366_vm3, %v3464_v4, %v3474_v6 }
 0x315   :  { %6081 = vmatpush3.bf16.msra.mxu0 %v6827_v13  ;;  %6109 = vmatpush3.bf16.msra.mxu1 %v6828_v54  ;;  %v3463_v13 = vrot.slane %v3405_v60, 2  ;;  %v3442_v16 = vsel %vm366_vm3, %v3440_v34, %v3441_v40  ;;  %v3453_v54 = vsel %vm366_vm3, %v3441_v40, %v3452_v50  ;;  %v3471_v49 = vsel %vm366_vm3, %v3469_v31, %v3470_v7 }
 0x316   :  { %6082 = vmatprep.subr.bf16.mxu0 %v6829_v48  ;;  %6110 = vmatprep.subr.bf16.mxu1 %v6830_v45  ;;  %v3496_v48 = vpack.c.bf16 %v3453_v54, %v3442_v16  ;;  %v3498_v45 = vpack.c.bf16 %v3457_v42, %v3448_v62 }
 0x317   :  { %5167 = vmatmul.mubr.bf16.gmra.mrb[36].mxu0 %v3380_v37  ;;  %5216 = vmatmul.mubr.bf16.gmra.mrb[36].mxu1 %v3382_v44  ;;  %v3465_v35 = vsel %vm366_vm3, %v3463_v13, %v3464_v4  ;;  %v3503_v44 = vpack.c.bf16 %v3479_v8, %v3471_v49 }
 0x318   :  { %5256 = vmatprep.mubr.bf16.mxu0 %v3497_v56  ;;  %5305 = vmatprep.mubr.bf16.mxu1 %v3499_v11  ;;  %v3501_v37 = vpack.c.bf16 %v3475_v23, %v3465_v35  ;;  %v3460_v56 = vrot.slane %v3404_v12, 2  ;;  %v3466_v11 = vrot.slane %v3406_v63, 2 }
 0x319   :  { %6083 = vmatpush3.bf16.msra.mxu0 %v6831_v55  ;;  %6111 = vmatpush3.bf16.msra.mxu1 %v6832_v3  ;;  %v3461_v55 = vrot.slane %v7594_v30, 2  ;;  %v3467_v3 = vrot.slane %v7596_v57, 2 }
 0x31a   :  { %6084 = vmatprep.subr.bf16.mxu0 %v6833_v38  ;;  %6112 = vmatprep.subr.bf16.mxu1 %v6834_v27 }
 0x31b   :  { %v3462_v38 = vsel %vm366_vm3, %v3460_v56, %v3461_v55  ;;  %v3473_v27 = vsel %vm366_vm3, %v3461_v55, %v3472_v15 }
 0x31d   :  { %6085 = vmatpush3.bf16.msra.mxu0 %v6835_v17  ;;  %6113 = vmatpush3.bf16.msra.mxu1 %v6836_v47  ;;  %v3468_v17 = vsel %vm366_vm3, %v3466_v11, %v3467_v3  ;;  %v3477_v47 = vsel %vm366_vm3, %v3467_v3, %v3476_v43 }
 0x31e   :  { %6086 = vmatprep.subr.bf16.mxu0 %v6837_v29  ;;  %6114 = vmatprep.subr.bf16.mxu1 %v6838_v58  ;;  %v3500_v29 = vpack.c.bf16 %v3473_v27, %v3462_v38  ;;  %v3502_v58 = vpack.c.bf16 %v3477_v47, %v3468_v17 }
 0x321   :  { %6087 = vmatpush3.bf16.msra.mxu0 %v6839_v1  ;;  %6115 = vmatpush3.bf16.msra.mxu1 %v6840_v46 }
 0x322   :  { %6088 = vmatprep.subr.bf16.mxu0 %v6841_v28  ;;  %6116 = vmatprep.subr.bf16.mxu1 %v6842_v14 }
 0x325   :  { %6089 = vmatpush3.bf16.msra.mxu0 %v6843_v20  ;;  %6117 = vmatpush3.bf16.msra.mxu1 %v6844_v10 }
 0x326   :  { %6090 = vmatprep.subr.bf16.mxu0 %v6845_v19  ;;  %6118 = vmatprep.subr.bf16.mxu1 %v6846_v25 }
 0x329   :  { %6091 = vmatpush3.bf16.msra.mxu0 %v6847_v36  ;;  %6119 = vmatpush3.bf16.msra.mxu1 %v6848_v5 }
 0x32a   :  { %6092 = vmatprep.subr.bf16.mxu0 %v6849_v21  ;;  %6120 = vmatprep.subr.bf16.mxu1 %v6850_v9 }
 0x32d   :  { %6093 = vmatpush3.bf16.msra.mxu0 %v6851_v22  ;;  %6121 = vmatpush3.bf16.msra.mxu1 %v6852_v33 }
 0x330   :  { %5257 = vmatmul.mubr.bf16.vlgmr.msra.gmra.mrb[40].mxu0 %v3496_v48  ;;  %5306 = vmatmul.mubr.bf16.vlgmr.msra.gmra.mrb[40].mxu1 %v3498_v45 }
 0x331   :  { %5264 = vmatprep.mubr.bf16.mxu0 %v3501_v37  ;;  %5313 = vmatprep.mubr.bf16.mxu1 %v3503_v44 }
 0x338   :  { %5265 = vmatmul.mubr.bf16.gmra.mrb[44].mxu0 %v3500_v29  ;;  %5314 = vmatmul.mubr.bf16.gmra.mrb[44].mxu1 %v3502_v58 }
 0x380   :  { %v5870_v30 = vpop.f32.mrb[8].mxu0  ;;  %v5898_v57 = vpop.f32.mrb[8].mxu1 }
 0x381   :  { %v5871_v1 = vpop.f32.mrb[9].mxu0  ;;  %v5899_v46 = vpop.f32.mrb[9].mxu1 }
 0x382   :  { %v5872_v28 = vadd.f32 %v5871_v1, %v5870_v30  ;;  %v5900_v14 = vadd.f32 %v5899_v46, %v5898_v57  ;;  %v5873_v20 = vpop.f32.mrb[10].mxu0  ;;  %v5901_v10 = vpop.f32.mrb[10].mxu1 }
 0x383   :  { %v5874_v19 = vpop.f32.mrb[11].mxu0  ;;  %v5902_v25 = vpop.f32.mrb[11].mxu1 }
 0x384   :  { %v4916_v24 = vadd.f32 %v5900_v14, %v5872_v28  ;;  %v5875_v51 = vadd.f32 %v5874_v19, %v5873_v20  ;;  %v5903_v0 = vadd.f32 %v5902_v25, %v5901_v10 }
 0x386   :  { %v4919_v39 = vadd.f32 %v5903_v0, %v5875_v51 }
 0x388   :  { %v5876_v36 = vpop.f32.mrb[12].mxu0  ;;  %v5904_v5 = vpop.f32.mrb[12].mxu1 }
 0x389   :  { %v5877_v21 = vpop.f32.mrb[13].mxu0  ;;  %v5905_v50 = vpop.f32.mrb[13].mxu1 }
 0x38a   :  { %v5878_v9 = vadd.f32 %v5877_v21, %v5876_v36  ;;  %v5906_v53 = vadd.f32 %v5905_v50, %v5904_v5  ;;  %v5879_v61 = vpop.f32.mrb[14].mxu0  ;;  %v5907_v32 = vpop.f32.mrb[14].mxu1 }
 0x38b   :  { %v5880_v40 = vpop.f32.mrb[15].mxu0  ;;  %v5908_v52 = vpop.f32.mrb[15].mxu1 }
 0x38c   :  { %v4924_v60 = vadd.f32 %v5906_v53, %v5878_v9  ;;  %v5881_v2 = vadd.f32 %v5880_v40, %v5879_v61  ;;  %v5909_v4 = vadd.f32 %v5908_v52, %v5907_v32 }
 0x38e   :  { %v4927_v6 = vadd.f32 %v5909_v4, %v5881_v2 }
 0x3a0   :  { %v5926_v7 = vpop.f32.mrb[16].mxu0  ;;  %v5954_v18 = vpop.f32.mrb[16].mxu1 }
 0x3a1   :  { %v5927_v22 = vpop.f32.mrb[17].mxu0  ;;  %v5955_v33 = vpop.f32.mrb[17].mxu1 }
 0x3a2   :  { %v5928_v34 = vadd.f32 %v5927_v22, %v5926_v7  ;;  %v5956_v59 = vadd.f32 %v5955_v33, %v5954_v18  ;;  %v5929_v13 = vpop.f32.mrb[18].mxu0  ;;  %v5957_v31 = vpop.f32.mrb[18].mxu1 }
 0x3a3   :  { %v5930_v16 = vpop.f32.mrb[19].mxu0  ;;  %v5958_v54 = vpop.f32.mrb[19].mxu1 }
 0x3a4   :  { %v4965_v62 = vadd.f32 %v5928_v34, %v4916_v24  ;;  %v5931_v42 = vadd.f32 %v5930_v16, %v5929_v13  ;;  %v5959_v41 = vadd.f32 %v5958_v54, %v5957_v31 }
 0x3a6   :  { %v5014_v26 = vadd.f32 %v5956_v59, %v4965_v62  ;;  %v4968_v35 = vadd.f32 %v5931_v42, %v4919_v39 }
 0x3a8   :  { %v5017_v23 = vadd.f32 %v5959_v41, %v4968_v35  ;;  %v5932_v49 = vpop.f32.mrb[20].mxu0  ;;  %v5960_v8 = vpop.f32.mrb[20].mxu1 }
 0x3a9   :  { %v5933_v48 = vpop.f32.mrb[21].mxu0  ;;  %v5961_v45 = vpop.f32.mrb[21].mxu1 }
 0x3aa   :  { %v5934_v12 = vadd.f32 %v5933_v48, %v5932_v49  ;;  %v5962_v15 = vadd.f32 %v5961_v45, %v5960_v8  ;;  %v5935_v63 = vpop.f32.mrb[22].mxu0  ;;  %v5963_v43 = vpop.f32.mrb[22].mxu1 }
 0x3ab   :  { %v5936_v37 = vpop.f32.mrb[23].mxu0  ;;  %v5964_v44 = vpop.f32.mrb[23].mxu1 }
 0x3ac   :  { %v4973_v55 = vadd.f32 %v5934_v12, %v4924_v60  ;;  %v5937_v3 = vadd.f32 %v5936_v37, %v5935_v63  ;;  %v5965_v56 = vadd.f32 %v5964_v44, %v5963_v43 }
 0x3ae   :  { %v5022_v11 = vadd.f32 %v5962_v15, %v4973_v55  ;;  %v4976_v38 = vadd.f32 %v5937_v3, %v4927_v6 }
 0x3b0   :  { %v5025_v27 = vadd.f32 %v5965_v56, %v4976_v38 }
 0x3c1   :  { %v5982_v17 = vpop.f32.mrb[24].mxu0  ;;  %v6010_v47 = vpop.f32.mrb[24].mxu1 }
 0x3c2   :  { %v5983_v29 = vpop.f32.mrb[25].mxu0  ;;  %v6011_v58 = vpop.f32.mrb[25].mxu1 }
 0x3c3   :  { %v5984_v30 = vadd.f32 %v5983_v29, %v5982_v17  ;;  %v6012_v57 = vadd.f32 %v6011_v58, %v6010_v47  ;;  %v5985_v1 = vpop.f32.mrb[26].mxu0  ;;  %v6013_v46 = vpop.f32.mrb[26].mxu1 }
 0x3c4   :  { %v5986_v28 = vpop.f32.mrb[27].mxu0  ;;  %v6014_v14 = vpop.f32.mrb[27].mxu1 }
 0x3c5   :  { %v5063_v20 = vadd.f32 %v5984_v30, %v5014_v26  ;;  %v5987_v10 = vadd.f32 %v5986_v28, %v5985_v1  ;;  %v6015_v19 = vadd.f32 %v6014_v14, %v6013_v46 }
 0x3c7   :  { %v5112_v25 = vadd.f32 %v6012_v57, %v5063_v20  ;;  %v5066_v24 = vadd.f32 %v5987_v10, %v5017_v23 }
 0x3c9   :  { %v5115_v51 = vadd.f32 %v6015_v19, %v5066_v24  ;;  %v5988_v0 = vpop.f32.mrb[28].mxu0  ;;  %v6016_v39 = vpop.f32.mrb[28].mxu1 }
 0x3ca   :  { %v5989_v36 = vpop.f32.mrb[29].mxu0  ;;  %v6017_v5 = vpop.f32.mrb[29].mxu1 }
 0x3cb   :  { %v5990_v21 = vadd.f32 %v5989_v36, %v5988_v0  ;;  %v6018_v50 = vadd.f32 %v6017_v5, %v6016_v39  ;;  %v5991_v9 = vpop.f32.mrb[30].mxu0  ;;  %v6019_v53 = vpop.f32.mrb[30].mxu1  ;;  %v5853_v0 = vld [vmem:[#allocation17] ss:$0 sm:$0xff] }
 0x3cc   :  { %v5992_v61 = vpop.f32.mrb[31].mxu0  ;;  %v6020_v32 = vpop.f32.mrb[31].mxu1 }
 0x3cd   :  { %v5071_v40 = vadd.f32 %v5990_v21, %v5022_v11  ;;  %v5993_v52 = vadd.f32 %v5992_v61, %v5991_v9  ;;  %v6021_v60 = vadd.f32 %v6020_v32, %v6019_v53 }
 0x3cf   :  { %v5120_v2 = vadd.f32 %v6018_v50, %v5071_v40  ;;  %v5074_v4 = vadd.f32 %v5993_v52, %v5025_v27 }
 0x3d1   :  { %v5123_v6 = vadd.f32 %v6021_v60, %v5074_v4 }
 0x3e2   :  { %v6038_v7 = vpop.f32.mrb[32].mxu0  ;;  %v6066_v18 = vpop.f32.mrb[32].mxu1 }
 0x3e3   :  { %v6039_v22 = vpop.f32.mrb[33].mxu0  ;;  %v6067_v33 = vpop.f32.mrb[33].mxu1 }
 0x3e4   :  { %v6040_v34 = vadd.f32 %v6039_v22, %v6038_v7  ;;  %v6068_v59 = vadd.f32 %v6067_v33, %v6066_v18  ;;  %v6041_v13 = vpop.f32.mrb[34].mxu0  ;;  %v6069_v31 = vpop.f32.mrb[34].mxu1 }
 0x3e5   :  { %v6042_v16 = vpop.f32.mrb[35].mxu0  ;;  %v6070_v54 = vpop.f32.mrb[35].mxu1 }
 0x3e6   :  { %v5161_v62 = vadd.f32 %v6040_v34, %v5112_v25  ;;  %v6043_v42 = vadd.f32 %v6042_v16, %v6041_v13  ;;  %v6071_v41 = vadd.f32 %v6070_v54, %v6069_v31  ;;  %v5852_v25 = vld [vmem:[#allocation15] ss:$0 sm:$0xff] }
 0x3e8   :  { %v5210_v26 = vadd.f32 %v6068_v59, %v5161_v62  ;;  %v5164_v35 = vadd.f32 %v6043_v42, %v5115_v51 }
 0x3ea   :  { %v5213_v23 = vadd.f32 %v6071_v41, %v5164_v35  ;;  %v6044_v49 = vpop.f32.mrb[36].mxu0  ;;  %v6072_v8 = vpop.f32.mrb[36].mxu1 }
 0x3eb   :  { %v6045_v48 = vpop.f32.mrb[37].mxu0  ;;  %v6073_v45 = vpop.f32.mrb[37].mxu1 }
 0x3ec   :  { %v6046_v12 = vadd.f32 %v6045_v48, %v6044_v49  ;;  %v6074_v15 = vadd.f32 %v6073_v45, %v6072_v8  ;;  %v6047_v63 = vpop.f32.mrb[38].mxu0  ;;  %v6075_v43 = vpop.f32.mrb[38].mxu1 }
 0x3ed   :  { %v6048_v37 = vpop.f32.mrb[39].mxu0  ;;  %v6076_v44 = vpop.f32.mrb[39].mxu1 }
 0x3ee   :  { %v5169_v55 = vadd.f32 %v6046_v12, %v5120_v2  ;;  %v6049_v3 = vadd.f32 %v6048_v37, %v6047_v63  ;;  %v6077_v56 = vadd.f32 %v6076_v44, %v6075_v43 }
 0x3f0   :  { %v5218_v11 = vadd.f32 %v6074_v15, %v5169_v55  ;;  %v5172_v38 = vadd.f32 %v6049_v3, %v5123_v6 }
 0x3f2   :  { %v5221_v27 = vadd.f32 %v6077_v56, %v5172_v38 }
 0x403   :  { %v6094_v17 = vpop.f32.mrb[40].mxu0  ;;  %v6122_v47 = vpop.f32.mrb[40].mxu1 }
 0x404   :  { %v6095_v29 = vpop.f32.mrb[41].mxu0  ;;  %v6123_v58 = vpop.f32.mrb[41].mxu1 }
 0x405   :  { %v6096_v30 = vadd.f32 %v6095_v29, %v6094_v17  ;;  %v6124_v57 = vadd.f32 %v6123_v58, %v6122_v47  ;;  %v6097_v1 = vpop.f32.mrb[42].mxu0  ;;  %v6125_v46 = vpop.f32.mrb[42].mxu1 }
 0x406   :  { %v6098_v28 = vpop.f32.mrb[43].mxu0  ;;  %v6126_v14 = vpop.f32.mrb[43].mxu1 }
 0x407   :  { %v5259_v20 = vadd.f32 %v6096_v30, %v5210_v26  ;;  %v6099_v10 = vadd.f32 %v6098_v28, %v6097_v1  ;;  %v6127_v19 = vadd.f32 %v6126_v14, %v6125_v46 }
 0x409   :  { %v5308_v24 = vadd.f32 %v6124_v57, %v5259_v20  ;;  %v5262_v51 = vadd.f32 %v6099_v10, %v5213_v23 }
 0x40b   :  { %v5329_v39 = vmul.f32 %v5852_v25, %v5308_v24  ;;  %v5311_v36 = vadd.f32 %v6127_v19, %v5262_v51  ;;  %v6100_v5 = vpop.f32.mrb[44].mxu0  ;;  %v6128_v21 = vpop.f32.mrb[44].mxu1 }
 0x40c   :  { %v6101_v50 = vpop.f32.mrb[45].mxu0  ;;  %v6129_v9 = vpop.f32.mrb[45].mxu1 }
 0x40d   :  { %v5340_v53 = vadd.f32 %v5853_v0, %v5329_v39  ;;  %v5330_v61 = vmul.f32 %v5852_v25, %v5311_v36  ;;  %v6102_v32 = vadd.f32 %v6101_v50, %v6100_v5  ;;  %v6130_v40 = vadd.f32 %v6129_v9, %v6128_v21  ;;  %v6103_v52 = vpop.f32.mrb[46].mxu0  ;;  %v6131_v60 = vpop.f32.mrb[46].mxu1 }
 0x40e   :  { %v6104_v2 = vpop.f32.mrb[47].mxu0  ;;  %v6132_v4 = vpop.f32.mrb[47].mxu1 }
 0x40f   :  { %v5344_v6 = vmax.f32 %v5340_v53, 0.0  ;;  %v5341_v7 = vadd.f32 %v5853_v0, %v5330_v61  ;;  %v5267_v18 = vadd.f32 %v6102_v32, %v5218_v11  ;;  %v6105_v22 = vadd.f32 %v6104_v2, %v6103_v52 }
 0x410   :  { %v6133_v33 = vadd.f32 %v6132_v4, %v6131_v60 }
 0x411   :  { %5348 = vst [vmem:[#allocation18] sm:$0xff] %v5344_v6  ;;  %v5345_v34 = vmax.f32 %v5341_v7, 0.0  ;;  %v5316_v59 = vadd.f32 %v6130_v40, %v5267_v18  ;;  %v5270_v13 = vadd.f32 %v6105_v22, %v5221_v27 }
 0x413   :  { %5349 = vst [vmem:[#allocation18 + $0x8] sm:$0xff] %v5345_v34  ;;  %v5331_v31 = vmul.f32 %v5852_v25, %v5316_v59  ;;  %v5319_v16 = vadd.f32 %v6133_v33, %v5270_v13 }
 0x415   :  { %v5342_v54 = vadd.f32 %v5853_v0, %v5331_v31  ;;  %v5332_v62 = vmul.f32 %v5852_v25, %v5319_v16 }
 0x417   :  { %v5346_v42 = vmax.f32 %v5342_v54, 0.0  ;;  %v5343_v41 = vadd.f32 %v5853_v0, %v5332_v62 }
 0x419   :  { %5350 = vst [vmem:[#allocation18 + $0x10] sm:$0xff] %v5346_v42  ;;  %v5347_v26 = vmax.f32 %v5343_v41, 0.0 }
 0x41b   :  { %5351 = vst [vmem:[#allocation18 + $0x18] sm:$0xff] %v5347_v26 }
 0x41c   :  { %7018 = shalt.err (!%p7015_p4)
}
 0x41d   :  { %s7019_s30 = scalar_lea.hbm %s7672_s7, 512 }
 0x41e   :  { %p7020_p5 = scmp.ne.s32.totalorder %s7672_s7, %s7019_s30  ;;  %p7023_p6 = scmp.lt.u32.totalorder %s7019_s30, %s7672_s7 }
 0x420   :  { %p7025_p7 = pnand %p7023_p6, %p7020_p5 }
 0x422   :  { %7028 = shalt.err (!%p7025_p7)
}
 0x423   :  { %s7052_s21 = smov 128   ;;  %s7053_s22 = smov 8  }
 0x424   :  { %5363 = dma.vmem_to_hbm [thread:$0]  %s5358_s27, 512, %s7672_s7, [#allocation8], %s7052_s21, %s7052_s21, %s7053_s22  }
 0x425   :  { %7037 = dma.done.wait [#allocation8], 512  }
 0x426   :  { %7038 = vsyncadd [#allocation8], 4294966784 }
 0x427   :  { %5367 = vsyncpa [#allocation7], 1 }
 0x428   :  { %5368 = vsyncpa [#allocation10], 1 }
 0x429   :  { %5369 = vsyncpa [#allocation13], 1 }
 0x42a   :  { %5370 = vsyncpa [#allocation16], 1 }
 0x42b   :  { %5371 = vsyncpa [#allocation8], 1 }

</bundles_post_ra>
